<compile_context>
chip_gen: v5e
topology: v5e:2x2
jax: 0.10.0
libtpu: 0.0.40
codegen_flags: <defaults>
</compile_context>

<pallas_src>
import functools

import jax
import jax.numpy as jnp
from jax.experimental import pallas as pl
from jax.experimental.pallas import tpu as pltpu


def _attention_kernel(x_ref, wqkv_ref, bqkv_ref, wp_ref, bp_ref, hm_ref, o_ref,
                      *, num_heads: int, head_dim: int, bb: int, n: int):
    """One grid step: `bb` batch elements, fully fused in VMEM."""
    C = num_heads * head_dim
    m = bb * n

    x = x_ref[...].reshape(m, C)                               # bf16, leading merge (free)

    # --- Fused QKV projection: one bf16 MXU launch, f32 accumulate.  The
    # attention scale is pre-folded into the Q columns of wqkv/bqkv. ---------
    qkv = jnp.dot(x, wqkv_ref[...],
                  preferred_element_type=jnp.float32) + bqkv_ref[...]   # (m, 3C) f32
    q = qkv[:, :C].reshape(bb, n, C).astype(jnp.bfloat16)
    k = qkv[:, C:2 * C].reshape(bb, n, C).astype(jnp.bfloat16)
    v = qkv[:, 2 * C:].reshape(bb, n, C).astype(jnp.bfloat16)

    # --- Pack heads along the key axis (leading-dim merges only, no Q
    # replication):  Kp[b, h*n + j, c] = k[b, j, c] * (c // head_dim == h),
    # same for V. ------------------------------------------------------------
    hm = hm_ref[...][None, :, None, :]                         # (1, H, 1, C) bf16 0/1
    kp = (k[:, None, :, :] * hm).reshape(bb, num_heads * n, C)  # (bb, H*n, C)
    vp = (v[:, None, :, :] * hm).reshape(bb, num_heads * n, C)

    # --- Scores: one lane-dense (n, H*n) matmul per batch element. ----------
    s = jnp.einsum('bqc,bkc->bqk', q, kp,
                   preferred_element_type=jnp.float32)          # (bb, n, H*n) f32

    # --- Per-head (segmented) softmax, unnormalized.  Static lane slices over
    # the packed key axis; pure VPU/EUP/XLU work, MXU launches stay packed.
    # Normalization is deferred until after P@V. ------------------------------
    p_blocks = []
    recip_blocks = []
    for h in range(num_heads):
        s_h = s[:, :, h * n:(h + 1) * n]                        # (bb, n, n) f32
        p_h = jnp.exp(s_h - jnp.max(s_h, axis=-1, keepdims=True))
        recip_blocks.append(
            pl.reciprocal(jnp.sum(p_h, axis=-1, keepdims=True)))  # (bb, n, 1) exact
        p_blocks.append(p_h.astype(jnp.bfloat16))               # p <= 1: cast-safe
    p = jnp.concatenate(p_blocks, axis=-1)                      # (bb, n, H*n) bf16

    # --- P @ V: one matmul per batch element, contraction depth H*n; the
    # masked-V packing makes the head combine fall out of the contraction. ---
    o = jnp.einsum('bqk,bkc->bqc', p, vp,
                   preferred_element_type=jnp.float32)          # (bb, n, C) f32

    # --- Softmax normalization on the (n, C) output (n/C fewer elements than
    # scaling the (n, H*n) probability tensor). -------------------------------
    recip_c = jnp.concatenate(
        [jnp.broadcast_to(r, (bb, n, head_dim)) for r in recip_blocks], axis=-1)
    attn_out = (o * recip_c).reshape(m, C)

    # --- Output projection. ---------------------------------------------------
    out = jnp.dot(attn_out.astype(jnp.bfloat16), wp_ref[...],
                  preferred_element_type=jnp.float32) + bp_ref[...]
    o_ref[...] = out.reshape(bb, n, C).astype(o_ref.dtype)


def pvt_attention(x, params, *, num_heads: int, batch_block: int = 1):
    """x: (B, N, C) float32.  params: (in, out)-layout weights, as in the
    PyTorch module (q: CxC, kv: Cx2C, proj: CxC) plus (1, .) biases.

    batch_block defaults to 1 so the grid has B pipeline steps: input/output
    DMA overlaps compute and the "parallel" batch axis feeds both TensorCores
    on multi-core chips whenever B >= 2 (no device_kind sniffing)."""
    B, N, C = x.shape
    assert C % num_heads == 0
    head_dim = C // num_heads
    scale = head_dim ** (-0.5)
    out_dtype = x.dtype

    assert B % batch_block == 0
    grid_b = B // batch_block

    # Host-side weight prep: fold the attention scale into the Q projection,
    # fuse q||kv into one (C, 3C) MXU operand (bf16); biases stay f32 (added
    # to f32 accumulators).
    wqkv = jnp.concatenate([params["wq"] * scale, params["wkv"]],
                           axis=1).astype(jnp.bfloat16)
    bqkv = jnp.concatenate([params["bq"] * scale, params["bkv"]],
                           axis=1).astype(jnp.float32)
    wp = params["wp"].astype(jnp.bfloat16)
    bp = params["bp"].astype(jnp.float32)

    # Block-diagonal head mask built once host-side: hm[h, c] = (c//hd == h).
    hm = (jnp.arange(C, dtype=jnp.int32)[None, :] // head_dim
          == jnp.arange(num_heads, dtype=jnp.int32)[:, None]).astype(jnp.bfloat16)

    # Stream x as bf16: the kernel only consumes it as a bf16 MXU operand.
    x_bf = x.astype(jnp.bfloat16)

    kernel = functools.partial(_attention_kernel, num_heads=num_heads,
                               head_dim=head_dim, bb=batch_block, n=N)

    return pl.pallas_call(
        kernel,
        out_shape=jax.ShapeDtypeStruct((B, N, C), out_dtype),
        grid_spec=pltpu.PrefetchScalarGridSpec(
            num_scalar_prefetch=0,
            grid=(grid_b,),
            in_specs=[
                pl.BlockSpec((batch_block, N, C), lambda b: (b, 0, 0)),   # x (bf16)
                pl.BlockSpec((C, 3 * C), lambda b: (0, 0)),               # wqkv
                pl.BlockSpec((1, 3 * C), lambda b: (0, 0)),               # bqkv
                pl.BlockSpec((C, C), lambda b: (0, 0)),                   # wp
                pl.BlockSpec((1, C), lambda b: (0, 0)),                   # bp
                pl.BlockSpec((num_heads, C), lambda b: (0, 0)),           # head mask
            ],
            out_specs=pl.BlockSpec((batch_block, N, C), lambda b: (b, 0, 0)),
        ),
        compiler_params=pltpu.CompilerParams(
            dimension_semantics=("parallel",)),
    )(x_bf, wqkv, bqkv, wp, bp, hm)


def reference_attention(x, params, *, num_heads: int):
    """Pure-JAX f32 reference matching the PyTorch forward (sr=None, eval)."""
    B, N, C = x.shape
    hd = C // num_heads
    scale = hd ** (-0.5)
    q = x @ params["wq"] + params["bq"]                       # (B, N, C)
    kv = x @ params["wkv"] + params["bkv"]                    # (B, N, 2C)
    k, v = kv[..., :C], kv[..., C:]
    q = q.reshape(B, N, num_heads, hd).transpose(0, 2, 1, 3)  # (B, H, N, hd)
    k = k.reshape(B, N, num_heads, hd).transpose(0, 2, 1, 3)
    v = v.reshape(B, N, num_heads, hd).transpose(0, 2, 1, 3)
    attn = (q * scale) @ k.transpose(0, 1, 3, 2)              # (B, H, N, N)
    attn = jax.nn.softmax(attn, axis=-1)
    out = attn @ v                                            # (B, H, N, hd)
    out = out.transpose(0, 2, 1, 3).reshape(B, N, C)
    return out @ params["wp"] + params["bp"]


def init_params(key, dim):
    keys = jax.random.split(key, 6)
    std = 0.02
    return {
        "wq": std * jax.random.normal(keys[0], (dim, dim), jnp.float32),
        "bq": std * jax.random.normal(keys[1], (1, dim), jnp.float32),
        "wkv": std * jax.random.normal(keys[2], (dim, 2 * dim), jnp.float32),
        "bkv": std * jax.random.normal(keys[3], (1, 2 * dim), jnp.float32),
        "wp": std * jax.random.normal(keys[4], (dim, dim), jnp.float32),
        "bp": std * jax.random.normal(keys[5], (1, dim), jnp.float32),
    }


if __name__ == "__main__":
    # Small shapes consistent with the module: B=2, H=W=8 -> N=64, dim=32,
    # num_heads=8 -> head_dim=4.  feat_size is unused when sr_ratio == 1.
    B, H, W, dim, num_heads = 2, 8, 8, 32, 8
    N = H * W

    key = jax.random.PRNGKey(0)
    kx, kp = jax.random.split(key)
    x = jax.random.normal(kx, (B, N, dim), jnp.float32)
    params = init_params(kp, dim)

    out = pvt_attention(x, params, num_heads=num_heads)
    out = jax.block_until_ready(out)

    ref = reference_attention(x, params, num_heads=num_heads)
    assert out.shape == (B, N, dim)
    # bf16 MXU operands => loosened tolerance vs the f32 reference.
    max_err = float(jnp.max(jnp.abs(out - ref)))
    assert jnp.allclose(out, ref, atol=2e-2, rtol=2e-2), (
        f"mismatch vs reference, max abs err {max_err}")

    print("KERNEL_OK")
</pallas_src>

<mosaic_0001>
module attributes {stable_mosaic.version = 11 : i64} {
  func.func @_attention_kernel(%arg0: i32, %arg1: memref<1x64x32xbf16, #tpu.memory_space<vmem>>, %arg2: memref<32x96xbf16, #tpu.memory_space<vmem>>, %arg3: memref<1x96xf32, #tpu.memory_space<vmem>>, %arg4: memref<32x32xbf16, #tpu.memory_space<vmem>>, %arg5: memref<1x32xf32, #tpu.memory_space<vmem>>, %arg6: memref<8x32xbf16, #tpu.memory_space<vmem>>, %arg7: memref<1x64x32xf32, #tpu.memory_space<vmem>>) attributes {dimension_semantics = [#tpu.dimension_semantics<parallel>], iteration_bounds = array<i64: 2>, scalar_prefetch = 0 : i64, scratch_operands = 0 : i64, tpu.core_type = #tpu.core_type<tc>, window_params = [{transform_indices = @transform_0, window_bounds = array<i64: 1, 64, 32>}, {pipeline_mode = #tpu.pipeline_mode<synchronous>, transform_indices = @transform_1, window_bounds = array<i64: 32, 96>}, {pipeline_mode = #tpu.pipeline_mode<synchronous>, transform_indices = @transform_2, window_bounds = array<i64: 1, 96>}, {pipeline_mode = #tpu.pipeline_mode<synchronous>, transform_indices = @transform_3, window_bounds = array<i64: 32, 32>}, {pipeline_mode = #tpu.pipeline_mode<synchronous>, transform_indices = @transform_4, window_bounds = array<i64: 1, 32>}, {pipeline_mode = #tpu.pipeline_mode<synchronous>, transform_indices = @transform_5, window_bounds = array<i64: 8, 32>}, {transform_indices = @transform_6, window_bounds = array<i64: 1, 64, 32>}]} {
    %c0 = arith.constant 0 : index
    %c0_0 = arith.constant 0 : index
    %c0_1 = arith.constant 0 : index
    %0 = vector.load %arg1[%c0, %c0_0, %c0_1] : memref<1x64x32xbf16, #tpu.memory_space<vmem>>, vector<1x64x32xbf16>
    %1 = vector.shape_cast %0 : vector<1x64x32xbf16> to vector<64x32xbf16>
    %c0_2 = arith.constant 0 : index
    %c0_3 = arith.constant 0 : index
    %2 = vector.load %arg2[%c0_2, %c0_3] : memref<32x96xbf16, #tpu.memory_space<vmem>>, vector<32x96xbf16>
    %cst = arith.constant dense<0.000000e+00> : vector<64x96xf32>
    %3 = tpu.matmul %1, %2, %cst {dimension_numbers = #tpu.dot_dimension_numbers<[1], [0], [0], [1], [0, 0, 1, 1], [], []>} : vector<64x32xbf16>, vector<32x96xbf16>, vector<64x96xf32> -> vector<64x96xf32>
    %c0_4 = arith.constant 0 : index
    %c0_5 = arith.constant 0 : index
    %4 = vector.load %arg3[%c0_4, %c0_5] : memref<1x96xf32, #tpu.memory_space<vmem>>, vector<1x96xf32>
    %5 = vector.broadcast %4 : vector<1x96xf32> to vector<64x96xf32>
    %6 = arith.addf %3, %5 : vector<64x96xf32>
    %7 = vector.extract_strided_slice %6 {offsets = [0, 0], sizes = [64, 32], strides = [1, 1]} : vector<64x96xf32> to vector<64x32xf32>
    %8 = vector.shape_cast %7 : vector<64x32xf32> to vector<1x64x32xf32>
    %9 = arith.truncf %8 : vector<1x64x32xf32> to vector<1x64x32xbf16>
    %10 = vector.extract_strided_slice %6 {offsets = [0, 32], sizes = [64, 32], strides = [1, 1]} : vector<64x96xf32> to vector<64x32xf32>
    %11 = vector.shape_cast %10 : vector<64x32xf32> to vector<1x64x32xf32>
    %12 = arith.truncf %11 : vector<1x64x32xf32> to vector<1x64x32xbf16>
    %13 = vector.extract_strided_slice %6 {offsets = [0, 64], sizes = [64, 32], strides = [1, 1]} : vector<64x96xf32> to vector<64x32xf32>
    %14 = vector.shape_cast %13 : vector<64x32xf32> to vector<1x64x32xf32>
    %15 = arith.truncf %14 : vector<1x64x32xf32> to vector<1x64x32xbf16>
    %c0_6 = arith.constant 0 : index
    %c0_7 = arith.constant 0 : index
    %16 = vector.load %arg6[%c0_6, %c0_7] : memref<8x32xbf16, #tpu.memory_space<vmem>>, vector<8x32xbf16>
    %17 = vector.shape_cast %16 : vector<8x32xbf16> to vector<1x8x1x32xbf16>
    %18 = vector.shape_cast %12 : vector<1x64x32xbf16> to vector<1x1x64x32xbf16>
    %19 = vector.broadcast %18 : vector<1x1x64x32xbf16> to vector<1x8x64x32xbf16>
    %20 = vector.broadcast %17 : vector<1x8x1x32xbf16> to vector<1x8x64x32xbf16>
    %21 = arith.mulf %19, %20 : vector<1x8x64x32xbf16>
    %22 = vector.shape_cast %21 : vector<1x8x64x32xbf16> to vector<1x512x32xbf16>
    %23 = vector.shape_cast %15 : vector<1x64x32xbf16> to vector<1x1x64x32xbf16>
    %24 = vector.broadcast %23 : vector<1x1x64x32xbf16> to vector<1x8x64x32xbf16>
    %25 = vector.broadcast %17 : vector<1x8x1x32xbf16> to vector<1x8x64x32xbf16>
    %26 = arith.mulf %24, %25 : vector<1x8x64x32xbf16>
    %27 = vector.shape_cast %26 : vector<1x8x64x32xbf16> to vector<1x512x32xbf16>
    "tpu.trace_start"() <{level = 10 : i32, message = "bqc,bkc->bqk"}> : () -> ()
    %cst_8 = arith.constant dense<0.000000e+00> : vector<1x64x512xf32>
    %28 = tpu.matmul %9, %22, %cst_8 {dimension_numbers = #tpu.dot_dimension_numbers<[2], [2], [1], [1], [0, 0, 0, 1, 1, 1], [0], [0]>} : vector<1x64x32xbf16>, vector<1x512x32xbf16>, vector<1x64x512xf32> -> vector<1x64x512xf32>
    "tpu.trace_stop"() : () -> ()
    %29 = vector.extract_strided_slice %28 {offsets = [0, 0, 0], sizes = [1, 64, 64], strides = [1, 1, 1]} : vector<1x64x512xf32> to vector<1x64x64xf32>
    %cst_9 = arith.constant dense<0xFF800000> : vector<1x64xf32>
    %30 = vector.multi_reduction <maximumf>, %29, %cst_9 [2] : vector<1x64x64xf32> to vector<1x64xf32>
    %31 = vector.shape_cast %30 : vector<1x64xf32> to vector<1x64x1xf32>
    %32 = vector.broadcast %31 : vector<1x64x1xf32> to vector<1x64x64xf32>
    %33 = arith.subf %29, %32 : vector<1x64x64xf32>
    %34 = math.exp %33 : vector<1x64x64xf32>
    %cst_10 = arith.constant dense<0.000000e+00> : vector<1x64xf32>
    %35 = vector.multi_reduction <add>, %34, %cst_10 [2] : vector<1x64x64xf32> to vector<1x64xf32>
    %36 = vector.shape_cast %35 : vector<1x64xf32> to vector<1x64x1xf32>
    %37 = tpu.reciprocal %36 : vector<1x64x1xf32> -> vector<1x64x1xf32>
    %38 = arith.truncf %34 : vector<1x64x64xf32> to vector<1x64x64xbf16>
    %39 = vector.extract_strided_slice %28 {offsets = [0, 0, 64], sizes = [1, 64, 64], strides = [1, 1, 1]} : vector<1x64x512xf32> to vector<1x64x64xf32>
    %cst_11 = arith.constant dense<0xFF800000> : vector<1x64xf32>
    %40 = vector.multi_reduction <maximumf>, %39, %cst_11 [2] : vector<1x64x64xf32> to vector<1x64xf32>
    %41 = vector.shape_cast %40 : vector<1x64xf32> to vector<1x64x1xf32>
    %42 = vector.broadcast %41 : vector<1x64x1xf32> to vector<1x64x64xf32>
    %43 = arith.subf %39, %42 : vector<1x64x64xf32>
    %44 = math.exp %43 : vector<1x64x64xf32>
    %cst_12 = arith.constant dense<0.000000e+00> : vector<1x64xf32>
    %45 = vector.multi_reduction <add>, %44, %cst_12 [2] : vector<1x64x64xf32> to vector<1x64xf32>
    %46 = vector.shape_cast %45 : vector<1x64xf32> to vector<1x64x1xf32>
    %47 = tpu.reciprocal %46 : vector<1x64x1xf32> -> vector<1x64x1xf32>
    %48 = arith.truncf %44 : vector<1x64x64xf32> to vector<1x64x64xbf16>
    %49 = vector.extract_strided_slice %28 {offsets = [0, 0, 128], sizes = [1, 64, 64], strides = [1, 1, 1]} : vector<1x64x512xf32> to vector<1x64x64xf32>
    %cst_13 = arith.constant dense<0xFF800000> : vector<1x64xf32>
    %50 = vector.multi_reduction <maximumf>, %49, %cst_13 [2] : vector<1x64x64xf32> to vector<1x64xf32>
    %51 = vector.shape_cast %50 : vector<1x64xf32> to vector<1x64x1xf32>
    %52 = vector.broadcast %51 : vector<1x64x1xf32> to vector<1x64x64xf32>
    %53 = arith.subf %49, %52 : vector<1x64x64xf32>
    %54 = math.exp %53 : vector<1x64x64xf32>
    %cst_14 = arith.constant dense<0.000000e+00> : vector<1x64xf32>
    %55 = vector.multi_reduction <add>, %54, %cst_14 [2] : vector<1x64x64xf32> to vector<1x64xf32>
    %56 = vector.shape_cast %55 : vector<1x64xf32> to vector<1x64x1xf32>
    %57 = tpu.reciprocal %56 : vector<1x64x1xf32> -> vector<1x64x1xf32>
    %58 = arith.truncf %54 : vector<1x64x64xf32> to vector<1x64x64xbf16>
    %59 = vector.extract_strided_slice %28 {offsets = [0, 0, 192], sizes = [1, 64, 64], strides = [1, 1, 1]} : vector<1x64x512xf32> to vector<1x64x64xf32>
    %cst_15 = arith.constant dense<0xFF800000> : vector<1x64xf32>
    %60 = vector.multi_reduction <maximumf>, %59, %cst_15 [2] : vector<1x64x64xf32> to vector<1x64xf32>
    %61 = vector.shape_cast %60 : vector<1x64xf32> to vector<1x64x1xf32>
    %62 = vector.broadcast %61 : vector<1x64x1xf32> to vector<1x64x64xf32>
    %63 = arith.subf %59, %62 : vector<1x64x64xf32>
    %64 = math.exp %63 : vector<1x64x64xf32>
    %cst_16 = arith.constant dense<0.000000e+00> : vector<1x64xf32>
    %65 = vector.multi_reduction <add>, %64, %cst_16 [2] : vector<1x64x64xf32> to vector<1x64xf32>
    %66 = vector.shape_cast %65 : vector<1x64xf32> to vector<1x64x1xf32>
    %67 = tpu.reciprocal %66 : vector<1x64x1xf32> -> vector<1x64x1xf32>
    %68 = arith.truncf %64 : vector<1x64x64xf32> to vector<1x64x64xbf16>
    %69 = vector.extract_strided_slice %28 {offsets = [0, 0, 256], sizes = [1, 64, 64], strides = [1, 1, 1]} : vector<1x64x512xf32> to vector<1x64x64xf32>
    %cst_17 = arith.constant dense<0xFF800000> : vector<1x64xf32>
    %70 = vector.multi_reduction <maximumf>, %69, %cst_17 [2] : vector<1x64x64xf32> to vector<1x64xf32>
    %71 = vector.shape_cast %70 : vector<1x64xf32> to vector<1x64x1xf32>
    %72 = vector.broadcast %71 : vector<1x64x1xf32> to vector<1x64x64xf32>
    %73 = arith.subf %69, %72 : vector<1x64x64xf32>
    %74 = math.exp %73 : vector<1x64x64xf32>
    %cst_18 = arith.constant dense<0.000000e+00> : vector<1x64xf32>
    %75 = vector.multi_reduction <add>, %74, %cst_18 [2] : vector<1x64x64xf32> to vector<1x64xf32>
    %76 = vector.shape_cast %75 : vector<1x64xf32> to vector<1x64x1xf32>
    %77 = tpu.reciprocal %76 : vector<1x64x1xf32> -> vector<1x64x1xf32>
    %78 = arith.truncf %74 : vector<1x64x64xf32> to vector<1x64x64xbf16>
    %79 = vector.extract_strided_slice %28 {offsets = [0, 0, 320], sizes = [1, 64, 64], strides = [1, 1, 1]} : vector<1x64x512xf32> to vector<1x64x64xf32>
    %cst_19 = arith.constant dense<0xFF800000> : vector<1x64xf32>
    %80 = vector.multi_reduction <maximumf>, %79, %cst_19 [2] : vector<1x64x64xf32> to vector<1x64xf32>
    %81 = vector.shape_cast %80 : vector<1x64xf32> to vector<1x64x1xf32>
    %82 = vector.broadcast %81 : vector<1x64x1xf32> to vector<1x64x64xf32>
    %83 = arith.subf %79, %82 : vector<1x64x64xf32>
    %84 = math.exp %83 : vector<1x64x64xf32>
    %cst_20 = arith.constant dense<0.000000e+00> : vector<1x64xf32>
    %85 = vector.multi_reduction <add>, %84, %cst_20 [2] : vector<1x64x64xf32> to vector<1x64xf32>
    %86 = vector.shape_cast %85 : vector<1x64xf32> to vector<1x64x1xf32>
    %87 = tpu.reciprocal %86 : vector<1x64x1xf32> -> vector<1x64x1xf32>
    %88 = arith.truncf %84 : vector<1x64x64xf32> to vector<1x64x64xbf16>
    %89 = vector.extract_strided_slice %28 {offsets = [0, 0, 384], sizes = [1, 64, 64], strides = [1, 1, 1]} : vector<1x64x512xf32> to vector<1x64x64xf32>
    %cst_21 = arith.constant dense<0xFF800000> : vector<1x64xf32>
    %90 = vector.multi_reduction <maximumf>, %89, %cst_21 [2] : vector<1x64x64xf32> to vector<1x64xf32>
    %91 = vector.shape_cast %90 : vector<1x64xf32> to vector<1x64x1xf32>
    %92 = vector.broadcast %91 : vector<1x64x1xf32> to vector<1x64x64xf32>
    %93 = arith.subf %89, %92 : vector<1x64x64xf32>
    %94 = math.exp %93 : vector<1x64x64xf32>
    %cst_22 = arith.constant dense<0.000000e+00> : vector<1x64xf32>
    %95 = vector.multi_reduction <add>, %94, %cst_22 [2] : vector<1x64x64xf32> to vector<1x64xf32>
    %96 = vector.shape_cast %95 : vector<1x64xf32> to vector<1x64x1xf32>
    %97 = tpu.reciprocal %96 : vector<1x64x1xf32> -> vector<1x64x1xf32>
    %98 = arith.truncf %94 : vector<1x64x64xf32> to vector<1x64x64xbf16>
    %99 = vector.extract_strided_slice %28 {offsets = [0, 0, 448], sizes = [1, 64, 64], strides = [1, 1, 1]} : vector<1x64x512xf32> to vector<1x64x64xf32>
    %cst_23 = arith.constant dense<0xFF800000> : vector<1x64xf32>
    %100 = vector.multi_reduction <maximumf>, %99, %cst_23 [2] : vector<1x64x64xf32> to vector<1x64xf32>
    %101 = vector.shape_cast %100 : vector<1x64xf32> to vector<1x64x1xf32>
    %102 = vector.broadcast %101 : vector<1x64x1xf32> to vector<1x64x64xf32>
    %103 = arith.subf %99, %102 : vector<1x64x64xf32>
    %104 = math.exp %103 : vector<1x64x64xf32>
    %cst_24 = arith.constant dense<0.000000e+00> : vector<1x64xf32>
    %105 = vector.multi_reduction <add>, %104, %cst_24 [2] : vector<1x64x64xf32> to vector<1x64xf32>
    %106 = vector.shape_cast %105 : vector<1x64xf32> to vector<1x64x1xf32>
    %107 = tpu.reciprocal %106 : vector<1x64x1xf32> -> vector<1x64x1xf32>
    %108 = arith.truncf %104 : vector<1x64x64xf32> to vector<1x64x64xbf16>
    %109 = tpu.concatenate %38, %48, %58, %68, %78, %88, %98, %108 in 2 : vector<1x64x64xbf16>, vector<1x64x64xbf16>, vector<1x64x64xbf16>, vector<1x64x64xbf16>, vector<1x64x64xbf16>, vector<1x64x64xbf16>, vector<1x64x64xbf16>, vector<1x64x64xbf16> -> vector<1x64x512xbf16>
    "tpu.trace_start"() <{level = 10 : i32, message = "bqk,bkc->bqc"}> : () -> ()
    %cst_25 = arith.constant dense<0.000000e+00> : vector<1x64x32xf32>
    %110 = tpu.matmul %109, %27, %cst_25 {dimension_numbers = #tpu.dot_dimension_numbers<[2], [1], [1], [2], [0, 0, 0, 1, 1, 2], [0], [0]>} : vector<1x64x512xbf16>, vector<1x512x32xbf16>, vector<1x64x32xf32> -> vector<1x64x32xf32>
    "tpu.trace_stop"() : () -> ()
    %111 = vector.shape_cast %37 : vector<1x64x1xf32> to vector<1x64x1xf32>
    %112 = vector.broadcast %111 : vector<1x64x1xf32> to vector<1x64x4xf32>
    %113 = vector.shape_cast %47 : vector<1x64x1xf32> to vector<1x64x1xf32>
    %114 = vector.broadcast %113 : vector<1x64x1xf32> to vector<1x64x4xf32>
    %115 = vector.shape_cast %57 : vector<1x64x1xf32> to vector<1x64x1xf32>
    %116 = vector.broadcast %115 : vector<1x64x1xf32> to vector<1x64x4xf32>
    %117 = vector.shape_cast %67 : vector<1x64x1xf32> to vector<1x64x1xf32>
    %118 = vector.broadcast %117 : vector<1x64x1xf32> to vector<1x64x4xf32>
    %119 = vector.shape_cast %77 : vector<1x64x1xf32> to vector<1x64x1xf32>
    %120 = vector.broadcast %119 : vector<1x64x1xf32> to vector<1x64x4xf32>
    %121 = vector.shape_cast %87 : vector<1x64x1xf32> to vector<1x64x1xf32>
    %122 = vector.broadcast %121 : vector<1x64x1xf32> to vector<1x64x4xf32>
    %123 = vector.shape_cast %97 : vector<1x64x1xf32> to vector<1x64x1xf32>
    %124 = vector.broadcast %123 : vector<1x64x1xf32> to vector<1x64x4xf32>
    %125 = vector.shape_cast %107 : vector<1x64x1xf32> to vector<1x64x1xf32>
    %126 = vector.broadcast %125 : vector<1x64x1xf32> to vector<1x64x4xf32>
    %127 = tpu.concatenate %112, %114, %116, %118, %120, %122, %124, %126 in 2 : vector<1x64x4xf32>, vector<1x64x4xf32>, vector<1x64x4xf32>, vector<1x64x4xf32>, vector<1x64x4xf32>, vector<1x64x4xf32>, vector<1x64x4xf32>, vector<1x64x4xf32> -> vector<1x64x32xf32>
    %128 = arith.mulf %110, %127 : vector<1x64x32xf32>
    %129 = vector.shape_cast %128 : vector<1x64x32xf32> to vector<64x32xf32>
    %130 = arith.truncf %129 : vector<64x32xf32> to vector<64x32xbf16>
    %c0_26 = arith.constant 0 : index
    %c0_27 = arith.constant 0 : index
    %131 = vector.load %arg4[%c0_26, %c0_27] : memref<32x32xbf16, #tpu.memory_space<vmem>>, vector<32x32xbf16>
    %cst_28 = arith.constant dense<0.000000e+00> : vector<64x32xf32>
    %132 = tpu.matmul %130, %131, %cst_28 {dimension_numbers = #tpu.dot_dimension_numbers<[1], [0], [0], [1], [0, 0, 1, 1], [], []>} : vector<64x32xbf16>, vector<32x32xbf16>, vector<64x32xf32> -> vector<64x32xf32>
    %c0_29 = arith.constant 0 : index
    %c0_30 = arith.constant 0 : index
    %133 = vector.load %arg5[%c0_29, %c0_30] : memref<1x32xf32, #tpu.memory_space<vmem>>, vector<1x32xf32>
    %134 = vector.broadcast %133 : vector<1x32xf32> to vector<64x32xf32>
    %135 = arith.addf %132, %134 : vector<64x32xf32>
    %136 = vector.shape_cast %135 : vector<64x32xf32> to vector<1x64x32xf32>
    %c0_31 = arith.constant 0 : index
    %c0_32 = arith.constant 0 : index
    %c0_33 = arith.constant 0 : index
    %137 = vector.load %arg7[%c0_31, %c0_32, %c0_33] : memref<1x64x32xf32, #tpu.memory_space<vmem>>, vector<1x64x32xf32>
    tpu.vector_store %arg7[%c0_31, %c0_32, %c0_33], %136 {strides = array<i32>} : memref<1x64x32xf32, #tpu.memory_space<vmem>>, vector<1x64x32xf32>,
    return
  }
  func.func @transform_0(%arg0: i32) -> (i32, i32, i32) {
    %c0_i32 = arith.constant 0 : i32
    %c0_i32_0 = arith.constant 0 : i32
    %c0_i32_1 = arith.constant 0 : i32
    return %arg0, %c0_i32, %c0_i32_0 : i32, i32, i32
  }
  func.func @transform_1(%arg0: i32) -> (i32, i32) {
    %c0_i32 = arith.constant 0 : i32
    %c0_i32_0 = arith.constant 0 : i32
    %c0_i32_1 = arith.constant 0 : i32
    return %c0_i32, %c0_i32_0 : i32, i32
  }
  func.func @transform_2(%arg0: i32) -> (i32, i32) {
    %c0_i32 = arith.constant 0 : i32
    %c0_i32_0 = arith.constant 0 : i32
    %c0_i32_1 = arith.constant 0 : i32
    return %c0_i32, %c0_i32_0 : i32, i32
  }
  func.func @transform_3(%arg0: i32) -> (i32, i32) {
    %c0_i32 = arith.constant 0 : i32
    %c0_i32_0 = arith.constant 0 : i32
    %c0_i32_1 = arith.constant 0 : i32
    return %c0_i32, %c0_i32_0 : i32, i32
  }
  func.func @transform_4(%arg0: i32) -> (i32, i32) {
    %c0_i32 = arith.constant 0 : i32
    %c0_i32_0 = arith.constant 0 : i32
    %c0_i32_1 = arith.constant 0 : i32
    return %c0_i32, %c0_i32_0 : i32, i32
  }
  func.func @transform_5(%arg0: i32) -> (i32, i32) {
    %c0_i32 = arith.constant 0 : i32
    %c0_i32_0 = arith.constant 0 : i32
    %c0_i32_1 = arith.constant 0 : i32
    return %c0_i32, %c0_i32_0 : i32, i32
  }
  func.func @transform_6(%arg0: i32) -> (i32, i32, i32) {
    %c0_i32 = arith.constant 0 : i32
    %c0_i32_0 = arith.constant 0 : i32
    %c0_i32_1 = arith.constant 0 : i32
    return %arg0, %c0_i32, %c0_i32_0 : i32, i32, i32
  }
}

</mosaic_0001>

<bundles_post_ra>
// kernel: tpu_custom_call.1
= control target key start
LH: loop header
LB: loop body
LE: loop exit
PB: predicated region body
PF: predicated region fallthrough
CT: control target
= control target key end

     0   :  { %s4128_s21 = smov 0   ;;  %s7308_s0 = inlined_call_operand.vmem [shape: bf16[2,64,32], index: 0, kind: input, shape index: {}]   ;;  %s7309_s1 = inlined_call_operand.vmem [shape: bf16[32,96], index: 1, kind: input, shape index: {}]   ;;  %s7310_s2 = inlined_call_operand.vmem [shape: f32[1,96], index: 2, kind: input, shape index: {}]   ;;  %s7311_s3 = inlined_call_operand.vmem [shape: bf16[32,32], index: 3, kind: input, shape index: {}]   ;;  %s7312_s4 = inlined_call_operand.vmem [shape: f32[1,32], index: 4, kind: input, shape index: {}]   ;;  %s7313_s5 = inlined_call_operand.vmem [shape: bf16[8,32], index: 5, kind: input, shape index: {}]   ;;  %s7314_s6 = inlined_call_operand.vmem [shape: f32[2,64,32], index: 6, kind: output, shape index: {}]  }
   0x1 LB: > { %s3684_s22 = sadd.s32 4294967295, %s4088_s21   ;;  %p3688_p0 = scmp.ge.s32.totalorder %s4088_s21, 1  ;;  %s4088_s21 = sphi %s4128_s21, %s16_s21  }
   0x2   : > { %p212_p1 = scmp.lt.s32.totalorder %s4088_s21, 3 }
   0x4   : > { %p213_p2 = pnand %p3688_p0, %p212_p1 }
   0x6   : > { %216 = sbr.rel (%p213_p2) target bundleno = 1665 (0x681), region = 44 }
   0xb   : > { %v3762_v0 = vld [vmem:[%s7309_s1 + $0x8] sm:$0xff]  ;;  %p242_p3 = scmp.lt.s32.totalorder %s3684_s22, 1  ;;  %v351_v1 = vld [vmem:[%s7313_s5] sm:$0xf]  ;;  %vm354_vm0 = vcmask 1040384   ;;  %vm363_vm1 = vcmask 1042434  }
   0xc   : > { %v3761_v2 = vld [vmem:[%s7309_s1] sm:$0xff]  ;;  %v353_v3 = vrot.slane %v351_v1, 3  ;;  %vm359_vm2 = vcmask 1041409   ;;  %320 = vmatpush.bf16.msra.mxu0 %v3762_v0  ;;  %vm367_vm3 = vcmask 1043459   ;;  %vm7331_vm4 = vcmask 261120   ;;  %s4090_s9 = smov 32  }
   0xd   : > { %s7570_s22 = smov (!%p242_p3, %s3684_s22), 1  ;;  %s4091_s10 = smov 64   ;;  %v4168_v63 = vld [vmem:[%s7310_s2] ss:$0 sm:$0xff]  ;;  %vm1223_vm5 = vcmask 523264   ;;  %vm1416_vm6 = vcmask 1048064  }
   0xe   : > { %v357_v4 = vsel %vm354_vm0, %v351_v1, %v353_v3  ;;  %v364_v5 = vsel %vm363_vm1, %v351_v1, %v353_v3  ;;  %v360_v6 = vsel %vm359_vm2, %v351_v1, %v353_v3  ;;  %v368_v7 = vsel %vm367_vm3, %v351_v1, %v353_v3  ;;  %s3755_s29 = sshll.u32 %s7570_s22, 5  ;;  %s4092_s13 = smov 96  }
   0xf   : > { %v372_v8 = vunpack.i.h.s16 %v357_v4  ;;  %v3721_v9 = vpack.i.b16 %v357_v4, %v357_v4  ;;  %v366_v10 = vrot.slane %v364_v5, 2  ;;  %v362_v11 = vrot.slane %v360_v6, 1  ;;  %s4151_s8 = scalar_lea.vmem %s7308_s0, %s3755_s29  ;;  %s3756_s18 = sshll.u32 %s7570_s22, 6 }
  0x10   : > { %v370_v12 = vrot.slane %v368_v7, 3  ;;  %321 = vmatpush.bf16.msra.mxu0 %v3761_v2  ;;  %v3757_v13 = vld [vmem:[%s4151_s8] sm:$0xff]  ;;  %v3758_v58 = vld [vmem:[%s4151_s8 + $0x8] sm:$0xff]  ;;  %v3759_v61 = vld [vmem:[%s4151_s8 + $0x10] sm:$0xff]  ;;  %vm3485_vm15 = vcmask 31744   ;;  %s7142_s24 = scalar_lea.vmem %s7314_s6, %s3756_s18 }
  0x11   : > { %v380_v14 = vpack.i.b16 %v372_v8, %v372_v8  ;;  %v387_v15 = vperm.slane %v3721_v9, 0  ;;  %v376_v16 = vunpack.i.h.s16 %v366_v10  ;;  %v3723_v17 = vpack.i.b16 %v366_v10, %v366_v10  ;;  %v3760_v62 = vld [vmem:[%s4151_s8 + $0x18] sm:$0xff] }
  0x12   : > { %v374_v18 = vunpack.i.h.s16 %v362_v11  ;;  %v3722_v19 = vpack.i.b16 %v362_v11, %v362_v11  ;;  %v378_v20 = vunpack.i.h.s16 %v370_v12  ;;  %v3724_v21 = vpack.i.b16 %v370_v12, %v370_v12 }
  0x13   : > { %v388_v22 = vperm.slane %v380_v14, 0  ;;  %v396_v23 = vpack.i.b16 %v387_v15, %v387_v15  ;;  %v384_v24 = vpack.i.b16 %v376_v16, %v376_v16  ;;  %v391_v25 = vperm.slane %v3723_v17, 0  ;;  %3717 = vmatmul.msk.bf16.vlgmr.msra.gmra.mxu0 %vm7331_vm4, %v3757_v13 }
  0x14   : > { %v382_v26 = vpack.i.b16 %v374_v18, %v374_v18  ;;  %v389_v27 = vperm.slane %v3722_v19, 0  ;;  %v386_v28 = vpack.i.b16 %v378_v20, %v378_v20  ;;  %v393_v29 = vperm.slane %v3724_v21, 0 }
  0x15   : > { %v398_v30 = vperm.slane %v396_v23, 0  ;;  %v400_v31 = vpack.i.b16 %v388_v22, %v388_v22  ;;  %v392_v32 = vperm.slane %v384_v24, 0  ;;  %v412_v33 = vpack.i.b16 %v391_v25, %v391_v25 }
  0x16   : > { %v390_v34 = vperm.slane %v382_v26, 0  ;;  %v404_v35 = vpack.i.b16 %v389_v27, %v389_v27  ;;  %v394_v36 = vperm.slane %v386_v28, 0  ;;  %v420_v37 = vpack.i.b16 %v393_v29, %v393_v29 }
  0x17   : > { %v402_v38 = vperm.slane %v400_v31, 0  ;;  %v435_v39 = vunpack.c.l.bf16 %v398_v30  ;;  %v414_v40 = vperm.slane %v412_v33, 0  ;;  %v416_v41 = vpack.i.b16 %v392_v32, %v392_v32 }
  0x18   : > { %v408_v42 = vpack.i.b16 %v390_v34, %v390_v34  ;;  %v424_v43 = vpack.i.b16 %v394_v36, %v394_v36  ;;  %v406_v47 = vperm.slane %v404_v35, 0  ;;  %v422_v49 = vperm.slane %v420_v37, 0 }
  0x19   : > { %v436_v44 = vunpack.c.l.bf16 %v402_v38  ;;  %v418_v45 = vperm.slane %v416_v41, 0  ;;  %v439_v46 = vunpack.c.l.bf16 %v414_v40 }
  0x1a   : > { %v410_v48 = vperm.slane %v408_v42, 0  ;;  %v426_v52 = vperm.slane %v424_v43, 0  ;;  %v437_v54 = vunpack.c.l.bf16 %v406_v47  ;;  %v441_v56 = vunpack.c.l.bf16 %v422_v49 }
  0x1b   : > { %v3784_v50 = vpack.i.bf16 %v436_v44, %v435_v39  ;;  %v440_v51 = vunpack.c.l.bf16 %v418_v45 }
  0x1c   : > { %v438_v55 = vunpack.c.l.bf16 %v410_v48  ;;  %v442_v57 = vunpack.c.l.bf16 %v426_v52 }
  0x1d   : > { %3785 = vrot.lane.b32.xlu0 %v3784_v50, %s4090_s9  ;;  %v3799_v53 = vpack.i.bf16 %v440_v51, %v439_v46  ;;  %3790 = vrot.lane.b32.xlu2 %v3784_v50, %s4091_s10 }
  0x1e   : > { %v3794_v59 = vpack.i.bf16 %v438_v55, %v437_v54  ;;  %v3804_v60 = vpack.i.bf16 %v442_v57, %v441_v56 }
  0x1f   : > { %3800 = vrot.lane.b32.xlu1 %v3799_v53, %s4090_s9 }
  0x23   : > { %3718 = vmatmul.msk.bf16.gmra.mxu0 %vm7331_vm4, %v3758_v58 }
  0x25   : > { %3795 = vrot.lane.b32.xlu0 %v3794_v59, %s4090_s9  ;;  %3810 = vrot.lane.b32.xlu2 %v3794_v59, %s4091_s10 }
  0x27   : > { %3805 = vrot.lane.b32.xlu1 %v3804_v60, %s4090_s9 }
  0x2d   : > { %3815 = vrot.lane.b32.xlu0 %v3799_v53, %s4091_s10 }
  0x2f   : > { %3820 = vrot.lane.b32.xlu1 %v3804_v60, %s4091_s10 }
  0x33   : > { %3719 = vmatmul.msk.bf16.gmra.mxu0 %vm7331_vm4, %v3759_v61 }
  0x43   : > { %3720 = vmatmul.msk.bf16.gmra.mxu0 %vm7331_vm4, %v3760_v62 }
  0x77   : > { %v4171_v3 = vpop.permute.xlu2 %3790 }
  0x7f   : > { %v4192_v20 = vpop.permute.xlu2 %3810 }
  0x80   : > { %v4203_v28 = vunpack.i.h.bf16 %v4192_v20 }
  0x8f   : > { %v3786_v0 = vpop.permute.xlu0 %3785 }
  0x90   : > { %v323_v1 = vpop.f32.mrf.mxu0  ;;  %v4173_v6 = vunpack.i.h.bf16 %v3786_v0  ;;  %v4179_v9 = vunpack.i.l.bf16 %v3786_v0 }
  0x91   : > { %v324_v2 = vadd.f32 %v4168_v63, %v323_v1  ;;  %v3801_v12 = vpop.permute.xlu1 %3800 }
  0x92   : > { %v4186_v16 = vunpack.i.h.bf16 %v3801_v12  ;;  %v4190_v18 = vunpack.i.l.bf16 %v3801_v12 }
  0x93   : > { %v343_v4 = vpack.c.bf16 %v324_v2, %v324_v2 }
  0x95   : > { %v4175_v7 = vunpack.c.l.bf16 %v343_v4  ;;  %v763_v19 = vunpack.c.l.b16 %v343_v4 }
  0x97   : > { %v3796_v5 = vpop.permute.xlu0 %3795  ;;  %v483_v15 = vmul.f32 %v4173_v6, %v4175_v7  ;;  %v475_v17 = vmul.f32 %v4179_v9, %v4175_v7  ;;  %v515_v34 = vmul.f32 %v4186_v16, %v4175_v7  ;;  %v507_v36 = vmul.f32 %v4190_v18, %v4175_v7 }
  0x98   : > { %v4177_v8 = vunpack.i.l.bf16 %v3796_v5  ;;  %v325_v10 = vpop.f32.mrf.mxu0  ;;  %v4196_v23 = vunpack.i.h.bf16 %v3796_v5  ;;  %v651_v0 = vmul.f32 %v4203_v28, %v4175_v7 }
  0x99   : > { %v326_v11 = vadd.f32 %v4168_v63, %v325_v10  ;;  %v547_v27 = vpack.c.bf16 %v483_v15, %v483_v15  ;;  %v539_v32 = vpack.c.bf16 %v475_v17, %v475_v17  ;;  %v3806_v45 = vpop.permute.xlu1 %3805  ;;  %v579_v51 = vpack.c.bf16 %v515_v34, %v515_v34 }
  0x9a   : > { %v491_v14 = vmul.f32 %v4177_v8, %v4175_v7  ;;  %v499_v40 = vmul.f32 %v4196_v23, %v4175_v7  ;;  %v4222_v57 = vunpack.i.h.bf16 %v3806_v45  ;;  %v571_v58 = vpack.c.bf16 %v507_v36, %v507_v36 }
  0x9b   : > { %v344_v13 = vpack.c.bf16 %v326_v11, %v326_v11  ;;  %v847_v43 = vunpack.c.l.b16 %v547_v27  ;;  %v839_v48 = vunpack.c.l.b16 %v539_v32  ;;  %v4225_v59 = vunpack.i.l.bf16 %v3806_v45 }
  0x9c   : > { %v555_v26 = vpack.c.bf16 %v491_v14, %v491_v14  ;;  %v563_v62 = vpack.c.bf16 %v499_v40, %v499_v40  ;;  %v879_v4 = vunpack.c.l.b16 %v579_v51  ;;  %v4255_v40 = vunpack.i.h.bf16 %v4171_v3 }
  0x9d   : > { %v4194_v21 = vunpack.c.l.bf16 %v344_v13  ;;  %v764_v22 = vunpack.c.l.b16 %v344_v13 }
  0x9e   : > { %v855_v41 = vunpack.c.l.b16 %v555_v26  ;;  %v863_v27 = vunpack.c.l.b16 %v563_v62 }
  0x9f   : > { %v4198_v24 = vpack.c.b16 %v764_v22, %v763_v19  ;;  %v492_v25 = vmul.f32 %v4177_v8, %v4194_v21  ;;  %v484_v30 = vmul.f32 %v4173_v6, %v4194_v21  ;;  %v476_v31 = vmul.f32 %v4179_v9, %v4194_v21  ;;  %v4231_v1 = vpop.permute.xlu0 %3815 }
  0xa0   : > { %v328_v29 = vpop.f32.mrf.mxu0  ;;  %v516_v35 = vmul.f32 %v4186_v16, %v4194_v21  ;;  %v508_v39 = vmul.f32 %v4190_v18, %v4194_v21  ;;  %v500_v44 = vmul.f32 %v4196_v23, %v4194_v21  ;;  %v652_v10 = vmul.f32 %v4203_v28, %v4194_v21 }
  0xa1   : > { %v556_v33 = vpack.c.bf16 %v492_v25, %v492_v25  ;;  %v548_v37 = vpack.c.bf16 %v484_v30, %v484_v30  ;;  %v540_v38 = vpack.c.bf16 %v476_v31, %v476_v31  ;;  %v329_v46 = vadd.f32 %v4168_v63, %v328_v29 }
  0xa2   : > { %v580_v52 = vpack.c.bf16 %v516_v35, %v516_v35  ;;  %v572_v55 = vpack.c.bf16 %v508_v39, %v508_v39  ;;  %v564_v56 = vpack.c.bf16 %v500_v44, %v500_v44  ;;  %v532_v13 = vmul.f32 %v4222_v57, %v4194_v21 }
  0xa3   : > { %v856_v42 = vunpack.c.l.b16 %v556_v33  ;;  %v848_v47 = vunpack.c.l.b16 %v548_v37  ;;  %v840_v49 = vunpack.c.l.b16 %v540_v38  ;;  %v345_v60 = vpack.c.bf16 %v329_v46, %v329_v46 }
  0xa4   : > { %v880_v5 = vunpack.c.l.b16 %v580_v52  ;;  %v872_v11 = vunpack.c.l.b16 %v572_v55  ;;  %v864_v12 = vunpack.c.l.b16 %v564_v56  ;;  %v524_v14 = vmul.f32 %v4225_v59, %v4194_v21 }
  0xa5   : > { %v911_v50 = vpack.c.b16 %v856_v42, %v855_v41  ;;  %v907_v53 = vpack.c.b16 %v848_v47, %v847_v43  ;;  %v903_v54 = vpack.c.b16 %v840_v49, %v839_v48  ;;  %v765_v15 = vunpack.c.l.b16 %v345_v60 }
  0xa6   : > { %v871_v19 = vunpack.c.l.b16 %v571_v58  ;;  %v531_v22 = vmul.f32 %v4222_v57, %v4175_v7  ;;  %v4243_v25 = vunpack.i.h.bf16 %v4231_v1  ;;  %v4245_v26 = vunpack.c.l.bf16 %v345_v60 }
  0xa7   : > { %951 = vrot.lane.b32.xlu1 %v911_v50, %s4092_s13  ;;  %943 = vrot.lane.b32.xlu0 %v907_v53, %s4092_s13  ;;  %v523_v29 = vmul.f32 %v4225_v59, %v4175_v7  ;;  %v923_v32 = vpack.c.b16 %v880_v5, %v879_v4  ;;  %v716_v33 = vpack.c.bf16 %v652_v10, %v652_v10  ;;  %v4273_v10 = vunpack.i.l.bf16 %v4171_v3 }
  0xa8   : > { %935 = vrot.lane.b32.xlu2 %v903_v54, %s4092_s13  ;;  %v330_v61 = vpop.f32.mrf.mxu0  ;;  %v919_v34 = vpack.c.b16 %v872_v11, %v871_v19  ;;  %v915_v35 = vpack.c.b16 %v864_v12, %v863_v27  ;;  %v596_v36 = vpack.c.bf16 %v532_v13, %v532_v13  ;;  %v588_v37 = vpack.c.bf16 %v524_v14, %v524_v14 }
  0xa9   : > { %v331_v2 = vadd.f32 %v4168_v63, %v330_v61  ;;  %v715_v39 = vpack.c.bf16 %v651_v0, %v651_v0  ;;  %v595_v42 = vpack.c.bf16 %v531_v22, %v531_v22  ;;  %v587_v43 = vpack.c.bf16 %v523_v29, %v523_v29 }
  0xaa   : > { %v485_v44 = vmul.f32 %v4173_v6, %v4245_v26  ;;  %v3202_v45 = vunpack.c.l.b16 %v716_v33  ;;  %v667_v47 = vmul.f32 %v4243_v25, %v4175_v7  ;;  %v896_v48 = vunpack.c.l.b16 %v596_v36 }
  0xab   : > { %v346_v17 = vpack.c.bf16 %v331_v2, %v331_v2  ;;  %v888_v49 = vunpack.c.l.b16 %v588_v37  ;;  %v668_v50 = vmul.f32 %v4243_v25, %v4194_v21  ;;  %v636_v51 = vmul.f32 %v4255_v40, %v4194_v21 }
  0xac   : > { %v3201_v52 = vunpack.c.l.b16 %v715_v39  ;;  %v895_v53 = vunpack.c.l.b16 %v595_v42  ;;  %v887_v54 = vunpack.c.l.b16 %v587_v43  ;;  %v549_v55 = vpack.c.bf16 %v485_v44, %v485_v44 }
  0xad   : > { %v4249_v30 = vunpack.c.l.bf16 %v346_v17  ;;  %v766_v31 = vunpack.c.l.b16 %v346_v17  ;;  %v635_v56 = vmul.f32 %v4255_v40, %v4175_v7  ;;  %v731_v62 = vpack.c.bf16 %v667_v47, %v667_v47 }
  0xae   : > { %v3253_v60 = vpack.c.b16 %v3202_v45, %v3201_v52  ;;  %v931_v0 = vpack.c.b16 %v896_v48, %v895_v53  ;;  %v927_v2 = vpack.c.b16 %v888_v49, %v887_v54  ;;  %v732_v4 = vpack.c.bf16 %v668_v50, %v668_v50 }
  0xaf   : > { %v4251_v38 = vpack.c.b16 %v766_v31, %v765_v15  ;;  %975 = vrot.lane.b32.xlu1 %v923_v32, %s4092_s13  ;;  %967 = vrot.lane.b32.xlu0 %v919_v34, %s4092_s13  ;;  %v486_v46 = vmul.f32 %v4173_v6, %v4249_v30  ;;  %v700_v5 = vpack.c.bf16 %v636_v51, %v636_v51  ;;  %v849_v12 = vunpack.c.l.b16 %v549_v55 }
  0xb0   : > { %959 = vrot.lane.b32.xlu2 %v915_v35, %s4092_s13  ;;  %v333_v41 = vpop.f32.mrf.mxu0  ;;  %v699_v13 = vpack.c.bf16 %v635_v56, %v635_v56  ;;  %v509_v14 = vmul.f32 %v4190_v18, %v4245_v26  ;;  %v510_v15 = vmul.f32 %v4190_v18, %v4249_v30  ;;  %v3217_v22 = vunpack.c.l.b16 %v731_v62 }
  0xb1   : > { %v334_v58 = vadd.f32 %v4168_v63, %v333_v41  ;;  %v550_v61 = vpack.c.bf16 %v486_v46, %v486_v46  ;;  %v3218_v27 = vunpack.c.l.b16 %v732_v4  ;;  %v3186_v29 = vunpack.c.l.b16 %v700_v5 }
  0xb2   : > { %v478_v31 = vmul.f32 %v4179_v9, %v4249_v30  ;;  %v628_v32 = vmul.f32 %v4273_v10, %v4194_v21  ;;  %v477_v35 = vmul.f32 %v4179_v9, %v4245_v26  ;;  %v627_v36 = vmul.f32 %v4273_v10, %v4175_v7 }
  0xb3   : > { %v347_v17 = vpack.c.bf16 %v334_v58, %v334_v58  ;;  %v850_v3 = vunpack.c.l.b16 %v550_v61  ;;  %v3185_v37 = vunpack.c.l.b16 %v699_v13  ;;  %v574_v42 = vpack.c.bf16 %v510_v15, %v510_v15 }
  0xb4   : > { %v3261_v43 = vpack.c.b16 %v3218_v27, %v3217_v22  ;;  %v542_v45 = vpack.c.bf16 %v478_v31, %v478_v31  ;;  %v692_v46 = vpack.c.bf16 %v628_v32, %v628_v32  ;;  %v573_v48 = vpack.c.bf16 %v509_v14, %v509_v14 }
  0xb5   : > { %v767_v33 = vunpack.c.l.b16 %v347_v17  ;;  %v908_v41 = vpack.c.b16 %v850_v3, %v849_v12  ;;  %v3245_v44 = vpack.c.b16 %v3186_v29, %v3185_v37  ;;  %v541_v49 = vpack.c.bf16 %v477_v35, %v477_v35 }
  0xb6   : > { %v691_v50 = vpack.c.bf16 %v627_v36, %v627_v36  ;;  %v533_v52 = vmul.f32 %v4222_v57, %v4245_v26  ;;  %v534_v53 = vmul.f32 %v4222_v57, %v4249_v30  ;;  %v501_v54 = vmul.f32 %v4196_v23, %v4245_v26 }
  0xb7   : > { %3297 = vrot.lane.b32.xlu1 %v3253_v60, %s4091_s10  ;;  %991 = vrot.lane.b32.xlu0 %v931_v0, %s4092_s13  ;;  %v874_v55 = vunpack.c.l.b16 %v574_v42  ;;  %v502_v56 = vmul.f32 %v4196_v23, %v4249_v30  ;;  %v842_v58 = vunpack.c.l.b16 %v542_v45  ;;  %v3178_v60 = vunpack.c.l.b16 %v692_v46 }
  0xb8   : > { %983 = vrot.lane.b32.xlu2 %v927_v2, %s4092_s13  ;;  %v335_v11 = vpop.f32.mrf.mxu0  ;;  %v493_v61 = vmul.f32 %v4177_v8, %v4245_v26  ;;  %v494_v62 = vmul.f32 %v4177_v8, %v4249_v30  ;;  %v873_v0 = vunpack.c.l.b16 %v573_v48  ;;  %v841_v2 = vunpack.c.l.b16 %v541_v49 }
  0xb9   : > { %v336_v19 = vadd.f32 %v4168_v63, %v335_v11  ;;  %v3177_v4 = vunpack.c.l.b16 %v691_v50  ;;  %v597_v5 = vpack.c.bf16 %v533_v52, %v533_v52  ;;  %v598_v11 = vpack.c.bf16 %v534_v53, %v534_v53 }
  0xba   : > { %v565_v12 = vpack.c.bf16 %v501_v54, %v501_v54  ;;  %v920_v15 = vpack.c.b16 %v874_v55, %v873_v0  ;;  %v904_v3 = vpack.c.b16 %v842_v58, %v841_v2  ;;  %v557_v27 = vpack.c.bf16 %v493_v61, %v493_v61 }
  0xbb   : > { %v348_v34 = vpack.c.bf16 %v336_v19, %v336_v19  ;;  %v566_v19 = vpack.c.bf16 %v502_v56, %v502_v56  ;;  %v3241_v22 = vpack.c.b16 %v3178_v60, %v3177_v4  ;;  %v558_v29 = vpack.c.bf16 %v494_v62, %v494_v62 }
  0xbc   : > { %v4311_v31 = vunpack.c.l.bf16 %v347_v17  ;;  %v865_v35 = vunpack.c.l.b16 %v565_v12  ;;  %v525_v36 = vmul.f32 %v4225_v59, %v4245_v26  ;;  %v857_v42 = vunpack.c.l.b16 %v557_v27 }
  0xbd   : > { %v768_v39 = vunpack.c.l.b16 %v348_v34  ;;  %v4308_v13 = vunpack.c.l.bf16 %v348_v34  ;;  %v898_v34 = vunpack.c.l.b16 %v598_v11  ;;  %v518_v45 = vmul.f32 %v4186_v16, %v4249_v30 }
  0xbe   : > { %v479_v49 = vmul.f32 %v4179_v9, %v4311_v31  ;;  %v517_v50 = vmul.f32 %v4186_v16, %v4245_v26  ;;  %v638_v11 = vmul.f32 %v4255_v40, %v4249_v30 }
  0xbf   : > { %v4291_v47 = vpack.c.b16 %v768_v39, %v767_v33  ;;  %945 = vrot.lane.b32.xlu1 %v908_v41, %s4092_s13  ;;  %3313 = vrot.lane.b32.xlu0 %v3261_v43, %s4091_s10  ;;  %v897_v33 = vunpack.c.l.b16 %v597_v5  ;;  %v866_v41 = vunpack.c.l.b16 %v566_v19  ;;  %v480_v17 = vmul.f32 %v4179_v9, %v4308_v13 }
  0xc0   : > { %3281 = vrot.lane.b32.xlu2 %v3245_v44, %s4091_s10  ;;  %v338_v51 = vpop.f32.mrf.mxu0  ;;  %v858_v43 = vunpack.c.l.b16 %v558_v29  ;;  %v526_v44 = vmul.f32 %v4225_v59, %v4249_v30  ;;  %v582_v58 = vpack.c.bf16 %v518_v45, %v518_v45  ;;  %v543_v61 = vpack.c.bf16 %v479_v49, %v479_v49 }
  0xc1   : > { %v339_v14 = vadd.f32 %v4168_v63, %v338_v51  ;;  %v932_v52 = vpack.c.b16 %v898_v34, %v897_v33  ;;  %v544_v53 = vpack.c.bf16 %v480_v17, %v480_v17  ;;  %v916_v54 = vpack.c.b16 %v866_v41, %v865_v35 }
  0xc2   : > { %v912_v55 = vpack.c.b16 %v858_v43, %v857_v42  ;;  %v590_v56 = vpack.c.bf16 %v526_v44, %v526_v44  ;;  %v581_v0 = vpack.c.bf16 %v517_v50, %v517_v50  ;;  %v504_v4 = vmul.f32 %v4196_v23, %v4308_v13 }
  0xc3   : > { %v4318_v37 = vpack.c.bf16 %v339_v14, %v339_v14  ;;  %v844_v2 = vunpack.c.l.b16 %v544_v53  ;;  %v637_v5 = vmul.f32 %v4255_v40, %v4245_v26  ;;  %v882_v14 = vunpack.c.l.b16 %v582_v58 }
  0xc4   : > { %v890_v12 = vunpack.c.l.b16 %v590_v56  ;;  %v670_v19 = vmul.f32 %v4243_v25, %v4249_v30  ;;  %v881_v27 = vunpack.c.l.b16 %v581_v0  ;;  %v702_v34 = vpack.c.bf16 %v638_v11, %v638_v11 }
  0xc5   : > { %v769_v46 = vunpack.c.l.b16 %v4318_v37  ;;  %v701_v33 = vpack.c.bf16 %v637_v5, %v637_v5  ;;  %v528_v42 = vmul.f32 %v4225_v59, %v4308_v13  ;;  %v630_v50 = vmul.f32 %v4273_v10, %v4249_v30 }
  0xc6   : > { %v734_v41 = vpack.c.bf16 %v670_v19, %v670_v19  ;;  %v3188_v45 = vunpack.c.l.b16 %v702_v34  ;;  %v527_v53 = vmul.f32 %v4225_v59, %v4311_v31  ;;  %v653_v19 = vmul.f32 %v4203_v28, %v4245_v26 }
  0xc7   : > { %969 = vrot.lane.b32.xlu1 %v920_v15, %s4092_s13  ;;  %937 = vrot.lane.b32.xlu0 %v904_v3, %s4092_s13  ;;  %v669_v15 = vmul.f32 %v4243_v25, %v4245_v26  ;;  %v843_v3 = vunpack.c.l.b16 %v543_v61  ;;  %v3187_v44 = vunpack.c.l.b16 %v701_v33  ;;  %v694_v0 = vpack.c.bf16 %v630_v50, %v630_v50 }
  0xc8   : > { %3273 = vrot.lane.b32.xlu2 %v3241_v22, %s4091_s10  ;;  %v340_v32 = vpop.f32.mrf.mxu0  ;;  %v503_v22 = vmul.f32 %v4196_v23, %v4311_v31 }
  0xc9   : > { %v341_v39 = vadd.f32 %v4168_v63, %v340_v32  ;;  %v589_v63 = vpack.c.bf16 %v525_v36, %v525_v36  ;;  %v905_v29 = vpack.c.b16 %v844_v2, %v843_v3  ;;  %v568_v32 = vpack.c.bf16 %v504_v4, %v504_v4 }
  0xca   : > { %v924_v36 = vpack.c.b16 %v882_v14, %v881_v27  ;;  %v567_v17 = vpack.c.bf16 %v503_v22, %v503_v22  ;;  %v3246_v61 = vpack.c.b16 %v3188_v45, %v3187_v44  ;;  %v591_v4 = vpack.c.bf16 %v527_v53, %v527_v53 }
  0xcb   : > { %v4328_v48 = vpack.c.bf16 %v341_v39, %v341_v39  ;;  %v889_v62 = vunpack.c.l.b16 %v589_v63  ;;  %v733_v39 = vpack.c.bf16 %v669_v15, %v669_v15  ;;  %v868_v43 = vunpack.c.l.b16 %v568_v32 }
  0xcc   : > { %v3220_v63 = vunpack.c.l.b16 %v734_v41  ;;  %v639_v14 = vmul.f32 %v4255_v40, %v4311_v31  ;;  %v640_v15 = vmul.f32 %v4255_v40, %v4308_v13  ;;  %v3180_v3 = vunpack.c.l.b16 %v694_v0 }
  0xcd   : > { %v770_v51 = vunpack.c.l.b16 %v4328_v48  ;;  %v928_v35 = vpack.c.b16 %v890_v12, %v889_v62  ;;  %v3219_v49 = vunpack.c.l.b16 %v733_v39  ;;  %v654_v27 = vmul.f32 %v4203_v28, %v4249_v30 }
  0xce   : > { %v891_v32 = vunpack.c.l.b16 %v591_v4  ;;  %v4381_v33 = vunpack.c.l.bf16 %v4328_v48  ;;  %v703_v39 = vpack.c.bf16 %v639_v14, %v639_v14  ;;  %v704_v41 = vpack.c.bf16 %v640_v15, %v640_v15 }
  0xcf   : > { %v4335_v60 = vpack.c.b16 %v770_v51, %v769_v46  ;;  %993 = vrot.lane.b32.xlu1 %v932_v52, %s4092_s13  ;;  %961 = vrot.lane.b32.xlu0 %v916_v54, %s4092_s13  ;;  %v629_v46 = vmul.f32 %v4273_v10, %v4245_v26  ;;  %v488_v51 = vmul.f32 %v4173_v6, %v4308_v13  ;;  %v867_v52 = vunpack.c.l.b16 %v567_v17 }
  0xd0   : > { %953 = vrot.lane.b32.xlu2 %v912_v55, %s4092_s13  ;;  %v592_v54 = vpack.c.bf16 %v528_v42, %v528_v42  ;;  %v487_v55 = vmul.f32 %v4173_v6, %v4311_v31  ;;  %v3262_v62 = vpack.c.b16 %v3220_v63, %v3219_v49  ;;  %v717_v17 = vpack.c.bf16 %v653_v19, %v653_v19 }
  0xd1   : > { %v917_v56 = vpack.c.b16 %v868_v43, %v867_v52  ;;  %v693_v58 = vpack.c.bf16 %v629_v46, %v629_v46  ;;  %v552_v2 = vpack.c.bf16 %v488_v51, %v488_v51  ;;  %v718_v44 = vpack.c.bf16 %v654_v27, %v654_v27 }
  0xd2   : > { %v892_v5 = vunpack.c.l.b16 %v592_v54  ;;  %v551_v11 = vpack.c.bf16 %v487_v55, %v487_v55  ;;  %v4386_v46 = vunpack.c.l.bf16 %v4318_v37  ;;  %v3189_v49 = vunpack.c.l.b16 %v703_v39 }
  0xd3   : > { %v3179_v12 = vunpack.c.l.b16 %v693_v58  ;;  %v852_v22 = vunpack.c.l.b16 %v552_v2  ;;  %v3190_v63 = vunpack.c.l.b16 %v704_v41  ;;  %v3203_v50 = vunpack.c.l.b16 %v717_v17 }
  0xd4   : > { %v851_v34 = vunpack.c.l.b16 %v551_v11  ;;  %v498_v51 = vmul.f32 %v4177_v8, %v4381_v33  ;;  %v3204_v52 = vunpack.c.l.b16 %v718_v44  ;;  %v496_v54 = vmul.f32 %v4177_v8, %v4308_v13 }
  0xd5   : > { %v3242_v42 = vpack.c.b16 %v3180_v3, %v3179_v12  ;;  %v536_v37 = vmul.f32 %v4222_v57, %v4308_v13  ;;  %v497_v55 = vmul.f32 %v4177_v8, %v4386_v46  ;;  %v495_v58 = vmul.f32 %v4177_v8, %v4311_v31 }
  0xd6   : > { %v909_v43 = vpack.c.b16 %v852_v22, %v851_v34  ;;  %v562_v0 = vpack.c.bf16 %v498_v51, %v498_v51  ;;  %v3254_v2 = vpack.c.b16 %v3204_v52, %v3203_v50  ;;  %v522_v8 = vmul.f32 %v4186_v16, %v4381_v33 }
  0xd7   : > { %939 = vrot.lane.b32.xlu1 %v905_v29, %s4092_s13  ;;  %985 = vrot.lane.b32.xlu0 %v928_v35, %s4092_s13  ;;  %v512_v29 = vmul.f32 %v4190_v18, %v4308_v13  ;;  %v511_v35 = vmul.f32 %v4190_v18, %v4311_v31  ;;  %v600_v11 = vpack.c.bf16 %v536_v37, %v536_v37  ;;  %v4419_v17 = vunpack.i.l.bf16 %v4192_v20 }
  0xd8   : > { %977 = vrot.lane.b32.xlu2 %v924_v36, %s4092_s13  ;;  %v929_v36 = vpack.c.b16 %v892_v5, %v891_v32  ;;  %v560_v5 = vpack.c.bf16 %v496_v54, %v496_v54  ;;  %v561_v12 = vpack.c.bf16 %v497_v55, %v497_v55  ;;  %v559_v14 = vpack.c.bf16 %v495_v58, %v495_v58 }
  0xd9   : > { %v576_v45 = vpack.c.bf16 %v512_v29, %v512_v29  ;;  %v575_v48 = vpack.c.bf16 %v511_v35, %v511_v35  ;;  %v862_v19 = vunpack.c.l.b16 %v562_v0  ;;  %v520_v3 = vmul.f32 %v4186_v16, %v4308_v13 }
  0xda   : > { %v860_v22 = vunpack.c.l.b16 %v560_v5  ;;  %v900_v27 = vunpack.c.l.b16 %v600_v11  ;;  %v631_v29 = vmul.f32 %v4273_v10, %v4311_v31  ;;  %v632_v32 = vmul.f32 %v4273_v10, %v4308_v13 }
  0xdb   : > { %v876_v53 = vunpack.c.l.b16 %v576_v45  ;;  %v861_v34 = vunpack.c.l.b16 %v561_v12  ;;  %v521_v35 = vmul.f32 %v4186_v16, %v4386_v46  ;;  %v519_v41 = vmul.f32 %v4186_v16, %v4311_v31 }
  0xdc   : > { %v584_v44 = vpack.c.bf16 %v520_v3, %v520_v3  ;;  %v645_v16 = vmul.f32 %v4419_v17, %v4245_v26  ;;  %v655_v54 = vmul.f32 %v4203_v28, %v4311_v31  ;;  %v672_v58 = vmul.f32 %v4243_v25, %v4308_v13 }
  0xdd   : > { %v585_v50 = vpack.c.bf16 %v521_v35, %v521_v35  ;;  %v583_v51 = vpack.c.bf16 %v519_v41, %v519_v41  ;;  %v4437_v3 = vunpack.i.l.bf16 %v4231_v1 }
  0xde   : > { %v884_v52 = vunpack.c.l.b16 %v584_v44  ;;  %v709_v0 = vpack.c.bf16 %v645_v16, %v645_v16  ;;  %v719_v12 = vpack.c.bf16 %v655_v54, %v655_v54 }
  0xdf   : > { %963 = vrot.lane.b32.xlu1 %v917_v56, %s4092_s13  ;;  %3283 = vrot.lane.b32.xlu0 %v3246_v61, %s4091_s10  ;;  %v875_v56 = vunpack.c.l.b16 %v575_v48  ;;  %v535_v61 = vmul.f32 %v4222_v57, %v4311_v31  ;;  %v666_v35 = vmul.f32 %v4437_v3, %v4381_v33  ;;  %v665_v44 = vmul.f32 %v4437_v3, %v4386_v46 }
  0xe0   : > { %3315 = vrot.lane.b32.xlu2 %v3262_v62, %s4091_s10  ;;  %v3247_v62 = vpack.c.b16 %v3190_v63, %v3189_v49  ;;  %v695_v49 = vpack.c.bf16 %v631_v29, %v631_v29  ;;  %v696_v63 = vpack.c.bf16 %v632_v32, %v632_v32 }
  0xe1   : > { %v921_v4 = vpack.c.b16 %v876_v53, %v875_v56  ;;  %v599_v15 = vpack.c.bf16 %v535_v61, %v535_v61  ;;  %v646_v53 = vmul.f32 %v4419_v17, %v4249_v30  ;;  %v656_v56 = vmul.f32 %v4203_v28, %v4308_v13 }
  0xe2   : > { %v3181_v37 = vunpack.c.l.b16 %v695_v49  ;;  %v3182_v55 = vunpack.c.l.b16 %v696_v63  ;;  %v885_v61 = vunpack.c.l.b16 %v585_v50  ;;  %v730_v63 = vpack.c.bf16 %v666_v35, %v666_v35 }
  0xe3   : > { %v899_v39 = vunpack.c.l.b16 %v599_v15  ;;  %v710_v11 = vpack.c.bf16 %v646_v53, %v646_v53  ;;  %v729_v54 = vpack.c.bf16 %v665_v44, %v665_v44  ;;  %v506_v44 = vmul.f32 %v4196_v23, %v4381_v33 }
  0xe4   : > { %v3243_v15 = vpack.c.b16 %v3182_v55, %v3181_v37  ;;  %v3216_v55 = vunpack.c.l.b16 %v730_v63  ;;  %v505_v63 = vmul.f32 %v4196_v23, %v4386_v46 }
  0xe5   : > { %v933_v48 = vpack.c.b16 %v900_v27, %v899_v39  ;;  %v3195_v27 = vunpack.c.l.b16 %v709_v0  ;;  %v3196_v32 = vunpack.c.l.b16 %v710_v11 }
  0xe7   : > { %987 = vrot.lane.b32.xlu1 %v929_v36, %s4092_s13  ;;  %3275 = vrot.lane.b32.xlu0 %v3242_v42, %s4091_s10  ;;  %v859_v36 = vunpack.c.l.b16 %v559_v14  ;;  %v914_v42 = vpack.c.b16 %v862_v19, %v861_v34  ;;  %v720_v19 = vpack.c.bf16 %v656_v56, %v656_v56  ;;  %v3205_v34 = vunpack.c.l.b16 %v719_v12 }
  0xe8   : > { %947 = vrot.lane.b32.xlu2 %v909_v43, %s4092_s13  ;;  %v586_v43 = vpack.c.bf16 %v522_v8, %v522_v8  ;;  %v736_v8 = vpack.c.bf16 %v672_v58, %v672_v58  ;;  %v3250_v49 = vpack.c.b16 %v3196_v32, %v3195_v27  ;;  %v513_v12 = vmul.f32 %v4190_v18, %v4386_v46 }
  0xe9   : > { %v913_v45 = vpack.c.b16 %v860_v22, %v859_v36  ;;  %v490_v36 = vmul.f32 %v4173_v6, %v4381_v33  ;;  %v3206_v39 = vunpack.c.l.b16 %v720_v19 }
  0xea   : > { %v886_v20 = vunpack.c.l.b16 %v586_v43  ;;  %v3222_v41 = vunpack.c.l.b16 %v736_v8  ;;  %v577_v35 = vpack.c.bf16 %v513_v12, %v513_v12 }
  0xeb   : > { %v554_v50 = vpack.c.bf16 %v490_v36, %v490_v36 }
  0xec   : > { %v926_v5 = vpack.c.b16 %v886_v20, %v885_v61 }
  0xed   : > { %v854_v56 = vunpack.c.l.b16 %v554_v50 }
  0xef   : > { %3285 = vrot.lane.b32.xlu1 %v3247_v62, %s4091_s10  ;;  %3299 = vrot.lane.b32.xlu0 %v3254_v2, %s4091_s10  ;;  %v883_v62 = vunpack.c.l.b16 %v583_v51  ;;  %v671_v2 = vmul.f32 %v4243_v25, %v4311_v31  ;;  %v3255_v51 = vpack.c.b16 %v3206_v39, %v3205_v34 }
  0xf0   : > { %971 = vrot.lane.b32.xlu2 %v921_v4, %s4092_s13  ;;  %v3821_v4 = vpop.permute.xlu1 %3820 }
  0xf1   : > { %v925_v14 = vpack.c.b16 %v884_v52, %v883_v62  ;;  %v4440_v22 = vunpack.i.h.bf16 %v3821_v4  ;;  %v735_v29 = vpack.c.bf16 %v671_v2, %v671_v2  ;;  %v4458_v53 = vunpack.i.l.bf16 %v3821_v4 }
  0xf2   : > { %v514_v2 = vmul.f32 %v4190_v18, %v4381_v33  ;;  %v482_v4 = vmul.f32 %v4179_v9, %v4381_v33 }
  0xf3   : > { %v688_v43 = vmul.f32 %v4440_v22, %v4308_v13  ;;  %v678_v58 = vmul.f32 %v4458_v53, %v4249_v30 }
  0xf4   : > { %v578_v32 = vpack.c.bf16 %v514_v2, %v514_v2  ;;  %v546_v34 = vpack.c.bf16 %v482_v4, %v482_v4 }
  0xf5   : > { %v752_v52 = vpack.c.bf16 %v688_v43, %v688_v43  ;;  %v742_v8 = vpack.c.bf16 %v678_v58, %v678_v58  ;;  %v538_v43 = vmul.f32 %v4222_v57, %v4381_v33 }
  0xf7   : > { %957 = vrot.lane.b32.xlu1 %v914_v42, %s4092_s13  ;;  %955 = vrot.lane.b32.xlu0 %v913_v45, %s4092_s13  ;;  %v687_v42 = vmul.f32 %v4440_v22, %v4311_v31  ;;  %v3221_v45 = vunpack.c.l.b16 %v735_v29  ;;  %v3238_v0 = vunpack.c.l.b16 %v752_v52  ;;  %v3228_v18 = vunpack.c.l.b16 %v742_v8 }
  0xf8   : > { %995 = vrot.lane.b32.xlu2 %v933_v48, %s4092_s13  ;;  %v489_v48 = vmul.f32 %v4173_v6, %v4386_v46  ;;  %v677_v6 = vmul.f32 %v4458_v53, %v4245_v26  ;;  %v570_v52 = vpack.c.bf16 %v506_v44, %v506_v44 }
  0xf9   : > { %v3263_v16 = vpack.c.b16 %v3222_v41, %v3221_v45  ;;  %v751_v20 = vpack.c.bf16 %v687_v42, %v687_v42  ;;  %v846_v42 = vunpack.c.l.b16 %v546_v34  ;;  %v877_v45 = vunpack.c.l.b16 %v577_v35 }
  0xfa   : > { %v553_v37 = vpack.c.bf16 %v489_v48, %v489_v48  ;;  %v741_v19 = vpack.c.bf16 %v677_v6, %v677_v6  ;;  %v870_v58 = vunpack.c.l.b16 %v570_v52 }
  0xfb   : > { %v3237_v62 = vunpack.c.l.b16 %v751_v20  ;;  %v602_v20 = vpack.c.bf16 %v538_v43, %v538_v43 }
  0xfc   : > { %v853_v11 = vunpack.c.l.b16 %v553_v37  ;;  %v3227_v39 = vunpack.c.l.b16 %v741_v19  ;;  %v569_v37 = vpack.c.bf16 %v505_v63, %v505_v63 }
  0xfd   : > { %v3271_v29 = vpack.c.b16 %v3238_v0, %v3237_v62  ;;  %v902_v6 = vunpack.c.l.b16 %v602_v20  ;;  %v634_v62 = vmul.f32 %v4273_v10, %v4381_v33  ;;  %v530_v0 = vmul.f32 %v4225_v59, %v4381_v33 }
  0xfe   : > { %v910_v27 = vpack.c.b16 %v854_v56, %v853_v11  ;;  %v3266_v50 = vpack.c.b16 %v3228_v18, %v3227_v39  ;;  %v869_v4 = vunpack.c.l.b16 %v569_v37  ;;  %v641_v39 = vmul.f32 %v4255_v40, %v4386_v46 }
  0xff   : > { %981 = vrot.lane.b32.xlu1 %v926_v5, %s4092_s13  ;;  %979 = vrot.lane.b32.xlu0 %v925_v14, %s4092_s13  ;;  %v3215_v5 = vunpack.c.l.b16 %v729_v54  ;;  %v481_v14 = vmul.f32 %v4179_v9, %v4386_v46  ;;  %v878_v9 = vunpack.c.l.b16 %v578_v32  ;;  %v594_v19 = vpack.c.bf16 %v530_v0, %v530_v0 }
 0x100   : > { %3277 = vrot.lane.b32.xlu2 %v3243_v15, %s4091_s10  ;;  %v658_v32 = vmul.f32 %v4203_v28, %v4381_v33  ;;  %v642_v18 = vmul.f32 %v4255_v40, %v4381_v33  ;;  %v690_v37 = vmul.f32 %v4440_v22, %v4381_v33 }
 0x101   : > { %v3260_v15 = vpack.c.b16 %v3216_v55, %v3215_v5  ;;  %v545_v36 = vpack.c.bf16 %v481_v14, %v481_v14  ;;  %v529_v5 = vmul.f32 %v4225_v59, %v4386_v46  ;;  %v918_v14 = vpack.c.b16 %v870_v58, %v869_v4 }
 0x102   : > { %v4448_v1 = vpop.permute.xlu2 %935  ;;  %v722_v43 = vpack.c.bf16 %v658_v32, %v658_v32 }
 0x103   : > { %v845_v48 = vunpack.c.l.b16 %v545_v36  ;;  %v593_v8 = vpack.c.bf16 %v529_v5, %v529_v5  ;;  %v894_v36 = vunpack.c.l.b16 %v594_v19 }
 0x107   : > { %3291 = vrot.lane.b32.xlu1 %v3250_v49, %s4091_s10  ;;  %3301 = vrot.lane.b32.xlu0 %v3255_v51, %s4091_s10  ;;  %v537_v49 = vmul.f32 %v4222_v57, %v4386_v46  ;;  %v922_v51 = vpack.c.b16 %v878_v9, %v877_v45  ;;  %v633_v57 = vmul.f32 %v4273_v10, %v4386_v46  ;;  %v893_v9 = vunpack.c.l.b16 %v593_v8 }
 0x108   : > { %3317 = vrot.lane.b32.xlu2 %v3263_v16, %s4091_s10  ;;  %v906_v16 = vpack.c.b16 %v846_v42, %v845_v48  ;;  %v705_v48 = vpack.c.bf16 %v641_v39, %v641_v39 }
 0x109   : > { %v601_v54 = vpack.c.bf16 %v537_v49, %v537_v49  ;;  %v697_v11 = vpack.c.bf16 %v633_v57, %v633_v57  ;;  %v930_v45 = vpack.c.b16 %v894_v36, %v893_v9  ;;  %v706_v49 = vpack.c.bf16 %v642_v18, %v642_v18 }
 0x10a   : > { %v4467_v61 = vpop.permute.xlu2 %959  ;;  %v3191_v20 = vunpack.c.l.b16 %v705_v48  ;;  %v673_v57 = vmul.f32 %v4243_v25, %v4386_v46  ;;  %v685_v48 = vmul.f32 %v4440_v22, %v4245_v26 }
 0x10b   : > { %v901_v2 = vunpack.c.l.b16 %v601_v54  ;;  %v3183_v10 = vunpack.c.l.b16 %v697_v11  ;;  %v3192_v52 = vunpack.c.l.b16 %v706_v49  ;;  %v689_v54 = vmul.f32 %v4440_v22, %v4386_v46 }
 0x10c   : > { %v737_v4 = vpack.c.bf16 %v673_v57, %v673_v57  ;;  %v649_v11 = vmul.f32 %v4419_v17, %v4386_v46 }
 0x10d   : > { %v934_v12 = vpack.c.b16 %v902_v6, %v901_v2  ;;  %v753_v0 = vpack.c.bf16 %v689_v54, %v689_v54  ;;  %v754_v2 = vpack.c.bf16 %v690_v37, %v690_v37  ;;  %v663_v54 = vmul.f32 %v4437_v3, %v4311_v31 }
 0x10e   : > { %v3223_v32 = vunpack.c.l.b16 %v737_v4  ;;  %v749_v37 = vpack.c.bf16 %v685_v48, %v685_v48 }
 0x10f   : > { %3311 = vrot.lane.b32.xlu1 %v3260_v15, %s4091_s10  ;;  %949 = vrot.lane.b32.xlu0 %v910_v27, %s4092_s13  ;;  %v698_v15 = vpack.c.bf16 %v634_v62, %v634_v62  ;;  %v3248_v62 = vpack.c.b16 %v3192_v52, %v3191_v20  ;;  %v3239_v19 = vunpack.c.l.b16 %v753_v0  ;;  %v3240_v8 = vunpack.c.l.b16 %v754_v2 }
 0x110   : > { %3333 = vrot.lane.b32.xlu2 %v3271_v29, %s4091_s10  ;;  %v657_v29 = vmul.f32 %v4203_v28, %v4386_v46  ;;  %v686_v20 = vmul.f32 %v4440_v22, %v4249_v30  ;;  %v664_v52 = vmul.f32 %v4437_v3, %v4308_v13  ;;  %v727_v0 = vpack.c.bf16 %v663_v54, %v663_v54 }
 0x111   : > { %v3184_v35 = vunpack.c.l.b16 %v698_v15  ;;  %v3272_v39 = vpack.c.b16 %v3240_v8, %v3239_v19  ;;  %v3235_v4 = vunpack.c.l.b16 %v749_v37  ;;  %v682_v54 = vmul.f32 %v4458_v53, %v4381_v33 }
 0x112   : > { %v4480_v41 = vpop.permute.xlu2 %983  ;;  %v721_v42 = vpack.c.bf16 %v657_v29, %v657_v29  ;;  %v648_v29 = vmul.f32 %v4419_v17, %v4308_v13  ;;  %v643_v37 = vmul.f32 %v4419_v17, %v4175_v7 }
 0x113   : > { %v3244_v44 = vpack.c.b16 %v3184_v35, %v3183_v10  ;;  %v713_v35 = vpack.c.bf16 %v649_v11, %v649_v11  ;;  %v683_v11 = vmul.f32 %v4440_v22, %v4175_v7 }
 0x114   : > { %v3207_v63 = vunpack.c.l.b16 %v721_v42  ;;  %v712_v42 = vpack.c.bf16 %v648_v29, %v648_v29  ;;  %v661_v29 = vmul.f32 %v4437_v3, %v4245_v26  ;;  %v644_v26 = vmul.f32 %v4419_v17, %v4194_v21 }
 0x117   : > { %3323 = vrot.lane.b32.xlu1 %v3266_v50, %s4091_s10  ;;  %973 = vrot.lane.b32.xlu0 %v922_v51, %s4092_s13  ;;  %v3208_v50 = vunpack.c.l.b16 %v722_v43  ;;  %v674_v51 = vmul.f32 %v4243_v25, %v4381_v33  ;;  %v647_v25 = vmul.f32 %v4419_v17, %v4311_v31 }
 0x118   : > { %941 = vrot.lane.b32.xlu2 %v906_v16, %s4092_s13 }
 0x119   : > { %v4493_v55 = vpop.permute.xlu1 %951  ;;  %v4497_v56 = vpop.permute.xlu0 %943  ;;  %v738_v6 = vpack.c.bf16 %v674_v51, %v674_v51  ;;  %v3256_v58 = vpack.c.b16 %v3208_v50, %v3207_v63  ;;  %v711_v9 = vpack.c.bf16 %v647_v25, %v647_v25  ;;  %v3198_v51 = vunpack.c.l.b16 %v712_v42 }
 0x11a   : > { %v4499_v23 = vpop.permute.xlu2 %3281  ;;  %v725_v42 = vpack.c.bf16 %v661_v29, %v661_v29 }
 0x11b   : > { %v3224_v10 = vunpack.c.l.b16 %v738_v6  ;;  %v3197_v50 = vunpack.c.l.b16 %v711_v9 }
 0x11d   : > { %v3264_v18 = vpack.c.b16 %v3224_v10, %v3223_v32  ;;  %v3251_v6 = vpack.c.b16 %v3198_v51, %v3197_v50  ;;  %v662_v32 = vmul.f32 %v4437_v3, %v4249_v30  ;;  %v3211_v51 = vunpack.c.l.b16 %v725_v42 }
 0x11f   : > { %997 = vrot.lane.b32.xlu0 %v934_v12, %s4092_s13  ;;  %v650_v12 = vmul.f32 %v4419_v17, %v4381_v33  ;;  %v660_v33 = vmul.f32 %v4437_v3, %v4194_v21 }
 0x120   : > { %965 = vrot.lane.b32.xlu2 %v918_v14, %s4092_s13 }
 0x121   : > { %v4509_v27 = vpop.permute.xlu1 %975  ;;  %v4515_v59 = vpop.permute.xlu0 %967  ;;  %v714_v36 = vpack.c.bf16 %v650_v12, %v650_v12  ;;  %v684_v12 = vmul.f32 %v4440_v22, %v4194_v21 }
 0x122   : > { %v4517_v34 = vpop.permute.xlu2 %3273 }
 0x127   : > { %3279 = vrot.lane.b32.xlu0 %v3244_v44, %s4091_s10  ;;  %v3199_v44 = vunpack.c.l.b16 %v713_v35  ;;  %v3213_v35 = vunpack.c.l.b16 %v727_v0  ;;  %v746_v0 = vpack.c.bf16 %v682_v54, %v682_v54 }
 0x128   : > { %989 = vrot.lane.b32.xlu2 %v930_v45, %s4092_s13  ;;  %v3200_v45 = vunpack.c.l.b16 %v714_v36  ;;  %v747_v36 = vpack.c.bf16 %v683_v11, %v683_v11 }
 0x129   : > { %v4525_v28 = vpop.permute.xlu1 %3297  ;;  %v4529_v16 = vpop.permute.xlu0 %991  ;;  %v3232_v29 = vunpack.c.l.b16 %v746_v0 }
 0x12a   : > { %v4531_v40 = vpop.permute.xlu2 %953  ;;  %v3252_v57 = vpack.c.b16 %v3200_v45, %v3199_v44  ;;  %v726_v44 = vpack.c.bf16 %v662_v32, %v662_v32  ;;  %v3233_v45 = vunpack.c.l.b16 %v747_v36  ;;  %v679_v32 = vmul.f32 %v4458_v53, %v4311_v31 }
 0x12f   : > { %3303 = vrot.lane.b32.xlu0 %v3256_v58, %s4091_s10  ;;  %v750_v58 = vpack.c.bf16 %v686_v20, %v686_v20  ;;  %v3212_v20 = vunpack.c.l.b16 %v726_v44  ;;  %v743_v44 = vpack.c.bf16 %v679_v32, %v679_v32 }
 0x130   : > { %3287 = vrot.lane.b32.xlu2 %v3248_v62, %s4091_s10  ;;  %v728_v62 = vpack.c.bf16 %v664_v52, %v664_v52  ;;  %v681_v52 = vmul.f32 %v4458_v53, %v4386_v46  ;;  %v659_v46 = vmul.f32 %v4437_v3, %v4175_v7 }
 0x131   : > { %v4541_v5 = vpop.permute.xlu1 %945  ;;  %v4549_v14 = vpop.permute.xlu0 %3313  ;;  %v3236_v8 = vunpack.c.l.b16 %v750_v58  ;;  %v3258_v58 = vpack.c.b16 %v3212_v20, %v3211_v51 }
 0x132   : > { %v4551_v15 = vpop.permute.xlu2 %977  ;;  %v3214_v10 = vunpack.c.l.b16 %v728_v62  ;;  %v745_v62 = vpack.c.bf16 %v681_v52, %v681_v52 }
 0x134   : > { %v3259_v9 = vpack.c.b16 %v3214_v10, %v3213_v35  ;;  %v3231_v10 = vunpack.c.l.b16 %v745_v62  ;;  %v680_v35 = vmul.f32 %v4458_v53, %v4308_v13  ;;  %v3229_v13 = vunpack.c.l.b16 %v743_v44 }
 0x135   : > { %v1072_v44 = vsel %vm7331_vm4, %v4509_v27, 0 }
 0x137   : > { %3335 = vrot.lane.b32.xlu0 %v3272_v39, %s4091_s10  ;;  %v748_v39 = vpack.c.bf16 %v684_v12, %v684_v12 }
 0x138   : > { %3319 = vrot.lane.b32.xlu2 %v3264_v18, %s4091_s10  ;;  %v3270_v18 = vpack.c.b16 %v3236_v8, %v3235_v4  ;;  %v707_v4 = vpack.c.bf16 %v643_v37, %v643_v37 }
 0x139   : > { %v4557_v43 = vpop.permute.xlu1 %969  ;;  %v4561_v49 = vpop.permute.xlu0 %937  ;;  %v3234_v48 = vunpack.c.l.b16 %v748_v39  ;;  %v723_v39 = vpack.c.bf16 %v659_v46, %v659_v46 }
 0x13a   : > { %v4563_v63 = vpop.permute.xlu2 %3315  ;;  %v3193_v36 = vunpack.c.l.b16 %v707_v4 }
 0x13b   : > { %v3209_v31 = vunpack.c.l.b16 %v723_v39  ;;  %v1075_v39 = vsel %vm7331_vm4, %v4551_v15, 0 }
 0x13f   : > { %3295 = vrot.lane.b32.xlu0 %v3252_v57, %s4091_s10  ;;  %v708_v57 = vpack.c.bf16 %v644_v26, %v644_v26 }
 0x140   : > { %3293 = vrot.lane.b32.xlu2 %v3251_v6, %s4091_s10  ;;  %v3269_v6 = vpack.c.b16 %v3234_v48, %v3233_v45  ;;  %v744_v45 = vpack.c.bf16 %v680_v35, %v680_v35 }
 0x141   : > { %v4573_v2 = vpop.permute.xlu1 %993  ;;  %v4579_v25 = vpop.permute.xlu0 %961  ;;  %v3194_v12 = vunpack.c.l.b16 %v708_v57 }
 0x142   : > { %v4581_v19 = vpop.permute.xlu2 %947  ;;  %v3230_v20 = vunpack.c.l.b16 %v744_v45 }
 0x143   : > { %v3249_v42 = vpack.c.b16 %v3194_v12, %v3193_v36  ;;  %v1030_v45 = vsel %vm7331_vm4, %v4581_v19, 0 }
 0x144   : > { %v3267_v54 = vpack.c.b16 %v3230_v20, %v3229_v13  ;;  %v1027_v13 = vsel %vm7331_vm4, %v4541_v5, 0  ;;  %v1048_v20 = vsel %vm7331_vm4, %v4467_v61, 0 }
 0x147   : > { %3331 = vrot.lane.b32.xlu0 %v3270_v18, %s4091_s10  ;;  %v724_v18 = vpack.c.bf16 %v660_v33, %v660_v33 }
 0x148   : > { %3309 = vrot.lane.b32.xlu2 %v3259_v9, %s4091_s10  ;;  %v3268_v9 = vpack.c.b16 %v3232_v29, %v3231_v10 }
 0x149   : > { %v4589_v22 = vpop.permute.xlu1 %939  ;;  %v4593_v50 = vpop.permute.xlu0 %985  ;;  %v3210_v51 = vunpack.c.l.b16 %v724_v18 }
 0x14a   : > { %v4595_v30 = vpop.permute.xlu2 %971 }
 0x14b   : > { %v3257_v52 = vpack.c.b16 %v3210_v51, %v3209_v31  ;;  %v1051_v31 = vsel %vm7331_vm4, %v4579_v25, 0  ;;  %v1066_v19 = vsel %vm7331_vm4, %v4595_v30, 0 }
 0x14f   : > { %3329 = vrot.lane.b32.xlu0 %v3269_v6, %s4091_s10 }
 0x150   : > { %3307 = vrot.lane.b32.xlu2 %v3258_v58, %s4091_s10 }
 0x151   : > { %v964_v11 = vpop.permute.xlu1 %963  ;;  %v4609_v8 = vpop.permute.xlu0 %3283 }
 0x152   : > { %v4611_v17 = vpop.permute.xlu2 %995 }
 0x153   : > { %v1102_v61 = vsel %vm7331_vm4, %v4611_v17, 0 }
 0x157   : > { %3327 = vrot.lane.b32.xlu0 %v3268_v9, %s4091_s10  ;;  %v1054_v9 = vsel %vm7331_vm4, %v964_v11, 0 }
 0x158   : > { %3289 = vrot.lane.b32.xlu2 %v3249_v42, %s4091_s10 }
 0x159   : > { %v4619_v3 = vpop.permute.xlu1 %987  ;;  %v4621_v48 = vpop.permute.xlu0 %3275 }
 0x15a   : > { %v4623_v26 = vpop.permute.xlu2 %3277 }
 0x15f   : > { %3305 = vrot.lane.b32.xlu0 %v3257_v52, %s4091_s10  ;;  %v1024_v52 = vsel %vm7331_vm4, %v4497_v56, 0  ;;  %v1099_v56 = vsel %vm7331_vm4, %v4573_v2, 0 }
 0x160   : > { %3325 = vrot.lane.b32.xlu2 %v3267_v54, %s4091_s10 }
 0x161   : > { %v4627_v37 = vpop.permute.xlu1 %3285  ;;  %v4629_v57 = vpop.permute.xlu0 %3299 }
 0x162   : > { %v4631_v6 = vpop.permute.xlu2 %3317 }
 0x169   : > { %v958_v58 = vpop.permute.xlu1 %957  ;;  %v956_v62 = vpop.permute.xlu0 %955 }
 0x16a   : > { %v4633_v0 = vpop.permute.xlu2 %3333  ;;  %v1045_v54 = vsel %vm7331_vm4, %v958_v58, 0 }
 0x171   : > { %v982_v4 = vpop.permute.xlu1 %981  ;;  %v980_v12 = vpop.permute.xlu0 %979 }
 0x172   : > { %v942_v46 = vpop.permute.xlu2 %941  ;;  %v1081_v33 = vsel %vm7331_vm4, %v982_v4, 0  ;;  %v1078_v32 = vsel %vm7331_vm4, %v980_v12, 0  ;;  %v1063_v12 = vsel %vm7331_vm4, %v4557_v43, 0  ;;  %v1039_v43 = vsel %vm7331_vm4, %v4531_v40, 0 }
 0x173   : > { %1165 = vmatpush.bf16.xpose.msra.mxu3 %v1081_v33  ;;  %v1021_v30 = vsel %vm7331_vm4, %v942_v46, 0  ;;  %v1042_v33 = vsel %vm7331_vm4, %v956_v62, 0  ;;  %v1096_v62 = vsel %vm7331_vm4, %v4529_v16, 0  ;;  %v1015_v40 = vsel %vm7331_vm4, %v4561_v49, 0 }
 0x174   : > { %v1090_v49 = vsel %vm7331_vm4, %v4619_v3, 0 }
 0x179   : > { %v4636_v10 = vpop.permute.xlu0 %3301 }
 0x17a   : > { %v966_v29 = vpop.permute.xlu2 %965 }
 0x17b   : > { %v1057_v35 = vsel %vm7331_vm4, %v966_v29, 0  ;;  %1166 = vmatpush.bf16.xpose.msra.mxu3 %v1078_v32  ;;  %v1060_v29 = vsel %vm7331_vm4, %v4515_v59, 0  ;;  %v1018_v32 = vsel %vm7331_vm4, %v4589_v22, 0  ;;  %v4688_v59 = vpop.permute.xlu1 %3291  ;;  %v1036_v22 = vsel %vm7331_vm4, %v4493_v55, 0 }
 0x17c   : > { %1136 = vmatpush.bf16.xpose.msra.mxu2 %v1057_v35  ;;  %v1012_v55 = vsel %vm7331_vm4, %v4448_v1, 0  ;;  %v1087_v1 = vsel %vm7331_vm4, %v4593_v50, 0 }
 0x181   : > { %v950_v36 = vpop.permute.xlu0 %949 }
 0x182   : > { %v1033_v18 = vsel %vm7331_vm4, %v950_v36, 0  ;;  %v990_v11 = vpop.permute.xlu2 %989 }
 0x183   : > { %1167 = vmatpush.bf16.xpose.msra.mxu3 %v1075_v39  ;;  %1107 = vmatpush.bf16.xpose.msra.mxu1 %v1033_v18  ;;  %v1093_v16 = vsel %vm7331_vm4, %v990_v11, 0  ;;  %v3312_v36 = vpop.permute.xlu1 %3311 }
 0x184   : > { %1137 = vmatpush.bf16.xpose.msra.mxu2 %v1054_v9 }
 0x189   : > { %v974_v42 = vpop.permute.xlu0 %973 }
 0x18a   : > { %v1069_v51 = vsel %vm7331_vm4, %v974_v42, 0  ;;  %v3288_v5 = vpop.permute.xlu2 %3287 }
 0x18b   : > { %1168 = vmatpush.bf16.xpose.msra.mxu3 %v1072_v44  ;;  %1108 = vmatpush.bf16.xpose.msra.mxu1 %v1030_v45 }
 0x18c   : > { %1138 = vmatpush.bf16.xpose.msra.mxu2 %v1051_v31 }
 0x191   : > { %v998_v15 = vpop.permute.xlu0 %997 }
 0x192   : > { %v1105_v27 = vsel %vm7331_vm4, %v998_v15, 0  ;;  %v3320_v58 = vpop.permute.xlu2 %3319 }
 0x193   : > { %1169 = vmatpush.bf16.xpose.msra.mxu3 %v1069_v51  ;;  %1109 = vmatpush.bf16.xpose.msra.mxu1 %v1027_v13 }
 0x194   : > { %1139 = vmatpush.bf16.xpose.msra.mxu2 %v1048_v20  ;;  %1194 = vmatpush.bf16.xpose.msrb.mxu0 %v1105_v27 }
 0x199   : > { %v4656_v25 = vpop.permute.xlu0 %3279 }
 0x19a   : > { %v4681_v2 = vpop.permute.xlu2 %3293 }
 0x19b   : > { %1170 = vmatpush.bf16.xpose.msra.mxu3 %v1066_v19  ;;  %1110 = vmatpush.bf16.xpose.msra.mxu1 %v1024_v52 }
 0x19c   : > { %1140 = vmatpush.bf16.xpose.msra.mxu2 %v1045_v54  ;;  %1195 = vmatpush.bf16.xpose.msrb.mxu0 %v1102_v61 }
 0x1a1   : > { %v4665_v4 = vpop.permute.xlu0 %3303 }
 0x1a2   : > { %v3310_v35 = vpop.permute.xlu2 %3309 }
 0x1a3   : > { %1171 = vmatpush.bf16.xpose.msra.mxu3 %v1063_v12  ;;  %1111 = vmatpush.bf16.xpose.msra.mxu1 %v1021_v30 }
 0x1a4   : > { %1141 = vmatpush.bf16.xpose.msra.mxu2 %v1042_v33  ;;  %1196 = vmatpush.bf16.xpose.msrb.mxu0 %v1099_v56 }
 0x1a9   : > { %v3336_v17 = vpop.permute.xlu0 %3335 }
 0x1ab   : > { %1172 = vmatpush.bf16.xpose.msra.mxu3 %v1060_v29  ;;  %1112 = vmatpush.bf16.xpose.msra.mxu1 %v1018_v32 }
 0x1ac   : > { %1142 = vmatpush.bf16.xpose.msra.mxu2 %v1039_v43  ;;  %1197 = vmatpush.bf16.xpose.msrb.mxu0 %v1096_v62 }
 0x1b1   : > { %v4684_v46 = vpop.permute.xlu0 %3295 }
 0x1b2   : > { %3733 = vmatmul.msk.bf16.vlgmr.msra.gmra.mxu3 %vm7331_vm4, %v4198_v24 }
 0x1b3   : > { %3427 = vmatpush.bf16.msrb.mxu3 %v3320_v58  ;;  %1113 = vmatpush.bf16.xpose.msra.mxu1 %v1015_v40 }
 0x1b4   : > { %1143 = vmatpush.bf16.xpose.msra.mxu2 %v1036_v22  ;;  %1198 = vmatpush.bf16.xpose.msrb.mxu0 %v1093_v16 }
 0x1b7   : > { %3428 = vmatpush.bf16.msrb.mxu3 %v4631_v6 }
 0x1b9   : > { %v3332_v6 = vpop.permute.xlu0 %3331 }
 0x1bb   : > { %3429 = vmatpush.bf16.msrb.mxu3 %v4563_v63  ;;  %3729 = vmatmul.msk.bf16.vlgmr.msra.gmra.mxu2 %vm7331_vm4, %v4198_v24  ;;  %v3308_v63 = vpop.permute.xlu2 %3307 }
 0x1bc   : > { %3765 = vmatpush.bf16.msrb.mxu2 %v3288_v5  ;;  %1114 = vmatpush.bf16.xpose.msra.mxu1 %v1012_v55 }
 0x1bd   : > { %1199 = vmatpush.bf16.xpose.msrb.mxu0 %v1090_v49 }
 0x1bf   : > { %3430 = vmatpush.bf16.msrb.mxu3 %v4549_v14 }
 0x1c0   : > { %3766 = vmatpush.bf16.msrb.mxu2 %v4627_v37 }
 0x1c1   : > { %v3330_v14 = vpop.permute.xlu0 %3329 }
 0x1c2   : > { %3734 = vmatmul.msk.bf16.gmra.mxu3 %vm7331_vm4, %v4251_v38 }
 0x1c3   : > { %3431 = vmatpush.bf16.msrb.mxu3 %v3312_v36  ;;  %3725 = vmatmul.msk.bf16.vlgmr.msra.gmra.mxu1 %vm7331_vm4, %v4198_v24 }
 0x1c4   : > { %3369 = vmatpush.bf16.msrb.mxu1 %v3288_v5  ;;  %3767 = vmatpush.bf16.msrb.mxu2 %v4609_v8 }
 0x1c5   : > { %1200 = vmatpush.bf16.xpose.msrb.mxu0 %v1087_v1 }
 0x1c7   : > { %3432 = vmatpush.bf16.msrb.mxu3 %v3310_v35 }
 0x1c8   : > { %3370 = vmatpush.bf16.msrb.mxu1 %v4627_v37  ;;  %3768 = vmatpush.bf16.msrb.mxu2 %v4499_v23  ;;  %v1084_v37 = vsel %vm7331_vm4, %v4480_v41, 0  ;;  %v3290_v41 = vpop.permute.xlu2 %3289 }
 0x1c9   : > { %v3328_v3 = vpop.permute.xlu0 %3327 }
 0x1cb   : > { %3433 = vmatpush.bf16.msrb.mxu3 %v3308_v63  ;;  %3730 = vmatmul.msk.bf16.gmra.mxu2 %vm7331_vm4, %v4251_v38 }
 0x1cc   : > { %3371 = vmatpush.bf16.msrb.mxu1 %v4609_v8  ;;  %3769 = vmatpush.bf16.msrb.mxu2 %v4656_v25 }
 0x1cd   : > { %1201 = vmatpush.bf16.xpose.msrb.mxu0 %v1084_v37 }
 0x1d0   : > { %3372 = vmatpush.bf16.msrb.mxu1 %v4499_v23  ;;  %3770 = vmatpush.bf16.msrb.mxu2 %v4623_v26  ;;  %v3326_v50 = vpop.permute.xlu2 %3325 }
 0x1d1   : > { %v3306_v23 = vpop.permute.xlu0 %3305 }
 0x1d2   : > { %3735 = vmatmul.msk.bf16.gmra.mxu3 %vm7331_vm4, %v4291_v47 }
 0x1d3   : > { %3726 = vmatmul.msk.bf16.gmra.mxu1 %vm7331_vm4, %v4251_v38  ;;  %3434 = vmatpush.bf16.msrb.mxu3 %v3306_v23 }
 0x1d4   : > { %3373 = vmatpush.bf16.msrb.mxu1 %v4656_v25  ;;  %3771 = vmatpush.bf16.msrb.mxu2 %v4621_v48 }
 0x1d5   : > { %3456 = vmatpush.bf16.msra.mxu0 %v3336_v17 }
 0x1d6   : > { %3737 = vmatmul.msk.bf16.vlgmr.msrb.gmra.mxu0 %vm7331_vm4, %v4198_v24  ;;  %v3324_v24 = vpop.permute.xlu1 %3323 }
 0x1d8   : > { %3374 = vmatpush.bf16.msrb.mxu1 %v4623_v26  ;;  %3772 = vmatpush.bf16.msrb.mxu2 %v4517_v34 }
 0x1d9   : > { %3457 = vmatpush.bf16.msra.mxu0 %v4633_v0 }
 0x1db   : > { %3731 = vmatmul.msk.bf16.gmra.mxu2 %vm7331_vm4, %v4291_v47 }
 0x1dc   : > { %3398 = vmatpush.bf16.msra.mxu2 %v4665_v4  ;;  %3375 = vmatpush.bf16.msrb.mxu1 %v4621_v48 }
 0x1dd   : > { %3458 = vmatpush.bf16.msra.mxu0 %v3332_v6 }
 0x1e0   : > { %3399 = vmatpush.bf16.msra.mxu2 %v4636_v10  ;;  %3376 = vmatpush.bf16.msrb.mxu1 %v4517_v34 }
 0x1e1   : > { %3459 = vmatpush.bf16.msra.mxu0 %v3330_v14 }
 0x1e2   : > { %3736 = vmatmul.msk.bf16.gmra.mxu3 %vm7331_vm4, %v4335_v60 }
 0x1e3   : > { %3727 = vmatmul.msk.bf16.gmra.mxu1 %vm7331_vm4, %v4291_v47 }
 0x1e4   : > { %3400 = vmatpush.bf16.msra.mxu2 %v4629_v57 }
 0x1e5   : > { %3460 = vmatpush.bf16.msra.mxu0 %v3328_v3 }
 0x1e6   : > { %3738 = vmatmul.msk.bf16.gmra.mxu0 %vm7331_vm4, %v4251_v38 }
 0x1e8   : > { %3401 = vmatpush.bf16.msra.mxu2 %v4525_v28 }
 0x1e9   : > { %3461 = vmatpush.bf16.msra.mxu0 %v3326_v50 }
 0x1eb   : > { %3732 = vmatmul.msk.bf16.gmra.mxu2 %vm7331_vm4, %v4335_v60 }
 0x1ec   : > { %3402 = vmatpush.bf16.msra.mxu2 %v4684_v46 }
 0x1ed   : > { %3462 = vmatpush.bf16.msra.mxu0 %v3324_v24 }
 0x1f0   : > { %3403 = vmatpush.bf16.msra.mxu2 %v4681_v2 }
 0x1f3   : > { %3728 = vmatmul.msk.bf16.gmra.mxu1 %vm7331_vm4, %v4335_v60 }
 0x1f4   : > { %3404 = vmatpush.bf16.msra.mxu2 %v4688_v59 }
 0x1f6   : > { %3739 = vmatmul.msk.bf16.gmra.mxu0 %vm7331_vm4, %v4291_v47 }
 0x1f8   : > { %3405 = vmatpush.bf16.msra.mxu2 %v3290_v41 }
 0x206   : > { %3740 = vmatmul.msk.bf16.gmra.mxu0 %vm7331_vm4, %v4335_v60 }
 0x235   : > { %v4757_v38 = vpop.f32.mrf.mxu3 }
 0x236   : > { %v2057_v34 = vsel %vm1223_vm5, %v4757_v38, -inf  ;;  %v2249_v31 = vsel %vm1416_vm6, %v4757_v38, -inf }
 0x237   : > { %2058 = vmax.xlane.f32.xlu2 %v2057_v34 }
 0x23d   : > { %v4799_v13 = vpop.f32.mrf.mxu3 }
 0x23e   : > { %v4779_v39 = vpop.f32.mrf.mxu2  ;;  %v2252_v25 = vsel %vm1416_vm6, %v4799_v13, -inf  ;;  %v2060_v52 = vsel %vm1223_vm5, %v4799_v13, -inf }
 0x23f   : > { %v1641_v9 = vsel %vm1223_vm5, %v4779_v39, -inf  ;;  %v1833_v42 = vsel %vm1416_vm6, %v4779_v39, -inf }
 0x240   : > { %v4761_v28 = vpop.f32.mrf.mxu1 }
 0x241   : > { %v1224_v8 = vsel %vm1223_vm5, %v4761_v28, -inf  ;;  %v1417_v47 = vsel %vm1416_vm6, %v4761_v28, -inf }
 0x242   : > { %1225 = vmax.xlane.f32.xlu1 %v1224_v8 }
 0x245   : > { %v4817_v4 = vpop.f32.mrf.mxu3 }
 0x246   : > { %v4789_v45 = vpop.f32.mrf.mxu2  ;;  %v2063_v30 = vsel %vm1223_vm5, %v4817_v4, -inf  ;;  %v2255_v33 = vsel %vm1416_vm6, %v4817_v4, -inf }
 0x247   : > { %v1836_v51 = vsel %vm1416_vm6, %v4789_v45, -inf  ;;  %v1644_v20 = vsel %vm1223_vm5, %v4789_v45, -inf }
 0x248   : > { %v4765_v48 = vpop.f32.mrf.mxu1 }
 0x249   : > { %v1227_v60 = vsel %vm1223_vm5, %v4765_v48, -inf  ;;  %v1420_v57 = vsel %vm1416_vm6, %v4765_v48, -inf }
 0x24a   : > { %1418 = vmax.xlane.f32.xlu1 %v1417_v47  ;;  %1228 = vmax.xlane.f32.xlu2 %v1227_v60 }
 0x24d   : > { %v4843_v59 = vpop.f32.mrf.mxu3 }
 0x24e   : > { %v4807_v19 = vpop.f32.mrf.mxu2  ;;  %v2258_v22 = vsel %vm1416_vm6, %v4843_v59, -inf  ;;  %v2066_v3 = vsel %vm1223_vm5, %v4843_v59, -inf }
 0x24f   : > { %v1839_v54 = vsel %vm1416_vm6, %v4807_v19, -inf  ;;  %v1647_v61 = vsel %vm1223_vm5, %v4807_v19, -inf }
 0x250   : > { %v4815_v5 = vpop.f32.mrf.mxu1 }
 0x251   : > { %v1230_v12 = vsel %vm1223_vm5, %v4815_v5, -inf  ;;  %v1423_v58 = vsel %vm1416_vm6, %v4815_v5, -inf }
 0x252   : > { %1421 = vmax.xlane.f32.xlu2 %v1420_v57 }
 0x253   : > { %v4771_v26 = vpop.f32.mrf.mxu0 }
 0x254   : > { %v2665_v0 = vsel %vm1416_vm6, %v4771_v26, -inf  ;;  %v2473_v10 = vsel %vm1223_vm5, %v4771_v26, -inf }
 0x255   : > { %2666 = vmax.xlane.f32.xlu1 %v2665_v0  ;;  %2474 = vmax.xlane.f32.xlu0 %v2473_v10  ;;  %v4889_v0 = vpop.f32.mrf.mxu3 }
 0x256   : > { %v4833_v32 = vpop.f32.mrf.mxu2 }
 0x257   : > { %v1650_v62 = vsel %vm1223_vm5, %v4833_v32, -inf  ;;  %v1842_v49 = vsel %vm1416_vm6, %v4833_v32, -inf }
 0x258   : > { %v4825_v56 = vpop.f32.mrf.mxu1 }
 0x259   : > { %v1426_v17 = vsel %vm1416_vm6, %v4825_v56, -inf  ;;  %v1233_v29 = vsel %vm1223_vm5, %v4825_v56, -inf }
 0x25b   : > { %v4781_v18 = vpop.f32.mrf.mxu0 }
 0x25c   : > { %v2476_v44 = vsel %vm1223_vm5, %v4781_v18, -inf  ;;  %v2668_v15 = vsel %vm1416_vm6, %v4781_v18, -inf }
 0x25d   : > { %1642 = vmax.xlane.f32.xlu1 %v1641_v9  ;;  %1834 = vmax.xlane.f32.xlu0 %v1833_v42 }
 0x25e   : > { %2477 = vmax.xlane.f32.xlu2 %v2476_v44  ;;  %v4853_v35 = vpop.f32.mrf.mxu2 }
 0x25f   : > { %v1845_v36 = vsel %vm1416_vm6, %v4853_v35, -inf  ;;  %v1653_v50 = vsel %vm1223_vm5, %v4853_v35, -inf }
 0x260   : > { %v4845_v40 = vpop.f32.mrf.mxu1 }
 0x261   : > { %v1429_v6 = vsel %vm1416_vm6, %v4845_v40, -inf  ;;  %v1236_v55 = vsel %vm1223_vm5, %v4845_v40, -inf }
 0x263   : > { %v4797_v11 = vpop.f32.mrf.mxu0 }
 0x264   : > { %v2671_v27 = vsel %vm1416_vm6, %v4797_v11, -inf  ;;  %v2479_v2 = vsel %vm1223_vm5, %v4797_v11, -inf }
 0x265   : > { %2250 = vmax.xlane.f32.xlu1 %v2249_v31  ;;  %2669 = vmax.xlane.f32.xlu0 %v2668_v15 }
 0x266   : > { %1837 = vmax.xlane.f32.xlu2 %v1836_v51  ;;  %v4863_v1 = vpop.f32.mrf.mxu2 }
 0x267   : > { %v1848_v63 = vsel %vm1416_vm6, %v4863_v1, -inf  ;;  %v1656_v24 = vsel %vm1223_vm5, %v4863_v1, -inf }
 0x268   : > { %v4861_v14 = vpop.f32.mrf.mxu1 }
 0x269   : > { %v1239_v37 = vsel %vm1223_vm5, %v4861_v14, -inf  ;;  %v1432_v60 = vsel %vm1416_vm6, %v4861_v14, -inf }
 0x26b   : > { %v4835_v43 = vpop.f32.mrf.mxu0 }
 0x26c   : > { %v2482_v46 = vsel %vm1223_vm5, %v4835_v43, -inf  ;;  %v2674_v16 = vsel %vm1416_vm6, %v4835_v43, -inf }
 0x26d   : > { %1645 = vmax.xlane.f32.xlu0 %v1644_v20  ;;  %2672 = vmax.xlane.f32.xlu1 %v2671_v27  ;;  %v675_v20 = vmul.f32 %v4458_v53, %v4175_v7 }
 0x26e   : > { %2253 = vmax.xlane.f32.xlu2 %v2252_v25  ;;  %v4879_v34 = vpop.f32.mrf.mxu2 }
 0x26f   : > { %v1659_v47 = vsel %vm1223_vm5, %v4879_v34, -inf }
 0x270   : > { %v4871_v23 = vpop.f32.mrf.mxu1 }
 0x271   : > { %v1435_v41 = vsel %vm1416_vm6, %v4871_v23, -inf  ;;  %v1242_v44 = vsel %vm1223_vm5, %v4871_v23, -inf }
 0x275   : > { %2061 = vmax.xlane.f32.xlu0 %v2060_v52  ;;  %1840 = vmax.xlane.f32.xlu1 %v1839_v54  ;;  %v676_v52 = vmul.f32 %v4458_v53, %v4194_v21  ;;  %v4904_v54 = vpop.f32.mrf.mxu3 }
 0x276   : > { %1648 = vmax.xlane.f32.xlu2 %v1647_v61 }
 0x277   : > { %v740_v7 = vpack.c.bf16 %v676_v52, %v676_v52 }
 0x278   : > { %v4881_v8 = vpop.f32.mrf.mxu1 }
 0x279   : > { %v1438_v57 = vsel %vm1416_vm6, %v4881_v8, -inf  ;;  %v1245_v42 = vsel %vm1223_vm5, %v4881_v8, -inf }
 0x27d   : > { %1231 = vmax.xlane.f32.xlu0 %v1230_v12  ;;  %2064 = vmax.xlane.f32.xlu1 %v2063_v30  ;;  %v739_v30 = vpack.c.bf16 %v675_v20, %v675_v20 }
 0x27e   : > { %2256 = vmax.xlane.f32.xlu2 %v2255_v33 }
 0x285   : > { %1424 = vmax.xlane.f32.xlu0 %v1423_v58  ;;  %1427 = vmax.xlane.f32.xlu1 %v1426_v17  ;;  %v2072_v58 = vsel %vm1223_vm5, %v4904_v54, -inf  ;;  %v1851_v17 = vsel %vm1416_vm6, %v4879_v34, -inf }
 0x286   : > { %1234 = vmax.xlane.f32.xlu2 %v1233_v29 }
 0x28d   : > { %1651 = vmax.xlane.f32.xlu1 %v1650_v62  ;;  %2480 = vmax.xlane.f32.xlu0 %v2479_v2  ;;  %v3225_v62 = vunpack.c.l.b16 %v739_v30  ;;  %v3226_v2 = vunpack.c.l.b16 %v740_v7 }
 0x28e   : > { %2483 = vmax.xlane.f32.xlu2 %v2482_v46  ;;  %v4915_v46 = vpop.f32.mrf.mxu2 }
 0x295   : > { %2259 = vmax.xlane.f32.xlu1 %v2258_v22  ;;  %2675 = vmax.xlane.f32.xlu0 %v2674_v16 }
 0x296   : > { %1430 = vmax.xlane.f32.xlu2 %v1429_v6  ;;  %v1854_v6 = vsel %vm1416_vm6, %v4915_v46, -inf }
 0x29d   : > { %1237 = vmax.xlane.f32.xlu1 %v1236_v55  ;;  %1843 = vmax.xlane.f32.xlu0 %v1842_v49  ;;  %v2069_v55 = vsel %vm1223_vm5, %v4889_v0, -inf  ;;  %v3265_v49 = vpack.c.b16 %v3226_v2, %v3225_v62 }
 0x29e   : > { %1846 = vmax.xlane.f32.xlu2 %v1845_v36 }
 0x2a5   : > { %1849 = vmax.xlane.f32.xlu1 %v1848_v63  ;;  %2067 = vmax.xlane.f32.xlu0 %v2066_v3  ;;  %v4928_v63 = vpop.f32.mrf.mxu0 }
 0x2a6   : > { %1240 = vmax.xlane.f32.xlu2 %v1239_v37 }
 0x2aa   : > { %v4891_v10 = vpop.xlane.xlu2 %2058 }
 0x2ad   : > { %1436 = vmax.xlane.f32.xlu1 %v1435_v41  ;;  %1654 = vmax.xlane.f32.xlu0 %v1653_v50 }
 0x2ae   : > { %1657 = vmax.xlane.f32.xlu2 %v1656_v24 }
 0x2b5   : > { %1660 = vmax.xlane.f32.xlu1 %v1659_v47  ;;  %1433 = vmax.xlane.f32.xlu0 %v1432_v60  ;;  %v1226_v9 = vpop.xlane.xlu1 %1225 }
 0x2b6   : > { %1439 = vmax.xlane.f32.xlu2 %v1438_v57  ;;  %v1248_v31 = vsub.f32 %v4761_v28, %v1226_v9 }
 0x2b8   : > { %v1256_v12 = vmul.f32 1.442695, %v1248_v31 }
 0x2bd   : > { %1246 = vmax.xlane.f32.xlu1 %v1245_v42  ;;  %1243 = vmax.xlane.f32.xlu0 %v1242_v44  ;;  %v1419_v15 = vpop.xlane.xlu1 %1418  ;;  %v1229_v51 = vpop.xlane.xlu2 %1228  ;;  %v2264_v42 = vsel %vm1416_vm6, %v4904_v54, -inf  ;;  %v2261_v44 = vsel %vm1416_vm6, %v4889_v0, -inf }
 0x2be   : > { %v1441_v27 = vsub.f32 %v4761_v28, %v1419_v15  ;;  %v1249_v25 = vsub.f32 %v4765_v48, %v1229_v51 }
 0x2c0   : > { %v1258_v61 = vmul.f32 1.442695, %v1249_v25  ;;  %v1449_v33 = vmul.f32 1.442695, %v1441_v27 }
 0x2c2   : > { %3826 = vpow2.f32 %v1258_v61  ;;  %v4952_v61 = vpop.f32.mrf.mxu0 }
 0x2c3   : > { %3828 = vpow2.f32 %v1256_v12 }
 0x2c4   : > { %3830 = vpow2.f32 %v1449_v33  ;;  %v1662_v33 = vsel %vm1223_vm5, %v4915_v46, -inf }
 0x2c5   : > { %2073 = vmax.xlane.f32.xlu1 %v2072_v58  ;;  %1852 = vmax.xlane.f32.xlu0 %v1851_v17  ;;  %v1422_v28 = vpop.xlane.xlu2 %1421  ;;  %v2488_v58 = vsel %vm1223_vm5, %v4952_v61, -inf  ;;  %v2081_v17 = vsub.f32 %v4757_v38, %v4891_v10 }
 0x2c6   : > { %v1442_v29 = vsub.f32 %v4765_v48, %v1422_v28 }
 0x2c8   : > { %v4910_v21 = vpop.xlane.xlu1 %2666  ;;  %v4912_v53 = vpop.xlane.xlu0 %2474  ;;  %v1451_v22 = vmul.f32 1.442695, %v1442_v29 }
 0x2c9   : > { %v4917_v16 = vpop.eup %3826  ;;  %v4967_v29 = vpop.f32.mrf.mxu3 }
 0x2ca   : > { %3832 = vpow2.f32 %v1451_v22  ;;  %v4923_v36 = vpop.eup %3828  ;;  %v1409_v3 = vpack.c.bf16 %v4917_v16, %v4917_v16 }
 0x2cb   : > { %v4925_v48 = vpop.eup %3830  ;;  %v1408_v24 = vpack.c.bf16 %v4923_v36, %v4923_v36 }
 0x2cc   : > { %v1633_v47 = vpack.c.bf16 %v4925_v48, %v4925_v48  ;;  %v2898_v9 = vunpack.c.l.b16 %v1409_v3  ;;  %v2075_v3 = vsel %vm1223_vm5, %v4967_v29, -inf }
 0x2cd   : > { %1855 = vmax.xlane.f32.xlu1 %v1854_v6  ;;  %2070 = vmax.xlane.f32.xlu0 %v2069_v55  ;;  %v2897_v31 = vunpack.c.l.b16 %v1408_v24  ;;  %v2089_v6 = vmul.f32 1.442695, %v2081_v17 }
 0x2ce   : > { %3321 = vrot.lane.b32.xlu2 %v3265_v49, %s4091_s10  ;;  %v2917_v15 = vunpack.c.l.b16 %v1633_v47  ;;  %v2485_v49 = vsel %vm1223_vm5, %v4928_v63, -inf }
 0x2cf   : > { %v2905_v20 = vpack.c.b16 %v2898_v9, %v2897_v31 }
 0x2d0   : > { %v4932_v37 = vpop.xlane.xlu1 %1642  ;;  %v4934_v41 = vpop.xlane.xlu0 %1834 }
 0x2d1   : > { %v4936_v50 = vpop.xlane.xlu2 %2477  ;;  %v4942_v60 = vpop.eup %3832 }
 0x2d2   : > { %v1634_v57 = vpack.c.bf16 %v4942_v60, %v4942_v60 }
 0x2d4   : > { %v2918_v51 = vunpack.c.l.b16 %v1634_v57 }
 0x2d5   : > { %2265 = vmax.xlane.f32.xlu1 %v2264_v42  ;;  %2262 = vmax.xlane.f32.xlu0 %v2261_v44  ;;  %v2680_v42 = vsel %vm1416_vm6, %v4952_v61, -inf  ;;  %v2267_v44 = vsel %vm1416_vm6, %v4967_v29, -inf }
 0x2d6   : > { %v2925_v27 = vpack.c.b16 %v2918_v51, %v2917_v15 }
 0x2d8   : > { %v2251_v25 = vpop.xlane.xlu1 %2250  ;;  %v4950_v52 = vpop.xlane.xlu0 %2669  ;;  %v3051_v30 = vsel %vm1223_vm5, %v2905_v20, %v2925_v27 }
 0x2d9   : > { %v4954_v12 = vpop.xlane.xlu2 %1837  ;;  %3377 = vmatmul.bf16.vlgmr.msrb.gmra.mxu1 %v3051_v30  ;;  %v2273_v62 = vsub.f32 %v4757_v38, %v2251_v25  ;;  %v4990_v20 = vpop.f32.mrf.mxu3 }
 0x2da   : > { %v4996_v30 = vpop.f32.mrf.mxu0 }
 0x2db   : > { %v2281_v10 = vmul.f32 1.442695, %v2273_v62  ;;  %7340 = vst [vmem:[#allocation5_spill] sm:$0xff] %v4996_v30 }
 0x2dd   : > { %1663 = vmax.xlane.f32.xlu0 %v1662_v33  ;;  %2489 = vmax.xlane.f32.xlu1 %v2488_v58 }
 0x2e0   : > { %v4963_v7 = vpop.xlane.xlu0 %1645  ;;  %v4965_v28 = vpop.xlane.xlu1 %2672 }
 0x2e1   : > { %v2254_v2 = vpop.xlane.xlu2 %2253 }
 0x2e2   : > { %v2274_v22 = vsub.f32 %v4799_v13, %v2254_v2 }
 0x2e4   : > { %v2283_v55 = vmul.f32 1.442695, %v2274_v22  ;;  %v2078_v22 = vsel %vm1223_vm5, %v4990_v20, -inf }
 0x2e5   : > { %2486 = vmax.xlane.f32.xlu0 %v2485_v49  ;;  %2076 = vmax.xlane.f32.xlu1 %v2075_v3 }
 0x2e6   : > { %3834 = vpow2.f32 %v2283_v55  ;;  %v2491_v55 = vsel %vm1223_vm5, %v4996_v30, -inf }
 0x2e7   : > { %3836 = vpow2.f32 %v2089_v6  ;;  %v1665_v6 = vsub.f32 %v4779_v39, %v4932_v37 }
 0x2e8   : > { %v2062_v24 = vpop.xlane.xlu0 %2061  ;;  %v4975_v47 = vpop.xlane.xlu1 %1840  ;;  %3838 = vpow2.f32 %v2281_v10  ;;  %v2677_v10 = vsel %vm1416_vm6, %v4928_v63, -inf }
 0x2e9   : > { %v2082_v38 = vsub.f32 %v4799_v13, %v2062_v24  ;;  %v4978_v57 = vpop.xlane.xlu2 %1648 }
 0x2eb   : > { %v2091_v9 = vmul.f32 1.442695, %v2082_v38 }
 0x2ec   : > { %v4984_v31 = vpop.eup %3834 }
 0x2ed   : > { %7337 = vst [vmem:[#allocation2_spill] sm:$0xff] %v4984_v31  ;;  %3840 = vpow2.f32 %v2091_v9  ;;  %2681 = vmax.xlane.f32.xlu0 %v2680_v42  ;;  %2268 = vmax.xlane.f32.xlu1 %v2267_v44  ;;  %v4986_v15 = vpop.eup %3836  ;;  %v2466_v13 = vpack.c.bf16 %v4984_v31, %v4984_v31  ;;  %v1673_v44 = vmul.f32 1.442695, %v1665_v6 }
 0x2ee   : > { %7338 = vst [vmem:[#allocation3_spill] sm:$0xff] %v4986_v15  ;;  %v4988_v51 = vpop.eup %3838  ;;  %v2241_v58 = vpack.c.bf16 %v4986_v15, %v4986_v15 }
 0x2ef   : > { %7339 = vst [vmem:[#allocation4_spill] sm:$0xff] %v4988_v51  ;;  %v2465_v17 = vpack.c.bf16 %v4988_v51, %v4988_v51  ;;  %v2998_v3 = vunpack.c.l.b16 %v2466_v13 }
 0x2f0   : > { %v1232_v27 = vpop.xlane.xlu0 %1231  ;;  %v4994_v25 = vpop.xlane.xlu1 %2064  ;;  %v2977_v24 = vunpack.c.l.b16 %v2241_v58 }
 0x2f1   : > { %v4998_v33 = vpop.xlane.xlu2 %2256  ;;  %v1250_v2 = vsub.f32 %v4815_v5, %v1232_v27  ;;  %v2997_v9 = vunpack.c.l.b16 %v2465_v17 }
 0x2f3   : > { %v5004_v62 = vpop.eup %3840  ;;  %v1260_v42 = vmul.f32 1.442695, %v1250_v2  ;;  %v3005_v31 = vpack.c.b16 %v2998_v3, %v2997_v9  ;;  %v2270_v2 = vsel %vm1416_vm6, %v4990_v20, -inf }
 0x2f4   : > { %7341 = vst [vmem:[#allocation6_spill] sm:$0xff] %v5004_v62  ;;  %v2242_v49 = vpack.c.bf16 %v5004_v62, %v5004_v62 }
 0x2f5   : > { %2079 = vmax.xlane.f32.xlu0 %v2078_v22  ;;  %2492 = vmax.xlane.f32.xlu1 %v2491_v55  ;;  %3842 = vpow2.f32 %v1260_v42 }
 0x2f6   : > { %v2978_v38 = vunpack.c.l.b16 %v2242_v49  ;;  %3844 = vpow2.f32 %v1673_v44 }
 0x2f7   : > { %2678 = vmax.xlane.f32.xlu2 %v2677_v10 }
 0x2f8   : > { %v1425_v27 = vpop.xlane.xlu0 %1424  ;;  %v1428_v37 = vpop.xlane.xlu1 %1427  ;;  %v2985_v15 = vpack.c.b16 %v2978_v38, %v2977_v24 }
 0x2f9   : > { %v1443_v51 = vsub.f32 %v4815_v5, %v1425_v27  ;;  %v1444_v62 = vsub.f32 %v4825_v56, %v1428_v37  ;;  %v1235_v13 = vpop.xlane.xlu2 %1234  ;;  %v1272_v5 = vsel %vm1223_vm5, %v4923_v36, 0.0 }
 0x2fa   : > { %v1251_v22 = vsub.f32 %v4825_v56, %v1235_v13  ;;  %v3083_v55 = vsel %vm1223_vm5, %v2985_v15, %v3005_v31 }
 0x2fb   : > { %v1453_v58 = vmul.f32 1.442695, %v1443_v51  ;;  %v1455_v49 = vmul.f32 1.442695, %v1444_v62  ;;  %3435 = vmatmul.bf16.vlgmr.msrb.gmra.mxu3 %v3083_v55  ;;  %v5029_v15 = vpop.eup %3842  ;;  %v5031_v51 = vpop.f32.mrf.mxu0 }
 0x2fc   : > { %v1262_v17 = vmul.f32 1.442695, %v1251_v22  ;;  %7342 = vst [vmem:[#allocation7_spill] sm:$0xff] %v5031_v51  ;;  %v5035_v6 = vpop.eup %3844  ;;  %v2494_v36 = vsel %vm1223_vm5, %v5031_v51, -inf  ;;  %v1410_v24 = vpack.c.bf16 %v5029_v15, %v5029_v15 }
 0x2fd   : > { %3846 = vpow2.f32 %v1453_v58  ;;  %2271 = vmax.xlane.f32.xlu0 %v2270_v2  ;;  %v1689_v44 = vsel %vm1223_vm5, %v5035_v6, 0.0 }
 0x2fe   : > { %3848 = vpow2.f32 %v1455_v49  ;;  %v2899_v58 = vunpack.c.l.b16 %v1410_v24  ;;  %v2275_v24 = vsub.f32 %v4817_v4, %v4998_v33 }
 0x2ff   : > { %3850 = vpow2.f32 %v1262_v17  ;;  %1273 = vadd.xlane.f32.xlu2 %v1272_v5 }
 0x300   : > { %v5025_v56 = vpop.xlane.xlu1 %1651  ;;  %v5027_v31 = vpop.xlane.xlu0 %2480 }
 0x301   : > { %v5033_v62 = vpop.xlane.xlu2 %2483 }
 0x303   : > { %v3847_v3 = vpop.eup %3846 }
 0x304   : > { %v5037_v10 = vpop.eup %3848  ;;  %v1635_v38 = vpack.c.bf16 %v3847_v3, %v3847_v3 }
 0x305   : > { %v5043_v9 = vpop.eup %3850  ;;  %2495 = vmax.xlane.f32.xlu0 %v2494_v36  ;;  %v1636_v42 = vpack.c.bf16 %v5037_v10, %v5037_v10 }
 0x306   : > { %v1411_v27 = vpack.c.bf16 %v5043_v9, %v5043_v9  ;;  %v2919_v37 = vunpack.c.l.b16 %v1635_v38 }
 0x307   : > { %1690 = vadd.xlane.f32.xlu2 %v1689_v44  ;;  %v2920_v13 = vunpack.c.l.b16 %v1636_v42  ;;  %v2083_v42 = vsub.f32 %v4817_v4, %v4994_v25  ;;  %v2498_v25 = vsub.f32 %v4781_v18, %v4936_v50 }
 0x308   : > { %v2260_v22 = vpop.xlane.xlu1 %2259  ;;  %v5051_v55 = vpop.xlane.xlu0 %2675  ;;  %v2900_v49 = vunpack.c.l.b16 %v1411_v27 }
 0x309   : > { %v1431_v17 = vpop.xlane.xlu2 %1430  ;;  %v2926_v2 = vpack.c.b16 %v2920_v13, %v2919_v37  ;;  %v2276_v51 = vsub.f32 %v4843_v59, %v2260_v22  ;;  %v2093_v37 = vmul.f32 1.442695, %v2083_v42  ;;  %v2285_v13 = vmul.f32 1.442695, %v2275_v24 }
 0x30a   : > { %v2906_v5 = vpack.c.b16 %v2900_v49, %v2899_v58  ;;  %v2690_v58 = vsub.f32 %v4781_v18, %v4950_v52  ;;  %v2497_v52 = vsub.f32 %v4771_v26, %v4912_v53  ;;  %v1445_v53 = vsub.f32 %v4845_v40, %v1431_v17 }
 0x30b   : > { %v2287_v27 = vmul.f32 1.442695, %v2276_v51 }
 0x30c   : > { %v3055_v36 = vsel %vm1223_vm5, %v2906_v5, %v2926_v2  ;;  %v2699_v33 = vmul.f32 1.442695, %v2690_v58  ;;  %v2507_v5 = vmul.f32 1.442695, %v2498_v25  ;;  %v2505_v18 = vmul.f32 1.442695, %v2497_v52 }
 0x30d   : > { %3382 = vmatmul.bf16.gmra.mxu1 %v3055_v36  ;;  %3852 = vpow2.f32 %v2287_v27 }
 0x30e   : > { %1475 = vrot.lane.b32.xlu1 %v4942_v60, %s4091_s10  ;;  %v2689_v60 = vsub.f32 %v4771_v26, %v4910_v21  ;;  %3854 = vpow2.f32 %v2093_v37  ;;  %v2691_v37 = vsub.f32 %v4797_v11, %v4965_v28 }
 0x30f   : > { %3856 = vpow2.f32 %v2285_v13 }
 0x310   : > { %v1238_v30 = vpop.xlane.xlu1 %1237  ;;  %v5057_v38 = vpop.xlane.xlu0 %1843  ;;  %v2697_v51 = vmul.f32 1.442695, %v2689_v60 }
 0x311   : > { %v5061_v44 = vpop.xlane.xlu2 %1846  ;;  %v1252_v13 = vsub.f32 %v4845_v40, %v1238_v30  ;;  %v2701_v30 = vmul.f32 1.442695, %v2691_v37 }
 0x313   : > { %v5078_v36 = vpop.eup %3852  ;;  %v1264_v52 = vmul.f32 1.442695, %v1252_v13 }
 0x314   : > { %v5080_v42 = vpop.eup %3854  ;;  %v2468_v27 = vpack.c.bf16 %v5078_v36, %v5078_v36 }
 0x315   : > { %7343 = vst [vmem:[#allocation8_spill] sm:$0xff] %v5080_v42  ;;  %v2243_v58 = vpack.c.bf16 %v5080_v42, %v5080_v42 }
 0x318   : > { %v5069_v22 = vpop.xlane.xlu1 %1849  ;;  %v2068_v49 = vpop.xlane.xlu0 %2067 }
 0x319   : > { %v2084_v2 = vsub.f32 %v4843_v59, %v2068_v49  ;;  %v1241_v4 = vpop.xlane.xlu2 %1240  ;;  %1473 = vrot.lane.b32.xlu0 %v4925_v48, %s4091_s10  ;;  %v5083_v59 = vpop.eup %3856 }
 0x31a   : > { %v1253_v48 = vsub.f32 %v4861_v14, %v1241_v4  ;;  %v2467_v17 = vpack.c.bf16 %v5083_v59, %v5083_v59  ;;  %v3000_v4 = vunpack.c.l.b16 %v2468_v27  ;;  %v2500_v27 = vsub.f32 %v4835_v43, %v5033_v62 }
 0x31b   : > { %v2095_v21 = vmul.f32 1.442695, %v2084_v2  ;;  %v1457_v2 = vmul.f32 1.442695, %v1445_v53  ;;  %v2499_v53 = vsub.f32 %v4797_v11, %v5027_v31 }
 0x31c   : > { %v1266_v49 = vmul.f32 1.442695, %v1253_v48 }
 0x31d   : > { %3858 = vpow2.f32 %v2095_v21  ;;  %v2692_v21 = vsub.f32 %v4835_v43, %v5051_v55 }
 0x31e   : > { %3860 = vpow2.f32 %v2699_v33 }
 0x31f   : > { %1477 = vrot.lane.b32.xlu2 %v3847_v3, %s4091_s10  ;;  %3862 = vpow2.f32 %v2697_v51  ;;  %v1666_v3 = vsub.f32 %v4789_v45, %v4963_v7  ;;  %v2979_v51 = vunpack.c.l.b16 %v2243_v58  ;;  %v2703_v43 = vmul.f32 1.442695, %v2692_v21 }
 0x320   : > { %v5086_v50 = vpop.xlane.xlu1 %1436  ;;  %v5088_v26 = vpop.xlane.xlu0 %1654  ;;  %3864 = vpow2.f32 %v2507_v5 }
 0x321   : > { %v5091_v24 = vpop.xlane.xlu2 %1657  ;;  %3866 = vpow2.f32 %v2505_v18  ;;  %v1675_v40 = vmul.f32 1.442695, %v1666_v3  ;;  %v2999_v18 = vunpack.c.l.b16 %v2467_v17 }
 0x322   : > { %3868 = vpow2.f32 %v1266_v49 }
 0x323   : > { %v5104_v60 = vpop.eup %3858  ;;  %3870 = vpow2.f32 %v1457_v2  ;;  %v2509_v2 = vmul.f32 1.442695, %v2499_v53 }
 0x324   : > { %7344 = vst [vmem:[#allocation9_spill] sm:$0xff] %v5104_v60  ;;  %v5106_v25 = vpop.eup %3860  ;;  %v2244_v7 = vpack.c.bf16 %v5104_v60, %v5104_v60  ;;  %3872 = vpow2.f32 %v1264_v52 }
 0x325   : > { %v5110_v28 = vpop.eup %3862  ;;  %v2882_v48 = vpack.c.bf16 %v5106_v25, %v5106_v25  ;;  %3874 = vpow2.f32 %v1675_v40 }
 0x326   : > { %v5112_v33 = vpop.eup %3864  ;;  %v2980_v5 = vunpack.c.l.b16 %v2244_v7  ;;  %v3006_v7 = vpack.c.b16 %v3000_v4, %v2999_v18  ;;  %v2881_v42 = vpack.c.bf16 %v5110_v28, %v5110_v28  ;;  %3876 = vpow2.f32 %v2701_v30 }
 0x327   : > { %7345 = vst [vmem:[#allocation10_spill] sm:$0xff] %v5112_v33  ;;  %v5124_v13 = vpop.eup %3866  ;;  %v2658_v11 = vpack.c.bf16 %v5112_v33, %v5112_v33  ;;  %v2511_v4 = vmul.f32 1.442695, %v2500_v27 }
 0x328   : > { %v5122_v3 = vpop.xlane.xlu1 %1660  ;;  %v1434_v37 = vpop.xlane.xlu0 %1433  ;;  %v2986_v17 = vpack.c.b16 %v2980_v5, %v2979_v51  ;;  %v2657_v49 = vpack.c.bf16 %v5124_v13, %v5124_v13  ;;  %v3037_v18 = vunpack.c.l.b16 %v2881_v42 }
 0x329   : > { %v1446_v55 = vsub.f32 %v4861_v14, %v1434_v37  ;;  %v1440_v58 = vpop.xlane.xlu2 %1439  ;;  %v3038_v14 = vunpack.c.l.b16 %v2882_v48  ;;  %v5134_v51 = vpop.eup %3868  ;;  %v3018_v5 = vunpack.c.l.b16 %v2658_v11  ;;  %v1447_v11 = vsub.f32 %v4871_v23, %v5086_v50 }
 0x32a   : > { %v3087_v62 = vsel %vm1223_vm5, %v2986_v17, %v3006_v7  ;;  %v5136_v37 = vpop.eup %3870  ;;  %v1448_v21 = vsub.f32 %v4881_v8, %v1440_v58  ;;  %v3017_v53 = vunpack.c.l.b16 %v2657_v49  ;;  %v1413_v30 = vpack.c.bf16 %v5134_v51, %v5134_v51 }
 0x32b   : > { %v1459_v31 = vmul.f32 1.442695, %v1446_v55  ;;  %3440 = vmatmul.bf16.gmra.mxu3 %v3087_v62  ;;  %v5138_v52 = vpop.eup %3872  ;;  %v3045_v17 = vpack.c.b16 %v3038_v14, %v3037_v18 }
 0x32c   : > { %v5145_v7 = vpop.eup %3874  ;;  %v3025_v58 = vpack.c.b16 %v3018_v5, %v3017_v53  ;;  %v1412_v62 = vpack.c.bf16 %v5138_v52, %v5138_v52  ;;  %v1463_v14 = vmul.f32 1.442695, %v1448_v21  ;;  %v2902_v50 = vunpack.c.l.b16 %v1413_v30 }
 0x32d   : > { %3878 = vpow2.f32 %v1459_v31  ;;  %v1637_v31 = vpack.c.bf16 %v5136_v37, %v5136_v37  ;;  %v1692_v53 = vsel %vm1223_vm5, %v5145_v7, 0.0 }
 0x32e   : > { %3880 = vpow2.f32 %v2703_v43  ;;  %v5149_v43 = vpop.eup %3876  ;;  %v2901_v21 = vunpack.c.l.b16 %v1412_v62 }
 0x32f   : > { %3882 = vpow2.f32 %v2509_v2  ;;  %v2883_v62 = vpack.c.bf16 %v5149_v43, %v5149_v43 }
 0x330   : > { %v1247_v55 = vpop.xlane.xlu1 %1246  ;;  %v1244_v40 = vpop.xlane.xlu0 %1243  ;;  %3884 = vpow2.f32 %v2511_v4  ;;  %v3099_v4 = vsel %vm1223_vm5, %v3025_v58, %v3045_v17  ;;  %v2907_v58 = vpack.c.b16 %v2902_v50, %v2901_v21 }
 0x331   : > { %v1255_v48 = vsub.f32 %v4881_v8, %v1247_v55  ;;  %v1254_v42 = vsub.f32 %v4871_v23, %v1244_v40  ;;  %v3322_v27 = vpop.permute.xlu2 %3321  ;;  %v1461_v55 = vmul.f32 1.442695, %v1447_v11  ;;  %v1667_v11 = vsub.f32 %v4807_v19, %v4978_v57 }
 0x332   : > { %3463 = vmatpush.bf16.msra.mxu0 %v3322_v27 }
 0x333   : > { %v1270_v49 = vmul.f32 1.442695, %v1255_v48  ;;  %v1268_v8 = vmul.f32 1.442695, %v1254_v42  ;;  %v5155_v2 = vpop.eup %3878  ;;  %v2921_v48 = vunpack.c.l.b16 %v1637_v31  ;;  %v1677_v50 = vmul.f32 1.442695, %v1667_v11 }
 0x334   : > { %v5158_v18 = vpop.eup %3880  ;;  %v1638_v23 = vpack.c.bf16 %v5155_v2, %v5155_v2 }
 0x335   : > { %3886 = vpow2.f32 %v1270_v49  ;;  %3464 = vmatmul.bf16.vlgmr.msra.gmra.mxu0 %v3099_v4  ;;  %v5162_v5 = vpop.eup %3882  ;;  %v2884_v30 = vpack.c.bf16 %v5158_v18, %v5158_v18 }
 0x336   : > { %7346 = vst [vmem:[#allocation11_spill] sm:$0xff] %v5162_v5  ;;  %3888 = vpow2.f32 %v1268_v8  ;;  %v5164_v40 = vpop.eup %3884  ;;  %v2922_v17 = vunpack.c.l.b16 %v1638_v23  ;;  %v2659_v8 = vpack.c.bf16 %v5162_v5, %v5162_v5  ;;  %v1278_v5 = vsel %vm1223_vm5, %v5029_v15, 0.0 }
 0x337   : > { %7347 = vst [vmem:[#allocation12_spill] sm:$0xff] %v5164_v40  ;;  %3890 = vpow2.f32 %v1463_v14  ;;  %v2660_v31 = vpack.c.bf16 %v5164_v40, %v5164_v40  ;;  %v3040_v57 = vunpack.c.l.b16 %v2884_v30  ;;  %v1858_v40 = vsub.f32 %v4789_v45, %v4954_v12 }
 0x338   : > { %v2074_v42 = vpop.xlane.xlu1 %2073  ;;  %v5168_v27 = vpop.xlane.xlu0 %1852  ;;  %1693 = vadd.xlane.f32.xlu1 %v1692_v53  ;;  %v2927_v49 = vpack.c.b16 %v2922_v17, %v2921_v48  ;;  %3892 = vpow2.f32 %v1461_v55  ;;  %v1668_v55 = vsub.f32 %v4833_v32, %v5025_v56  ;;  %v3019_v21 = vunpack.c.l.b16 %v2659_v8 }
 0x339   : > { %v3020_v48 = vunpack.c.l.b16 %v2660_v31  ;;  %v3039_v17 = vunpack.c.l.b16 %v2883_v62  ;;  %v1857_v31 = vsub.f32 %v4779_v39, %v4934_v41  ;;  %3894 = vpow2.f32 %v1677_v50 }
 0x33a   : > { %v3059_v4 = vsel %vm1223_vm5, %v2907_v58, %v2927_v49  ;;  %v1679_v15 = vmul.f32 1.442695, %v1668_v55  ;;  %v2086_v62 = vsub.f32 %v4904_v54, %v2074_v42  ;;  %v1867_v33 = vmul.f32 1.442695, %v1858_v40 }
 0x33b   : > { %v5180_v14 = vpop.eup %3886  ;;  %3387 = vmatmul.bf16.vlgmr.msrb.gmra.mxu2 %v3059_v4  ;;  %v3046_v8 = vpack.c.b16 %v3040_v57, %v3039_v17  ;;  %v1275_v4 = vsel %vm1223_vm5, %v4917_v16, 0.0  ;;  %v3026_v60 = vpack.c.b16 %v3020_v48, %v3019_v21  ;;  %v1865_v17 = vmul.f32 1.442695, %v1857_v31 }
 0x33c   : > { %v5183_v23 = vpop.eup %3888  ;;  %v1415_v30 = vpack.c.bf16 %v5180_v14, %v5180_v14  ;;  %3896 = vpow2.f32 %v1679_v15  ;;  %v2099_v55 = vmul.f32 1.442695, %v2086_v62  ;;  %v1281_v16 = vsel %vm1223_vm5, %v5043_v9, 0.0 }
 0x33d   : > { %v5185_v53 = vpop.eup %3890  ;;  %v1414_v58 = vpack.c.bf16 %v5183_v23, %v5183_v23  ;;  %v3103_v50 = vsel %vm1223_vm5, %v3026_v60, %v3046_v8  ;;  %3898 = vpow2.f32 %v1867_v33  ;;  %v1860_v62 = vsub.f32 %v4833_v32, %v5057_v38 }
 0x33e   : > { %v5197_v11 = vpop.eup %3892  ;;  %v1640_v12 = vpack.c.bf16 %v5185_v53, %v5185_v53  ;;  %v2904_v39 = vunpack.c.l.b16 %v1415_v30  ;;  %v1825_v32 = vpack.c.bf16 %v5035_v6, %v5035_v6 }
 0x33f   : > { %v2903_v57 = vunpack.c.l.b16 %v1414_v58  ;;  %v3895_v42 = vpop.eup %3894 }
 0x340   : > { %v5199_v49 = vpop.xlane.xlu1 %1855  ;;  %v2071_v56 = vpop.xlane.xlu0 %2070  ;;  %1279 = vadd.xlane.f32.xlu1 %v1278_v5  ;;  %v1639_v5 = vpack.c.bf16 %v5197_v11, %v5197_v11  ;;  %v1695_v31 = vsel %vm1223_vm5, %v3895_v42, 0.0 }
 0x341   : > { %v2085_v45 = vsub.f32 %v4889_v0, %v2071_v56  ;;  %v2924_v56 = vunpack.c.l.b16 %v1640_v12  ;;  %v2908_v40 = vpack.c.b16 %v2904_v39, %v2903_v57  ;;  %v1826_v57 = vpack.c.bf16 %v5145_v7, %v5145_v7 }
 0x342   : > { %v2923_v21 = vunpack.c.l.b16 %v1639_v5  ;;  %v3897_v12 = vpop.eup %3896 }
 0x343   : > { %1276 = vadd.xlane.f32.xlu0 %v1275_v4  ;;  %v2097_v41 = vmul.f32 1.442695, %v2085_v45  ;;  %v5218_v15 = vpop.eup %3898  ;;  %v1698_v39 = vsel %vm1223_vm5, %v3897_v12, 0.0 }
 0x344   : > { %v2928_v8 = vpack.c.b16 %v2924_v56, %v2923_v21  ;;  %v2050_v38 = vpack.c.bf16 %v5218_v15, %v5218_v15 }
 0x345   : > { %3469 = vmatmul.bf16.gmra.mxu0 %v3103_v50  ;;  %3900 = vpow2.f32 %v2097_v41  ;;  %v1828_v41 = vpack.c.bf16 %v3897_v12, %v3897_v12 }
 0x346   : > { %3902 = vpow2.f32 %v1865_v17  ;;  %v3063_v9 = vsel %vm1223_vm5, %v2908_v40, %v2928_v8  ;;  %v2938_v40 = vunpack.c.l.b16 %v1826_v57  ;;  %v2937_v8 = vunpack.c.l.b16 %v1825_v32 }
 0x347   : > { %3904 = vpow2.f32 %v2099_v55  ;;  %v5243_v7 = vunpack.c.l.b16 %v1828_v41  ;;  %v1669_v32 = vsub.f32 %v4853_v35, %v5088_v26  ;;  %v1861_v26 = vsub.f32 %v4853_v35, %v5061_v44 }
 0x348   : > { %1282 = vadd.xlane.f32.xlu2 %v1281_v16  ;;  %v2266_v48 = vpop.xlane.xlu1 %2265  ;;  %v2263_v58 = vpop.xlane.xlu0 %2262 }
 0x349   : > { %v2278_v30 = vsub.f32 %v4904_v54, %v2266_v48  ;;  %v2277_v60 = vsub.f32 %v4889_v0, %v2263_v58  ;;  %v1827_v54 = vpack.c.bf16 %v3895_v42, %v3895_v42  ;;  %v1859_v0 = vsub.f32 %v4807_v19, %v4975_v47 }
 0x34a   : > { %v1871_v19 = vmul.f32 1.442695, %v1860_v62 }
 0x34b   : > { %v2291_v45 = vmul.f32 1.442695, %v2278_v30  ;;  %v2289_v33 = vmul.f32 1.442695, %v2277_v60  ;;  %1696 = vadd.xlane.f32.xlu0 %v1695_v31  ;;  %3392 = vmatmul.bf16.gmra.mxu2 %v3063_v9  ;;  %v5222_v4 = vpop.eup %3900  ;;  %v5241_v56 = vunpack.c.l.b16 %v1827_v54  ;;  %v1869_v55 = vmul.f32 1.442695, %v1859_v0 }
 0x34c   : > { %v5226_v5 = vpop.eup %3902  ;;  %v2245_v47 = vpack.c.bf16 %v5222_v4, %v5222_v4  ;;  %v2958_v30 = vunpack.c.l.b16 %v2050_v38  ;;  %v2945_v9 = vpack.c.b16 %v2938_v40, %v2937_v8 }
 0x34d   : > { %3906 = vpow2.f32 %v2291_v45  ;;  %v5231_v50 = vpop.eup %3904  ;;  %v2049_v6 = vpack.c.bf16 %v5226_v5, %v5226_v5  ;;  %v2946_v48 = vpack.c.b16 %v5243_v7, %v5241_v56 }
 0x34e   : > { %3908 = vpow2.f32 %v2289_v33  ;;  %v2246_v21 = vpack.c.bf16 %v5231_v50, %v5231_v50  ;;  %v2981_v45 = vunpack.c.l.b16 %v2245_v47 }
 0x34f   : > { %3910 = vpow2.f32 %v1871_v19  ;;  %v2957_v12 = vunpack.c.l.b16 %v2049_v6  ;;  %v1670_v19 = vsub.f32 %v4863_v1, %v5091_v24  ;;  %v1862_v24 = vsub.f32 %v4863_v1, %v5069_v22 }
 0x350   : > { %1699 = vadd.xlane.f32.xlu2 %v1698_v39  ;;  %v5237_v17 = vpop.xlane.xlu0 %1663  ;;  %v2490_v42 = vpop.xlane.xlu1 %2489  ;;  %3912 = vpow2.f32 %v1869_v55  ;;  %v2982_v62 = vunpack.c.l.b16 %v2246_v21 }
 0x351   : > { %v2965_v57 = vpack.c.b16 %v2958_v30, %v2957_v12  ;;  %v1683_v30 = vmul.f32 1.442695, %v1670_v19  ;;  %v1875_v44 = vmul.f32 1.442695, %v1862_v24 }
 0x352   : > { %v2987_v39 = vpack.c.b16 %v2982_v62, %v2981_v45  ;;  %v2502_v45 = vsub.f32 %v4952_v61, %v2490_v42 }
 0x353   : > { %v5245_v16 = vpop.eup %3906  ;;  %v3067_v47 = vsel %vm1223_vm5, %v2945_v9, %v2965_v57  ;;  %v1873_v9 = vmul.f32 1.442695, %v1861_v26 }
 0x354   : > { %v5253_v58 = vpop.eup %3908  ;;  %v2470_v60 = vpack.c.bf16 %v5245_v16, %v5245_v16  ;;  %v2515_v62 = vmul.f32 1.442695, %v2502_v45 }
 0x355   : > { %v2469_v31 = vpack.c.bf16 %v5253_v58, %v5253_v58  ;;  %v5263_v38 = vpop.eup %3910 }
 0x356   : > { %v3002_v33 = vunpack.c.l.b16 %v2470_v60  ;;  %v5269_v6 = vpop.eup %3912  ;;  %v2052_v21 = vpack.c.bf16 %v5263_v38, %v5263_v38 }
 0x357   : > { %v3001_v54 = vunpack.c.l.b16 %v2469_v31  ;;  %v2051_v8 = vpack.c.bf16 %v5269_v6, %v5269_v6 }
 0x358   : > { %v2487_v0 = vpop.xlane.xlu0 %2486  ;;  %v2077_v40 = vpop.xlane.xlu1 %2076 }
 0x359   : > { %1481 = vrot.lane.b32.xlu1 %v5136_v37, %s4091_s10  ;;  %v3007_v41 = vpack.c.b16 %v3002_v33, %v3001_v54  ;;  %v1681_v37 = vmul.f32 1.442695, %v1669_v32  ;;  %v2501_v31 = vsub.f32 %v4928_v63, %v2487_v0  ;;  %v2960_v33 = vunpack.c.l.b16 %v2052_v21 }
 0x35a   : > { %v2959_v12 = vunpack.c.l.b16 %v2051_v8  ;;  %v2087_v0 = vsub.f32 %v4967_v29, %v2077_v40  ;;  %v1671_v40 = vsub.f32 %v4879_v34, %v5122_v3  ;;  %v1864_v3 = vsub.f32 %v4915_v46, %v5199_v49 }
 0x35b   : > { %v3091_v55 = vsel %vm1223_vm5, %v2987_v39, %v3007_v41  ;;  %3406 = vmatmul.bf16.vlgmr.msra.gmra.mxu2 %v3067_v47  ;;  %3914 = vpow2.f32 %v1681_v37 }
 0x35c   : > { %3445 = vmatmul.bf16.gmra.mxu3 %v3091_v55  ;;  %3916 = vpow2.f32 %v1683_v30  ;;  %v2966_v1 = vpack.c.b16 %v2960_v33, %v2959_v12  ;;  %v1685_v8 = vmul.f32 1.442695, %v1671_v40  ;;  %v1879_v49 = vmul.f32 1.442695, %v1864_v3 }
 0x35d   : > { %3918 = vpow2.f32 %v1873_v9  ;;  %v1863_v9 = vsub.f32 %v4879_v34, %v5168_v27 }
 0x35e   : > { %3920 = vpow2.f32 %v1875_v44  ;;  %v3071_v19 = vsel %vm1223_vm5, %v2946_v48, %v2966_v1 }
 0x35f   : > { %1479 = vrot.lane.b32.xlu0 %v5037_v10, %s4091_s10  ;;  %v2513_v10 = vmul.f32 1.442695, %v2501_v31 }
 0x360   : > { %v2682_v60 = vpop.xlane.xlu0 %2681  ;;  %v2269_v54 = vpop.xlane.xlu1 %2268 }
 0x361   : > { %v2694_v35 = vsub.f32 %v4952_v61, %v2682_v60  ;;  %v5284_v57 = vpop.eup %3914  ;;  %3922 = vpow2.f32 %v2513_v10  ;;  %v2279_v61 = vsub.f32 %v4967_v29, %v2269_v54  ;;  %v2101_v29 = vmul.f32 1.442695, %v2087_v0 }
 0x362   : > { %v5289_v39 = vpop.eup %3916  ;;  %3924 = vpow2.f32 %v2515_v62  ;;  %v1877_v54 = vmul.f32 1.442695, %v1863_v9 }
 0x363   : > { %v2707_v22 = vmul.f32 1.442695, %v2694_v35  ;;  %v1830_v37 = vpack.c.bf16 %v5289_v39, %v5289_v39  ;;  %v5304_v21 = vpop.eup %3918  ;;  %v2293_v56 = vmul.f32 1.442695, %v2279_v61 }
 0x364   : > { %v5306_v26 = vpop.eup %3920  ;;  %v2053_v10 = vpack.c.bf16 %v5304_v21, %v5304_v21 }
 0x365   : > { %3926 = vpow2.f32 %v2707_v22  ;;  %v2942_v30 = vunpack.c.l.b16 %v1830_v37  ;;  %v2054_v35 = vpack.c.bf16 %v5306_v26, %v5306_v26 }
 0x367   : > { %v5310_v24 = vpop.eup %3922  ;;  %v2962_v1 = vunpack.c.l.b16 %v2054_v35 }
 0x368   : > { %1485 = vrot.lane.b32.xlu2 %v5197_v11, %s4091_s10  ;;  %v2080_v42 = vpop.xlane.xlu0 %2079  ;;  %v1829_v11 = vpack.c.bf16 %v5284_v57, %v5284_v57  ;;  %v5314_v60 = vpop.eup %3924 }
 0x369   : > { %v2088_v41 = vsub.f32 %v4990_v20, %v2080_v42  ;;  %v2662_v34 = vpack.c.bf16 %v5314_v60, %v5314_v60 }
 0x36a   : > { %v2679_v32 = vpop.xlane.xlu2 %2678  ;;  %v2941_v48 = vunpack.c.l.b16 %v1829_v11 }
 0x36b   : > { %v2103_v47 = vmul.f32 1.442695, %v2088_v41  ;;  %v2693_v55 = vsub.f32 %v4928_v63, %v2679_v32  ;;  %3411 = vmatmul.bf16.gmra.mxu2 %v3071_v19  ;;  %v1672_v63 = vsub.f32 %v4915_v46, %v5237_v17  ;;  %v5316_v33 = vpop.eup %3926  ;;  %v2661_v46 = vpack.c.bf16 %v5310_v24, %v5310_v24 }
 0x36c   : > { %v2947_v45 = vpack.c.b16 %v2942_v30, %v2941_v48  ;;  %v2961_v41 = vunpack.c.l.b16 %v2053_v10  ;;  %v3022_v32 = vunpack.c.l.b16 %v2662_v34 }
 0x36d   : > { %v2705_v7 = vmul.f32 1.442695, %v2693_v55  ;;  %3928 = vpow2.f32 %v2103_v47  ;;  %v1687_v44 = vmul.f32 1.442695, %v1672_v63  ;;  %v3021_v42 = vunpack.c.l.b16 %v2661_v46 }
 0x36e   : > { %v2967_v11 = vpack.c.b16 %v2962_v1, %v2961_v41 }
 0x36f   : > { %3930 = vpow2.f32 %v2705_v7 }
 0x370   : > { %3932 = vpow2.f32 %v2101_v29  ;;  %v2272_v31 = vpop.xlane.xlu0 %2271  ;;  %v3027_v29 = vpack.c.b16 %v3022_v32, %v3021_v42  ;;  %v3075_v63 = vsel %vm1223_vm5, %v2947_v45, %v2967_v11  ;;  %v1287_v11 = vsel %vm1223_vm5, %v5134_v51, 0.0  ;;  %v2493_v51 = vpop.xlane.xlu1 %2492 }
 0x371   : > { %3934 = vpow2.f32 %v2293_v56  ;;  %v2280_v17 = vsub.f32 %v4990_v20, %v2272_v31  ;;  %v2886_v20 = vpack.c.bf16 %v5316_v33, %v5316_v33 }
 0x372   : > { %3936 = vpow2.f32 %v1685_v8 }
 0x373   : > { %v2295_v12 = vmul.f32 1.442695, %v2280_v17  ;;  %v5327_v62 = vpop.eup %3928  ;;  %v3042_v47 = vunpack.c.l.b16 %v2886_v20 }
 0x374   : > { %7348 = vst [vmem:[#allocation13_spill] sm:$0xff] %v5327_v62  ;;  %v2248_v55 = vpack.c.bf16 %v5327_v62, %v5327_v62 }
 0x375   : > { %v5333_v27 = vpop.eup %3930  ;;  %3938 = vpow2.f32 %v2295_v12 }
 0x376   : > { %v5335_v22 = vpop.eup %3932  ;;  %3940 = vpow2.f32 %v1687_v44  ;;  %v2885_v0 = vpack.c.bf16 %v5333_v27, %v5333_v27  ;;  %v2984_v31 = vunpack.c.l.b16 %v2248_v55 }
 0x377   : > { %v5339_v61 = vpop.eup %3934  ;;  %3942 = vpow2.f32 %v1879_v49  ;;  %v2247_v56 = vpack.c.bf16 %v5335_v22, %v5335_v22 }
 0x378   : > { %v3041_v19 = vunpack.c.l.b16 %v2885_v0  ;;  %3944 = vpow2.f32 %v1877_v54  ;;  %v3937_v40 = vpop.eup %3936  ;;  %v2471_v7 = vpack.c.bf16 %v5339_v61, %v5339_v61  ;;  %v1701_v54 = vsel %vm1223_vm5, %v5284_v57, 0.0 }
 0x379   : > { %v2983_v17 = vunpack.c.l.b16 %v2247_v56  ;;  %v1831_v45 = vpack.c.bf16 %v3937_v40, %v3937_v40 }
 0x37a   : > { %v3047_v37 = vpack.c.b16 %v3042_v47, %v3041_v19  ;;  %v3003_v35 = vunpack.c.l.b16 %v2471_v7  ;;  %v1284_v47 = vsel %vm1223_vm5, %v5138_v52, 0.0  ;;  %v1707_v7 = vsel %vm1223_vm5, %v3937_v40, 0.0  ;;  %v2496_v52 = vpop.xlane.xlu0 %2495 }
 0x37b   : > { %v5347_v48 = vpop.eup %3938  ;;  %3416 = vmatmul.bf16.gmra.mxu2 %v3075_v63  ;;  %v2988_v12 = vpack.c.b16 %v2984_v31, %v2983_v17  ;;  %v2943_v42 = vunpack.c.l.b16 %v1831_v45  ;;  %v7350_v63 = vld [vmem:[#allocation7_spill] sm:$0xff]  ;;  %v1704_v17 = vsel %vm1223_vm5, %v5289_v39, 0.0 }
 0x37c   : > { %v3941_v30 = vpop.eup %3940  ;;  %v3107_v3 = vsel %vm1223_vm5, %v3027_v29, %v3047_v37  ;;  %v2472_v8 = vpack.c.bf16 %v5347_v48, %v5347_v48  ;;  %v1290_v29 = vsel %vm1223_vm5, %v5183_v23, 0.0  ;;  %v7349_v37 = vld [vmem:[#allocation5_spill] sm:$0xff]  ;;  %v2686_v40 = vsel %vm1416_vm6, %v7350_v63, -inf }
 0x37d   : > { %v5353_v9 = vpop.eup %3942  ;;  %3474 = vmatmul.bf16.gmra.mxu0 %v3107_v3  ;;  %v1832_v49 = vpack.c.bf16 %v3941_v30, %v3941_v30  ;;  %v2683_v56 = vsel %vm1416_vm6, %v7349_v37, -inf  ;;  %v2503_v23 = vsub.f32 %v7349_v37, %v2493_v51  ;;  %v2504_v3 = vsub.f32 %v7350_v63, %v2496_v52 }
 0x37e   : > { %v3004_v44 = vunpack.c.l.b16 %v2472_v8  ;;  %v5355_v46 = vpop.eup %3944  ;;  %v2056_v34 = vpack.c.bf16 %v5353_v9, %v5353_v9 }
 0x37f   : > { %v2055_v1 = vpack.c.bf16 %v5355_v46, %v5355_v46  ;;  %v2944_v0 = vunpack.c.l.b16 %v1832_v49  ;;  %v2517_v8 = vmul.f32 1.442695, %v2503_v23  ;;  %v2519_v31 = vmul.f32 1.442695, %v2504_v3 }
 0x380   : > { %v3008_v10 = vpack.c.b16 %v3004_v44, %v3003_v35  ;;  %v2964_v41 = vunpack.c.l.b16 %v2056_v34  ;;  %v1476_v45 = vpop.permute.xlu1 %1475  ;;  %v1293_v34 = vsel %vm1223_vm5, %v5180_v14, 0.0  ;;  %v7354_v14 = vld [vmem:[#allocation2_spill] sm:$0xff] }
 0x381   : > { %v2948_v32 = vpack.c.b16 %v2944_v0, %v2943_v42  ;;  %v2963_v19 = vunpack.c.l.b16 %v2055_v1  ;;  %3946 = vpow2.f32 %v2517_v8  ;;  %v1500_v39 = vsel %vm1223_vm5, %v1476_v45, 0.0  ;;  %v5411_v1 = vpop.xlane.xlu2 %1273 }
 0x382   : > { %v3095_v20 = vsel %vm1223_vm5, %v2988_v12, %v3008_v10  ;;  %3948 = vpow2.f32 %v2519_v31  ;;  %v1710_v10 = vsel %vm1223_vm5, %v3941_v30, 0.0  ;;  %v7353_v30 = vld [vmem:[#allocation4_spill] sm:$0xff]  ;;  %vm1301_vm8 = vweird.f32 %v5411_v1 }
 0x383   : > { %3450 = vmatmul.bf16.gmra.mxu3 %v3095_v20  ;;  %1702 = vadd.xlane.f32.xlu1 %v1701_v54  ;;  %v2968_v55 = vpack.c.b16 %v2964_v41, %v2963_v19 }
 0x385   : > { %v3079_v57 = vsel %vm1223_vm5, %v2948_v32, %v2968_v55 }
 0x389   : > { %1285 = vadd.xlane.f32.xlu0 %v1284_v47  ;;  %v5417_v0 = vpop.xlane.xlu2 %1690 }
 0x38b   : > { %1288 = vadd.xlane.f32.xlu1 %v1287_v11  ;;  %3421 = vmatmul.bf16.gmra.mxu2 %v3079_v57  ;;  %v1474_v20 = vpop.permute.xlu0 %1473 }
 0x38c   : > { %v1497_v54 = vsel %vm1223_vm5, %v1474_v20, 0.0 }
 0x391   : > { %1291 = vadd.xlane.f32.xlu2 %v1290_v29  ;;  %v1478_v41 = vpop.permute.xlu2 %1477 }
 0x392   : > { %v1503_v47 = vsel %vm1223_vm5, %v1478_v41, 0.0 }
 0x393   : > { %2684 = vmax.xlane.f32.xlu1 %v2683_v56 }
 0x399   : > { %1708 = vadd.xlane.f32.xlu2 %v1707_v7 }
 0x39d   : > { %1483 = vrot.lane.b32.xlu0 %v5155_v2, %s4091_s10  ;;  %v5384_v2 = vpop.eup %3946 }
 0x39e   : > { %7351 = vst [vmem:[#allocation5_spill] sm:$0xff] %v5384_v2 }
 0x3ab   : > { %v5419_v42 = vpop.xlane.xlu1 %1693 }
 0x3ac   : > { %1487 = vrot.lane.b32.xlu1 %v5185_v53, %s4091_s10  ;;  %v5386_v53 = vpop.eup %3948 }
 0x3ad   : > { %7352 = vst [vmem:[#allocation7_spill] sm:$0xff] %v5386_v53  ;;  %v2664_v35 = vpack.c.bf16 %v5386_v53, %v5386_v53 }
 0x3af   : > { %v5396_v49 = vunpack.c.l.b16 %v2664_v35 }
 0x3b1   : > { %1891 = vrot.lane.b32.xlu2 %v5218_v15, %s4091_s10  ;;  %v2663_v15 = vpack.c.bf16 %v5384_v2, %v5384_v2 }
 0x3b3   : > { %v5394_v44 = vunpack.c.l.b16 %v2663_v15 }
 0x3b5   : > { %v3028_v12 = vpack.c.b16 %v5396_v49, %v5394_v44 }
 0x3b6   : > { %v5423_v32 = vpop.xlane.xlu0 %1276 }
 0x3b7   : > { %vm1315_vm9 = vweird.f32 %v5423_v32  ;;  %v1319_v44 = vand.u32 2147483647, %v5423_v32 }
 0x3b9   : > { %vm1320_vm14 = vcmp.eq.f32.partialorder %v1319_v44, 8.507059e+37 }
 0x3be   : > { %v5428_v55 = vpop.xlane.xlu0 %1696 }
 0x3c7   : > { %2687 = vmax.xlane.f32.xlu0 %v2686_v40 }
 0x3cf   : > { %1705 = vadd.xlane.f32.xlu0 %v1704_v17 }
 0x3d1   : > { %v1480_v57 = vpop.permute.xlu0 %1479 }
 0x3d2   : > { %v1506_v56 = vsel %vm1223_vm5, %v1480_v57, 0.0 }
 0x3d6   : > { %1711 = vadd.xlane.f32.xlu1 %v1710_v10 }
 0x3d7   : > { %1294 = vadd.xlane.f32.xlu0 %v1293_v34 }
 0x3da   : > { %1501 = vadd.xlane.f32.xlu2 %v1500_v39 }
 0x3df   : > { %1498 = vadd.xlane.f32.xlu0 %v1497_v54 }
 0x3ef   : > { %1889 = vrot.lane.b32.xlu1 %v5226_v5, %s4091_s10  ;;  %v5421_v5 = vpop.xlane.xlu1 %1279 }
 0x3f2   : > { %2723 = vrot.lane.b32.xlu2 %v5106_v25, %s4091_s10  ;;  %v5425_v25 = vpop.xlane.xlu2 %1282 }
 0x3f3   : > { %2305 = vrot.lane.b32.xlu0 %v7353_v30, %s4091_s10 }
 0x3f7   : > { %v1482_v19 = vpop.permute.xlu1 %1481 }
 0x3f8   : > { %v1509_v29 = vsel %vm1223_vm5, %v1482_v19, 0.0 }
 0x3fa   : > { %2309 = vrot.lane.b32.xlu2 %v5083_v59, %s4091_s10  ;;  %v5432_v11 = vpop.xlane.xlu2 %1699 }
 0x3fb   : > { %2307 = vrot.lane.b32.xlu0 %v7354_v14, %s4091_s10 }
 0x3fc   : > { %v5440_v52 = vpop.xlane.xlu0 %1285 }
 0x3ff   : > { %v5430_v59 = vpop.xlane.xlu1 %1702 }
 0x402   : > { %v5438_v51 = vpop.permute.xlu2 %1485 }
 0x407   : > { %v5436_v7 = vpop.xlane.xlu1 %1288 }
 0x40a   : > { %v5442_v23 = vpop.xlane.xlu2 %1291 }
 0x40f   : > { %v2685_v3 = vpop.xlane.xlu1 %2684  ;;  %v5444_v8 = vpop.permute.xlu0 %1483 }
 0x410   : > { %v2695_v31 = vsub.f32 %v7349_v37, %v2685_v3 }
 0x412   : > { %v2709_v40 = vmul.f32 1.442695, %v2695_v31  ;;  %v5453_v17 = vpop.xlane.xlu2 %1708 }
 0x414   : > { %3950 = vpow2.f32 %v2709_v40 }
 0x419   : > { %1504 = vadd.xlane.f32.xlu1 %v1503_v47 }
 0x41a   : > { %v5469_v37 = vpop.permute.xlu2 %1891 }
 0x423   : > { %1510 = vadd.xlane.f32.xlu2 %v1509_v29 }
 0x425   : > { %1507 = vadd.xlane.f32.xlu0 %v1506_v56 }
 0x432   : > { %2721 = vrot.lane.b32.xlu1 %v5110_v28, %s4091_s10 }
 0x439   : > { %1893 = vrot.lane.b32.xlu0 %v5269_v6, %s4091_s10  ;;  %v5463_v6 = vpop.eup %3950 }
 0x43a   : > { %v2688_v15 = vpop.xlane.xlu0 %2687  ;;  %1895 = vrot.lane.b32.xlu1 %v5263_v38, %s4091_s10 }
 0x43b   : > { %v2696_v35 = vsub.f32 %v7350_v63, %v2688_v15  ;;  %2727 = vrot.lane.b32.xlu2 %v5158_v18, %s4091_s10  ;;  %v2887_v18 = vpack.c.bf16 %v5463_v6, %v5463_v6  ;;  %v1321_v15 = vand.u32 2147483648, %v5423_v32 }
 0x43d   : > { %v2711_v10 = vmul.f32 1.442695, %v2696_v35  ;;  %v3043_v20 = vunpack.c.l.b16 %v2887_v18 }
 0x43f   : > { %3952 = vpow2.f32 %v2711_v10  ;;  %v1305_v10 = vand.u32 2147483647, %v5411_v1 }
 0x440   : > { %3954 = vrcp.f32 %v5423_v32 }
 0x441   : > { %2311 = vrot.lane.b32.xlu0 %v5078_v36, %s4091_s10  ;;  %3956 = vrcp.f32 %v5411_v1 }
 0x442   : > { %v5461_v28 = vpop.xlane.xlu0 %1705 }
 0x443   : > { %2313 = vrot.lane.b32.xlu2 %v5253_v58, %s4091_s10 }
 0x445   : > { %v5467_v38 = vpop.eup %3952 }
 0x446   : > { %v2888_v63 = vpack.c.bf16 %v5467_v38, %v5467_v38  ;;  %v3955_v36 = vpop.eup %3954 }
 0x447   : > { %v1311_v34 = vmul.f32 %v3955_v36, %v5423_v32  ;;  %v5479_v58 = vpop.eup %3956  ;;  %vm1316_vm7 = vweird.f32 %v3955_v36 }
 0x448   : > { %v3044_v45 = vunpack.c.l.b16 %v2888_v63  ;;  %v1297_v41 = vmul.f32 %v5479_v58, %v5411_v1  ;;  %vm5493_vm10 = vmor %vm1315_vm9, %vm1316_vm7  ;;  %vm1302_vm12 = vweird.f32 %v5479_v58  ;;  %vm1306_vm9 = vcmp.eq.f32.partialorder %v1305_v10, 8.507059e+37 }
 0x449   : > { %v1312_v14 = vsub.f32 1.0, %v1311_v34  ;;  %v1307_v34 = vand.u32 2147483648, %v5411_v1  ;;  %vm1303_vm3 = vmor %vm1301_vm8, %vm1302_vm12  ;;  %vm1329_vm8 = vweird.f32 %v5421_v5 }
 0x44a   : > { %v5477_v39 = vpop.xlane.xlu0 %1294  ;;  %v3048_v54 = vpack.c.b16 %v3044_v45, %v3043_v20  ;;  %v1298_v29 = vsub.f32 1.0, %v1297_v41 }
 0x44b   : > { %v1313_v47 = vmul.f32 %v3955_v36, %v1312_v14  ;;  %v1322_v14 = vor.u32 1.1754944e-38, %v1321_v15 }
 0x44c   : > { %v3111_v19 = vsel %vm1223_vm5, %v3028_v12, %v3048_v54  ;;  %v1299_v40 = vmul.f32 %v5479_v58, %v1298_v29 }
 0x44d   : > { %v1502_v30 = vpop.xlane.xlu2 %1501  ;;  %3479 = vmatmul.bf16.gmra.mxu0 %v3111_v19  ;;  %v1314_v31 = vadd.f32 %v3955_v36, %v1313_v47 }
 0x44e   : > { %3958 = vrcp.f32 %v1502_v30  ;;  %v1546_v49 = vand.u32 2147483648, %v1502_v30  ;;  %v1544_v45 = vand.u32 2147483647, %v1502_v30  ;;  %v1300_v32 = vadd.f32 %v5479_v58, %v1299_v40 }
 0x44f   : > { %v1318_v20 = vsel %vm5493_vm10, %v3955_v36, %v1314_v31  ;;  %vm1540_vm13 = vweird.f32 %v1502_v30  ;;  %v1308_v40 = vor.u32 1.1754944e-38, %v1307_v34 }
 0x450   : > { %v1547_v19 = vor.u32 1.1754944e-38, %v1546_v49  ;;  %v1323_v29 = vsel %vm1320_vm14, %v1322_v14, %v1318_v20  ;;  %vm1545_vm1 = vcmp.eq.f32.partialorder %v1544_v45, 8.507059e+37  ;;  %v1512_v49 = vsel %vm1223_vm5, %v5444_v8, 0.0 }
 0x452   : > { %v1499_v57 = vpop.xlane.xlu0 %1498 }
 0x453   : > { %3960 = vrcp.f32 %v1499_v57  ;;  %v1530_v18 = vand.u32 2147483647, %v1499_v57  ;;  %vm1526_vm6 = vweird.f32 %v1499_v57 }
 0x454   : > { %v3959_v56 = vpop.eup %3958  ;;  %3962 = vrcp.f32 %v5421_v5 }
 0x455   : > { %v1536_v3 = vmul.f32 %v3959_v56, %v1502_v30  ;;  %vm1541_vm11 = vweird.f32 %v3959_v56  ;;  %v1304_v30 = vsel %vm1303_vm3, %v5479_v58, %v1300_v32  ;;  %vm1531_vm10 = vcmp.eq.f32.partialorder %v1530_v18, 8.507059e+37  ;;  %v5526_v8 = vpop.permute.xlu2 %2723 }
 0x456   : > { %vm1542_vm0 = vmor %vm1540_vm13, %vm1541_vm11  ;;  %v1309_v44 = vsel %vm1306_vm9, %v1308_v40, %v1304_v30  ;;  %3964 = vrcp.f32 %v5417_v0  ;;  %v1333_v30 = vand.u32 2147483647, %v5421_v5  ;;  %vm1732_vm13 = vweird.f32 %v5419_v42 }
 0x457   : > { %v1537_v35 = vsub.f32 1.0, %v1536_v3  ;;  %3966 = vrcp.f32 %v5419_v42  ;;  %vm1343_vm9 = vweird.f32 %v5425_v25 }
 0x458   : > { %3968 = vrcp.f32 %v5440_v52  ;;  %vm1334_vm3 = vcmp.eq.f32.partialorder %v1333_v30, 8.507059e+37 }
 0x459   : > { %v3961_v12 = vpop.eup %3960  ;;  %v1538_v63 = vmul.f32 %v3959_v56, %v1537_v35  ;;  %v1532_v35 = vand.u32 2147483648, %v1499_v57  ;;  %3970 = vrcp.f32 %v5425_v25 }
 0x45a   : > { %v1522_v54 = vmul.f32 %v3961_v12, %v1499_v57  ;;  %vm1527_vm2 = vweird.f32 %v3961_v12 }
 0x45b   : > { %v1539_v41 = vadd.f32 %v3959_v56, %v1538_v63  ;;  %vm1528_vm7 = vmor %vm1526_vm6, %vm1527_vm2 }
 0x45c   : > { %v1523_v47 = vsub.f32 1.0, %v1522_v54 }
 0x45d   : > { %v1543_v3 = vsel %vm1542_vm0, %v3959_v56, %v1539_v41  ;;  %v1533_v56 = vor.u32 1.1754944e-38, %v1532_v35  ;;  %v5555_v20 = vpop.permute.xlu2 %2309 }
 0x45e   : > { %v1548_v2 = vsel %vm1545_vm1, %v1547_v19, %v1543_v3  ;;  %v1524_v62 = vmul.f32 %v3961_v12, %v1523_v47 }
 0x45f   : > { %v5507_v36 = vsel %vm3485_vm15, %v1323_v29, %v1548_v2  ;;  %v1488_v2 = vpop.permute.xlu1 %1487 }
 0x460   : > { %v1525_v31 = vadd.f32 %v3961_v12, %v1524_v62  ;;  %v1515_v62 = vsel %vm1223_vm5, %v5438_v51, 0.0  ;;  %v1518_v58 = vsel %vm1223_vm5, %v1488_v2, 0.0  ;;  %v5537_v51 = vpop.eup %3962 }
 0x461   : > { %v1325_v10 = vmul.f32 %v5537_v51, %v5421_v5  ;;  %vm1330_vm11 = vweird.f32 %v5537_v51 }
 0x462   : > { %v1529_v15 = vsel %vm1528_vm7, %v3961_v12, %v1525_v31  ;;  %vm5587_vm0 = vmor %vm1329_vm8, %vm1330_vm11 }
 0x463   : > { %v1534_v63 = vsel %vm1531_vm10, %v1533_v56, %v1529_v15  ;;  %v1326_v34 = vsub.f32 1.0, %v1325_v10 }
 0x464   : > { %v5513_v1 = vsel %vm3485_vm15, %v1309_v44, %v1534_v63  ;;  %1513 = vadd.xlane.f32.xlu1 %v1512_v49  ;;  %v1335_v44 = vand.u32 2147483648, %v5421_v5 }
 0x465   : > { %v1327_v47 = vmul.f32 %v5537_v51, %v1326_v34 }
 0x467   : > { %v5518_v57 = vpop.xlane.xlu1 %1711  ;;  %v1328_v40 = vadd.f32 %v5537_v51, %v1327_v47  ;;  %v1736_v47 = vand.u32 2147483647, %v5419_v42 }
 0x469   : > { %vm5627_vm11 = vcmp.eq.f32.partialorder %v1736_v47, 8.507059e+37 }
 0x46b   : > { %1516 = vadd.xlane.f32.xlu0 %v1515_v62 }
 0x46c   : > { %1519 = vadd.xlane.f32.xlu2 %v1518_v58 }
 0x46f   : > { %v5528_v12 = vpop.permute.xlu1 %1889 }
 0x47d   : > { %2725 = vrot.lane.b32.xlu1 %v5149_v43, %s4091_s10  ;;  %v5535_v43 = vpop.permute.xlu0 %2305 }
 0x47f   : > { %1897 = vrot.lane.b32.xlu0 %v5304_v21, %s4091_s10  ;;  %v5541_v21 = vpop.eup %3964 }
 0x480   : > { %vm1719_vm8 = vweird.f32 %v5541_v21 }
 0x484   : > { %2731 = vrot.lane.b32.xlu2 %v5316_v33, %s4091_s10  ;;  %v5546_v33 = vpop.eup %3966 }
 0x485   : > { %1899 = vrot.lane.b32.xlu1 %v5306_v26, %s4091_s10  ;;  %v1714_v26 = vmul.f32 %v5541_v21, %v5417_v0  ;;  %v5557_v54 = vpop.eup %3968  ;;  %v5559_v32 = vpop.permute.xlu0 %2307  ;;  %vm1733_vm14 = vweird.f32 %v5546_v33 }
 0x486   : > { %v5561_v14 = vpop.eup %3970  ;;  %vm5610_vm7 = vmor %vm1732_vm13, %vm1733_vm14  ;;  %vm1358_vm10 = vweird.f32 %v5557_v54  ;;  %vm1357_vm13 = vweird.f32 %v5440_v52 }
 0x487   : > { %2315 = vrot.lane.b32.xlu0 %v5245_v16, %s4091_s10  ;;  %v1728_v16 = vmul.f32 %v5546_v33, %v5419_v42  ;;  %v1715_v41 = vsub.f32 1.0, %v1714_v26  ;;  %v1339_v3 = vmul.f32 %v5561_v14, %v5425_v25  ;;  %v1738_v26 = vand.u32 2147483648, %v5419_v42  ;;  %vm5638_vm14 = vmor %vm1357_vm13, %vm1358_vm10 }
 0x488   : > { %v1347_v42 = vand.u32 2147483647, %v5425_v25 }
 0x489   : > { %v1729_v19 = vsub.f32 1.0, %v1728_v16  ;;  %v1716_v18 = vmul.f32 %v5541_v21, %v1715_v41  ;;  %v1340_v2 = vsub.f32 1.0, %v1339_v3  ;;  %v1332_v41 = vsel %vm5587_vm0, %v5537_v51, %v1328_v40 }
 0x48a   : > { %v1724_v51 = vand.u32 2147483648, %v5417_v0  ;;  %v1361_v16 = vand.u32 2147483647, %v5440_v52  ;;  %vm1348_vm13 = vcmp.eq.f32.partialorder %v1347_v42, 8.507059e+37 }
 0x48b   : > { %v1730_v31 = vmul.f32 %v5546_v33, %v1729_v19  ;;  %v5603_v53 = vadd.f32 %v5541_v21, %v1716_v18 }
 0x48c   : > { %v1505_v45 = vpop.xlane.xlu1 %1504 }
 0x48d   : > { %3972 = vrcp.f32 %v1505_v45  ;;  %2729 = vrot.lane.b32.xlu1 %v5333_v27, %s4091_s10  ;;  %v1353_v27 = vmul.f32 %v5557_v54, %v5440_v52  ;;  %v1560_v63 = vand.u32 2147483648, %v1505_v45  ;;  %v1558_v58 = vand.u32 2147483647, %v1505_v45 }
 0x48e   : > { %v5593_v34 = vadd.f32 %v5546_v33, %v1730_v31  ;;  %vm1554_vm1 = vweird.f32 %v1505_v45 }
 0x48f   : > { %v1354_v49 = vsub.f32 1.0, %v1353_v27  ;;  %v1336_v27 = vor.u32 1.1754944e-38, %v1335_v44  ;;  %v1561_v3 = vor.u32 1.1754944e-38, %v1560_v63  ;;  %vm1559_vm6 = vcmp.eq.f32.partialorder %v1558_v58, 8.507059e+37 }
 0x490   : > { %v1739_v44 = vor.u32 1.1754944e-38, %v1738_v26 }
 0x491   : > { %v1355_v5 = vmul.f32 %v5557_v54, %v1354_v49  ;;  %v1337_v40 = vsel %vm1334_vm3, %v1336_v27, %v1332_v41 }
 0x493   : > { %v3973_v29 = vpop.eup %3972 }
 0x494   : > { %v1550_v35 = vmul.f32 %v3973_v29, %v1505_v45  ;;  %vm1555_vm12 = vweird.f32 %v3973_v29 }
 0x495   : > { %vm1556_vm2 = vmor %vm1554_vm1, %vm1555_vm12  ;;  %vm1344_vm12 = vweird.f32 %v5561_v14 }
 0x496   : > { %v1551_v56 = vsub.f32 1.0, %v1550_v35  ;;  %v5574_v15 = vpop.xlane.xlu2 %1510  ;;  %v1341_v35 = vmul.f32 %v5561_v14, %v1340_v2  ;;  %v1356_v2 = vadd.f32 %v5557_v54, %v1355_v5 }
 0x497   : > { %3974 = vrcp.f32 %v5574_v15  ;;  %v1588_v41 = vand.u32 2147483648, %v5574_v15  ;;  %v1586_v27 = vand.u32 2147483647, %v5574_v15  ;;  %vm1582_vm1 = vweird.f32 %v5574_v15 }
 0x498   : > { %v1552_v62 = vmul.f32 %v3973_v29, %v1551_v56  ;;  %v5578_v10 = vpop.xlane.xlu0 %1507 }
 0x499   : > { %3976 = vrcp.f32 %v5578_v10  ;;  %vm1587_vm10 = vcmp.eq.f32.partialorder %v1586_v27, 8.507059e+37  ;;  %v1913_v27 = vsel %vm1223_vm5, %v5528_v12, 0.0 }
 0x49a   : > { %v1553_v19 = vadd.f32 %v3973_v29, %v1552_v62  ;;  %v1725_v62 = vor.u32 1.1754944e-38, %v1724_v51  ;;  %3978 = vrcp.f32 %v5428_v55 }
 0x49b   : > { %3980 = vrcp.f32 %v5432_v11 }
 0x49c   : > { %v1557_v56 = vsel %vm1556_vm2, %v3973_v29, %v1553_v19  ;;  %v1735_v29 = vsel %vm5610_vm7, %v5546_v33, %v5593_v34  ;;  %v1342_v33 = vadd.f32 %v5561_v14, %v1341_v35  ;;  %v1363_v34 = vand.u32 2147483648, %v5440_v52  ;;  %vm5653_vm2 = vmor %vm1343_vm9, %vm1344_vm12 }
 0x49d   : > { %v3975_v31 = vpop.eup %3974  ;;  %v1562_v30 = vsel %vm1559_vm6, %v1561_v3, %v1557_v56  ;;  %v1349_v3 = vand.u32 2147483648, %v5425_v25  ;;  %v1360_v35 = vsel %vm5638_vm14, %v5557_v54, %v1356_v2  ;;  %v1574_v52 = vand.u32 2147483648, %v5578_v10 }
 0x49e   : > { %v5619_v18 = vsel %vm3485_vm15, %v1337_v40, %v1562_v30  ;;  %v1578_v49 = vmul.f32 %v3975_v31, %v5574_v15  ;;  %vm1583_vm0 = vweird.f32 %v3975_v31  ;;  %v1572_v30 = vand.u32 2147483647, %v5578_v10 }
 0x49f   : > { %v3977_v63 = vpop.eup %3976  ;;  %v1346_v54 = vsel %vm5653_vm2, %v5561_v14, %v1342_v33  ;;  %vm1362_vm6 = vcmp.eq.f32.partialorder %v1361_v16, 8.507059e+37  ;;  %v1364_v15 = vor.u32 1.1754944e-38, %v1363_v34  ;;  %vm1584_vm7 = vmor %vm1582_vm1, %vm1583_vm0  ;;  %vm1568_vm9 = vweird.f32 %v5578_v10 }
 0x4a0   : > { %v1579_v58 = vsub.f32 1.0, %v1578_v49  ;;  %v1564_v26 = vmul.f32 %v3977_v63, %v5578_v10  ;;  %vm1569_vm3 = vweird.f32 %v3977_v63  ;;  %v1589_v49 = vor.u32 1.1754944e-38, %v1588_v41 }
 0x4a1   : > { %vm1570_vm12 = vmor %vm1568_vm9, %vm1569_vm3  ;;  %vm1573_vm14 = vcmp.eq.f32.partialorder %v1572_v30, 8.507059e+37  ;;  %v1740_v33 = vsel %vm5627_vm11, %v1739_v44, %v1735_v29  ;;  %vm3494_vm0 = vcmask 64512   ;;  %vm1718_vm1 = vweird.f32 %v5417_v0  ;;  %v7367_v44 = vld [vmem:[#allocation3_spill] sm:$0xff] }
 0x4a2   : > { %v1580_v47 = vmul.f32 %v3975_v31, %v1579_v58  ;;  %v1565_v5 = vsub.f32 1.0, %v1564_v26  ;;  %v1350_v58 = vor.u32 1.1754944e-38, %v1349_v3  ;;  %v1365_v26 = vsel %vm1362_vm6, %v1364_v15, %v1360_v35  ;;  %vm1720_vm2 = vmor %vm1718_vm1, %vm1719_vm8 }
 0x4a3   : > { %v1722_v10 = vand.u32 2147483647, %v5417_v0  ;;  %v5675_v42 = vsel %vm3494_vm0, %v5507_v36, %v1740_v33  ;;  %v1721_v29 = vsel %vm1720_vm2, %v5541_v21, %v5603_v53  ;;  %v2332_v53 = vsel %vm1223_vm5, %v5559_v32, 0.0  ;;  %v7368_v0 = vld [vmem:[#allocation6_spill] sm:$0xff] }
 0x4a4   : > { %v1581_v45 = vadd.f32 %v3975_v31, %v1580_v47  ;;  %v1566_v40 = vmul.f32 %v3977_v63, %v1565_v5  ;;  %v1575_v47 = vor.u32 1.1754944e-38, %v1574_v52  ;;  %v1351_v16 = vsel %vm1348_vm13, %v1350_v58, %v1346_v54  ;;  %v2722_v3 = vpop.permute.xlu1 %2721  ;;  %v3979_v52 = vpop.eup %3978 }
 0x4a5   : > { %vm1723_vm11 = vcmp.eq.f32.partialorder %v1722_v10, 8.507059e+37  ;;  %v1916_v21 = vsel %vm1223_vm5, %v5469_v37, 0.0  ;;  %v2108_v51 = vsel %vm1223_vm5, %v7368_v0, 0.0  ;;  %v2745_v12 = vsel %vm1223_vm5, %v2722_v3, 0.0  ;;  %v7369_v37 = vld [vmem:[#allocation10_spill] sm:$0xff] }
 0x4a6   : > { %v1585_v2 = vsel %vm1584_vm7, %v3975_v31, %v1581_v45  ;;  %v1567_v25 = vadd.f32 %v3977_v63, %v1566_v40  ;;  %v1726_v41 = vsel %vm1723_vm11, %v1725_v62, %v1721_v29  ;;  %v2521_v32 = vsel %vm1223_vm5, %v5124_v13, 0.0  ;;  %v5713_v13 = vpop.permute.xlu2 %2727  ;;  %v5715_v40 = vpop.eup %3980 }
 0x4a7   : > { %v1590_v19 = vsel %vm1587_vm10, %v1589_v49, %v1585_v2  ;;  %v5689_v36 = vsel %vm3494_vm0, %v5513_v1, %v1726_v41  ;;  %v2329_v1 = vsel %vm1223_vm5, %v5535_v43, 0.0  ;;  %v2524_v35 = vsel %vm1223_vm5, %v7369_v37, 0.0 }
 0x4a8   : > { %v5664_v5 = vsel %vm3485_vm15, %v1365_v26, %v1590_v19  ;;  %v1571_v14 = vsel %vm1570_vm12, %v3977_v63, %v1567_v25  ;;  %v2105_v63 = vsel %vm1223_vm5, %v7367_v44, 0.0  ;;  %v2748_v56 = vsel %vm1223_vm5, %v5526_v8, 0.0 }
 0x4a9   : > { %v1576_v31 = vsel %vm1573_vm14, %v1575_v47, %v1571_v14  ;;  %3982 = vrcp.f32 %v5436_v7  ;;  %v1742_v43 = vmul.f32 %v3979_v52, %v5428_v55  ;;  %v1756_v8 = vmul.f32 %v5715_v40, %v5432_v11 }
 0x4aa   : > { %v5671_v34 = vsel %vm3485_vm15, %v1351_v16, %v1576_v31  ;;  %3984 = vrcp.f32 %v5442_v23  ;;  %vm1747_vm8 = vweird.f32 %v3979_v52  ;;  %v1750_v16 = vand.u32 2147483647, %v5428_v55 }
 0x4ab   : > { %v5710_v45 = vpop.permute.xlu0 %1893  ;;  %v1743_v30 = vsub.f32 1.0, %v1742_v43  ;;  %3986 = vrcp.f32 %v5430_v59  ;;  %v1757_v26 = vsub.f32 1.0, %v1756_v8  ;;  %v1752_v31 = vand.u32 2147483648, %v5428_v55 }
 0x4ac   : > { %v5720_v15 = vpop.permute.xlu1 %1895  ;;  %3988 = vrcp.f32 %v5477_v39  ;;  %vm1746_vm3 = vweird.f32 %v5428_v55  ;;  %vm1751_vm7 = vcmp.eq.f32.partialorder %v1750_v16, 8.507059e+37  ;;  %v1766_v55 = vand.u32 2147483648, %v5432_v11 }
 0x4ad   : > { %2106 = vadd.xlane.f32.xlu2 %v2105_v63  ;;  %v1744_v49 = vmul.f32 %v3979_v52, %v1743_v30  ;;  %vm1748_vm6 = vmor %vm1746_vm3, %vm1747_vm8  ;;  %v1758_v63 = vmul.f32 %v5715_v40, %v1757_v26  ;;  %vm1371_vm9 = vweird.f32 %v5436_v7  ;;  %v1377_v30 = vand.u32 2147483648, %v5436_v7 }
 0x4ae   : > { %v5739_v10 = vpop.permute.xlu2 %2313  ;;  %vm1774_vm1 = vweird.f32 %v5430_v59  ;;  %vm1385_vm8 = vweird.f32 %v5442_v23 }
 0x4af   : > { %v5717_v54 = vpop.eup %3982  ;;  %v1745_v19 = vadd.f32 %v3979_v52, %v1744_v49  ;;  %v1389_v49 = vand.u32 2147483647, %v5442_v23 }
 0x4b0   : > { %v1367_v2 = vmul.f32 %v5717_v54, %v5436_v7  ;;  %v5726_v25 = vpop.eup %3984  ;;  %vm1372_vm10 = vweird.f32 %v5717_v54 }
 0x4b1   : > { %1914 = vadd.xlane.f32.xlu0 %v1913_v27  ;;  %v5729_v58 = vpop.eup %3986  ;;  %v1381_v14 = vmul.f32 %v5726_v25, %v5442_v23  ;;  %v1749_v62 = vsel %vm1748_vm6, %v3979_v52, %v1745_v19  ;;  %vm5784_vm13 = vmor %vm1371_vm9, %vm1372_vm10  ;;  %v1391_v19 = vand.u32 2147483648, %v5442_v23  ;;  %vm1386_vm2 = vweird.f32 %v5726_v25 }
 0x4b2   : > { %v1368_v47 = vsub.f32 1.0, %v1367_v2  ;;  %v5747_v44 = vpop.eup %3988  ;;  %vm1775_vm12 = vweird.f32 %v5729_v58  ;;  %vm5805_vm3 = vcmp.eq.f32.partialorder %v1389_v49, 8.507059e+37  ;;  %vm5812_vm6 = vmor %vm1385_vm8, %vm1386_vm2  ;;  %vm1761_vm10 = vweird.f32 %v5715_v40 }
 0x4b3   : > { %v5735_v33 = vpop.permute.xlu0 %2311  ;;  %v1382_v27 = vsub.f32 1.0, %v1381_v14  ;;  %vm1399_vm9 = vweird.f32 %v5477_v39  ;;  %vm1760_vm2 = vweird.f32 %v5432_v11  ;;  %vm1400_vm8 = vweird.f32 %v5747_v44 }
 0x4b4   : > { %v1369_v41 = vmul.f32 %v5717_v54, %v1368_v47 }
 0x4b5   : > { %2333 = vadd.xlane.f32.xlu2 %v2332_v53  ;;  %v1753_v53 = vor.u32 1.1754944e-38, %v1752_v31  ;;  %v1378_v31 = vor.u32 1.1754944e-38, %v1377_v30 }
 0x4b6   : > { %v1370_v52 = vadd.f32 %v5717_v54, %v1369_v41 }
 0x4b7   : > { %1917 = vadd.xlane.f32.xlu1 %v1916_v21  ;;  %v1764_v21 = vand.u32 2147483647, %v5432_v11  ;;  %v5755_v3 = vsel %vm1751_vm7, %v1753_v53, %v1749_v62  ;;  %v7383_v11 = vld [vmem:[#allocation8_spill] sm:$0xff] }
 0x4b8   : > { %v1374_v14 = vsel %vm5784_vm13, %v5717_v54, %v1370_v52 }
 0x4b9   : > { %2109 = vadd.xlane.f32.xlu0 %v2108_v51  ;;  %v1395_v51 = vmul.f32 %v5747_v44, %v5477_v39 }
 0x4bb   : > { %v1396_v2 = vsub.f32 1.0, %v1395_v51  ;;  %v1392_v51 = vor.u32 1.1754944e-38, %v1391_v19 }
 0x4bd   : > { %2746 = vadd.xlane.f32.xlu2 %v2745_v12  ;;  %v5758_v12 = vadd.f32 %v5715_v40, %v1758_v63  ;;  %v1397_v54 = vmul.f32 %v5747_v44, %v1396_v2 }
 0x4bf   : > { %2330 = vadd.xlane.f32.xlu1 %v2329_v1  ;;  %v1778_v1 = vand.u32 2147483647, %v5430_v59 }
 0x4c1   : > { %2522 = vadd.xlane.f32.xlu0 %v2521_v32  ;;  %v1375_v32 = vand.u32 2147483647, %v5436_v7 }
 0x4c3   : > { %vm5788_vm14 = vcmp.eq.f32.partialorder %v1375_v32, 8.507059e+37 }
 0x4c4   : > { %v1379_v53 = vsel %vm5788_vm14, %v1378_v31, %v1374_v14  ;;  %v5842_v14 = vsel %vm3494_vm0, %v5619_v18, %v5755_v3 }
 0x4c7   : > { %2525 = vadd.xlane.f32.xlu1 %v2524_v35  ;;  %v1780_v35 = vand.u32 2147483648, %v5430_v59 }
 0x4c9   : > { %2749 = vadd.xlane.f32.xlu0 %v2748_v56  ;;  %v1383_v56 = vmul.f32 %v5726_v25, %v1382_v27 }
 0x4d5   : > { %1903 = vrot.lane.b32.xlu2 %v5353_v9, %s4091_s10  ;;  %v1770_v9 = vmul.f32 %v5729_v58, %v5430_v59 }
 0x4d7   : > { %v5741_v29 = vpop.xlane.xlu1 %1513  ;;  %v1771_v0 = vsub.f32 1.0, %v1770_v9 }
 0x4d8   : > { %3990 = vrcp.f32 %v5741_v29  ;;  %v1602_v16 = vand.u32 2147483648, %v5741_v29  ;;  %v1600_v63 = vand.u32 2147483647, %v5741_v29  ;;  %vm1596_vm7 = vweird.f32 %v5741_v29 }
 0x4d9   : > { %v1772_v8 = vmul.f32 %v5729_v58, %v1771_v0 }
 0x4da   : > { %vm1601_vm14 = vcmp.eq.f32.partialorder %v1600_v63, 8.507059e+37 }
 0x4db   : > { %v5802_v62 = vadd.f32 %v5729_v58, %v1772_v8  ;;  %v1398_v8 = vadd.f32 %v5747_v44, %v1397_v54 }
 0x4dd   : > { %2733 = vrot.lane.b32.xlu2 %v5463_v6, %s4091_s10  ;;  %2317 = vrot.lane.b32.xlu0 %v5339_v61, %s4091_s10 }
 0x4de   : > { %v3991_v37 = vpop.eup %3990  ;;  %v5770_v43 = vpop.xlane.xlu0 %1516 }
 0x4df   : > { %v1592_v6 = vmul.f32 %v3991_v37, %v5741_v29  ;;  %3992 = vrcp.f32 %v5770_v43  ;;  %v5776_v61 = vpop.xlane.xlu2 %1519  ;;  %vm1597_vm11 = vweird.f32 %v3991_v37  ;;  %v1614_v7 = vand.u32 2147483647, %v5770_v43 }
 0x4e0   : > { %3994 = vrcp.f32 %v5776_v61  ;;  %1901 = vrot.lane.b32.xlu1 %v5355_v46, %s4091_s10  ;;  %v1384_v46 = vadd.f32 %v5726_v25, %v1383_v56  ;;  %vm1598_vm13 = vmor %vm1596_vm7, %vm1597_vm11  ;;  %v1603_v56 = vor.u32 1.1754944e-38, %v1602_v16  ;;  %v1628_v31 = vand.u32 2147483647, %v5776_v61 }
 0x4e1   : > { %v1593_v47 = vsub.f32 1.0, %v1592_v6  ;;  %v1405_v6 = vand.u32 2147483648, %v5477_v39  ;;  %3996 = vrcp.f32 %v5453_v17 }
 0x4e2   : > { %v1388_v52 = vsel %vm5812_vm6, %v5726_v25, %v1384_v46  ;;  %vm5848_vm6 = vmor %vm1774_vm1, %vm1775_vm12  ;;  %v1403_v46 = vand.u32 2147483647, %v5477_v39  ;;  %vm1610_vm1 = vweird.f32 %v5770_v43  ;;  %3998 = vrcp.f32 %v5461_v28 }
 0x4e3   : > { %v1594_v9 = vmul.f32 %v3991_v37, %v1593_v47  ;;  %v1630_v47 = vand.u32 2147483648, %v5776_v61  ;;  %v1777_v18 = vsel %vm5848_vm6, %v5729_v58, %v5802_v62  ;;  %v1393_v3 = vsel %vm5805_vm3, %v1392_v51, %v1388_v52  ;;  %vm5864_vm12 = vmor %vm1399_vm9, %vm1400_vm8 }
 0x4e4   : > { %v1402_v54 = vsel %vm5864_vm12, %v5747_v44, %v1398_v8  ;;  %vm1624_vm3 = vweird.f32 %v5776_v61  ;;  %v1406_v41 = vor.u32 1.1754944e-38, %v1405_v6  ;;  %vm1404_vm8 = vcmp.eq.f32.partialorder %v1403_v46, 8.507059e+37  ;;  %v7384_v8 = vld [vmem:[#allocation11_spill] sm:$0xff] }
 0x4e5   : > { %v3993_v27 = vpop.eup %3992  ;;  %v1595_v32 = vadd.f32 %v3991_v37, %v1594_v9  ;;  %2735 = vrot.lane.b32.xlu0 %v5467_v38, %s4091_s10  ;;  %v1631_v39 = vor.u32 1.1754944e-38, %v1630_v47  ;;  %vm1629_vm6 = vcmp.eq.f32.partialorder %v1628_v31, 8.507059e+37  ;;  %4000 = vrcp.f32 %v5518_v57 }
 0x4e6   : > { %v3995_v23 = vpop.eup %3994  ;;  %v1606_v30 = vmul.f32 %v3993_v27, %v5770_v43  ;;  %vm1611_vm11 = vweird.f32 %v3993_v27 }
 0x4e7   : > { %v1599_v29 = vsel %vm1598_vm13, %v3991_v37, %v1595_v32  ;;  %v1620_v38 = vmul.f32 %v3995_v23, %v5776_v61  ;;  %v1616_v37 = vand.u32 2147483648, %v5770_v43  ;;  %vm1625_vm7 = vweird.f32 %v3995_v23  ;;  %vm1612_vm13 = vmor %vm1610_vm1, %vm1611_vm11 }
 0x4e8   : > { %v1604_v25 = vsel %vm1601_vm14, %v1603_v56, %v1599_v29  ;;  %v1607_v49 = vsub.f32 1.0, %v1606_v30  ;;  %2319 = vrot.lane.b32.xlu1 %v5347_v48, %s4091_s10  ;;  %vm1615_vm14 = vcmp.eq.f32.partialorder %v1614_v7, 8.507059e+37  ;;  %vm1626_vm9 = vmor %vm1624_vm3, %vm1625_vm7  ;;  %v1781_v43 = vor.u32 1.1754944e-38, %v1780_v35 }
 0x4e9   : > { %v5834_v2 = vsel %vm3485_vm15, %v1379_v53, %v1604_v25  ;;  %v1621_v26 = vsub.f32 1.0, %v1620_v38  ;;  %v1617_v58 = vor.u32 1.1754944e-38, %v1616_v37  ;;  %v1407_v32 = vsel %vm1404_vm8, %v1406_v41, %v1402_v54  ;;  %vm1762_vm11 = vmor %vm1760_vm2, %vm1761_vm10  ;;  %v5929_v37 = vpop.permute.xlu2 %2731 }
 0x4ea   : > { %v1608_v19 = vmul.f32 %v3993_v27, %v1607_v49  ;;  %vm1779_vm7 = vcmp.eq.f32.partialorder %v1778_v1, 8.507059e+37  ;;  %v1767_v56 = vor.u32 1.1754944e-38, %v1766_v55  ;;  %vm1765_vm10 = vcmp.eq.f32.partialorder %v1764_v21, 8.507059e+37  ;;  %v7382_v55 = vld [vmem:[#allocation9_spill] sm:$0xff]  ;;  %v5925_v49 = vpop.eup %3996 }
 0x4eb   : > { %v1622_v16 = vmul.f32 %v3995_v23, %v1621_v26  ;;  %v1782_v35 = vsel %vm1779_vm7, %v1781_v43, %v1777_v18  ;;  %v2111_v21 = vsel %vm1223_vm5, %v7383_v11, 0.0  ;;  %v1919_v38 = vsel %vm1223_vm5, %v5710_v45, 0.0  ;;  %v5935_v47 = vpop.eup %3998 }
 0x4ec   : > { %v1609_v63 = vadd.f32 %v3993_v27, %v1608_v19  ;;  %v5896_v30 = vsel %vm3494_vm0, %v5664_v5, %v1782_v35  ;;  %v2114_v5 = vsel %vm1223_vm5, %v7382_v55, 0.0  ;;  %v2527_v25 = vsel %vm1223_vm5, %v7384_v8, 0.0  ;;  %v5937_v48 = vpop.eup %4000 }
 0x4ed   : > { %v1623_v62 = vadd.f32 %v3995_v23, %v1622_v16  ;;  %v2338_v7 = vsel %vm1223_vm5, %v5735_v33, 0.0  ;;  %v1798_v26 = vmul.f32 %v5925_v49, %v5453_v17  ;;  %v2335_v19 = vsel %vm1223_vm5, %v5555_v20, 0.0  ;;  %v3378_v33 = vpop.f32.mrf.mxu1 }
 0x4ee   : > { %v1613_v53 = vsel %vm1612_vm13, %v3993_v27, %v1609_v63  ;;  %v1763_v27 = vsel %vm1762_vm11, %v5715_v40, %v5758_v12  ;;  %v1922_v40 = vsel %vm1223_vm5, %v5720_v15, 0.0  ;;  %v1784_v18 = vmul.f32 %v5935_v47, %v5461_v28 }
 0x4ef   : > { %v1618_v0 = vsel %vm1615_vm14, %v1617_v58, %v1613_v53  ;;  %v1627_v51 = vsel %vm1626_vm9, %v3995_v23, %v1623_v62  ;;  %v5890_v23 = vpop.f32.mrf.mxu2  ;;  %v1768_v59 = vsel %vm1765_vm10, %v1767_v56, %v1763_v27  ;;  %v2726_v29 = vpop.permute.xlu1 %2725  ;;  %v1799_v31 = vsub.f32 1.0, %v1798_v26  ;;  %v7385_v62 = vld [vmem:[#allocation12_spill] sm:$0xff] }
 0x4f0   : > { %v5877_v44 = vsel %vm3485_vm15, %v1393_v3, %v1618_v0  ;;  %v1632_v52 = vsel %vm1629_vm6, %v1631_v39, %v1627_v51  ;;  %v5902_v1 = vsel %vm3494_vm0, %v5671_v34, %v1768_v59  ;;  %v2754_v3 = vsel %vm1223_vm5, %v5713_v13, 0.0  ;;  %v3436_v13 = vpop.f32.mrf.mxu3 }
 0x4f1   : > { %v5886_v61 = vsel %vm3485_vm15, %v1407_v32, %v1632_v52  ;;  %v5919_v15 = vpop.permute.xlu0 %1897  ;;  %v1812_v9 = vmul.f32 %v5937_v48, %v5518_v57  ;;  %v2751_v20 = vsel %vm1223_vm5, %v2726_v29, 0.0  ;;  %v1800_v54 = vmul.f32 %v5925_v49, %v1799_v31 }
 0x4f2   : > { %v1785_v58 = vsub.f32 1.0, %v1784_v18  ;;  %v2530_v41 = vsel %vm1223_vm5, %v7385_v62, 0.0  ;;  %v1806_v51 = vand.u32 2147483647, %v5453_v17  ;;  %v2117_v32 = vsel %vm1223_vm5, %v5222_v4, 0.0 }
 0x4f3   : > { %v1813_v53 = vsub.f32 1.0, %v1812_v9  ;;  %v1801_v27 = vadd.f32 %v5925_v49, %v1800_v54  ;;  %vm1803_vm15 = vweird.f32 %v5925_v49  ;;  %vm1802_vm2 = vweird.f32 %v5453_v17 }
 0x4f4   : > { %v1786_v35 = vmul.f32 %v5935_v47, %v1785_v58  ;;  %v5980_v29 = vsel %vm1223_vm5, %v5310_v24, 0.0  ;;  %v5984_v11 = vsel %vm1223_vm5, %v5335_v22, 0.0  ;;  %vm5990_vm12 = vmor %vm1802_vm2, %vm1803_vm15  ;;  %vm5994_vm1 = vcmp.eq.f32.partialorder %v1806_v51, 8.507059e+37 }
 0x4f5   : > { %v1814_v56 = vmul.f32 %v5937_v48, %v1813_v53  ;;  %v3380_v4 = vpop.f32.mrf.mxu1  ;;  %v1808_v24 = vand.u32 2147483648, %v5453_v17  ;;  %v1805_v22 = vsel %vm5990_vm12, %v5925_v49, %v1801_v27  ;;  %vm1789_vm13 = vweird.f32 %v5935_v47 }
 0x4f6   : > { %vm1817_vm3 = vweird.f32 %v5937_v48  ;;  %vm1788_vm14 = vweird.f32 %v5461_v28  ;;  %vm1816_vm8 = vweird.f32 %v5518_v57  ;;  %v1820_v31 = vand.u32 2147483647, %v5518_v57 }
 0x4f7   : > { %v5904_v6 = vpop.f32.mrf.mxu2  ;;  %v1900_v45 = vpop.permute.xlu1 %1899  ;;  %vm6021_vm9 = vmor %vm1788_vm14, %vm1789_vm13  ;;  %v1809_v9 = vor.u32 1.1754944e-38, %v1808_v24  ;;  %v2341_v62 = vsel %vm1223_vm5, %v5739_v10, 0.0  ;;  %vm7336_vm12 = vcmask 97280  }
 0x4f8   : > { %v1928_v59 = vsel %vm1223_vm5, %v1900_v45, 0.0  ;;  %v1815_v45 = vadd.f32 %v5937_v48, %v1814_v56  ;;  %vm6037_vm6 = vmor %vm1816_vm8, %vm1817_vm3  ;;  %vm1821_vm7 = vcmp.eq.f32.partialorder %v1820_v31, 8.507059e+37  ;;  %v6069_v56 = vsel %vm1223_vm5, %v5929_v37, 0.0 }
 0x4f9   : > { %v5939_v16 = vpop.permute.xlu0 %2315  ;;  %vm7335_vm8 = vcmask 130048  }
 0x4fa   : > { %v1819_v58 = vsel %vm6037_vm6, %v5937_v48, %v1815_v45 }
 0x4ff   : > { %v5908_v12 = vpop.f32.mrf.mxu2  ;;  %v5954_v39 = vpop.permute.xlu1 %2729 }
 0x500   : > { %v2757_v37 = vsel %vm1223_vm5, %v5954_v39, 0.0 }
 0x506   : > { %1923 = vadd.xlane.f32.xlu2 %v1922_v40  ;;  %v5969_v40 = vsel %vm1223_vm5, %v5231_v50, 0.0 }
 0x507   : > { %v5915_v34 = vpop.f32.mrf.mxu2 }
 0x50e   : > { %2115 = vadd.xlane.f32.xlu2 %v2114_v5  ;;  %v5976_v5 = vsel %vm1223_vm5, %v5314_v60, 0.0 }
 0x50f   : > { %2112 = vadd.xlane.f32.xlu0 %v2111_v21  ;;  %v3407_v46 = vpop.f32.mrf.mxu2 }
 0x510   : > { %v3408_v0 = vadd.f32 %v3407_v46, %v3378_v33  ;;  %v1792_v33 = vand.u32 2147483647, %v5461_v28 }
 0x512   : > { %1920 = vadd.xlane.f32.xlu1 %v1919_v38  ;;  %v5986_v50 = vadd.f32 %v3436_v13, %v3408_v0  ;;  %v6053_v13 = vsel %vm5994_vm1, %v1809_v9, %v1805_v22  ;;  %vm1793_vm11 = vcmp.eq.f32.partialorder %v1792_v33, 8.507059e+37  ;;  %v3763_v33 = vld [vmem:[%s7311_s3] sm:$0xff] }
 0x516   : > { %2528 = vadd.xlane.f32.xlu2 %v2527_v25  ;;  %v1787_v25 = vadd.f32 %v5935_v47, %v1786_v35 }
 0x517   : > { %2339 = vadd.xlane.f32.xlu0 %v2338_v7  ;;  %v3409_v52 = vpop.f32.mrf.mxu2  ;;  %v1925_v7 = vsel %vm1223_vm5, %v5919_v15, 0.0  ;;  %v1822_v15 = vand.u32 2147483648, %v5518_v57  ;;  %v3438_v57 = vpop.f32.mrf.mxu3 }
 0x518   : > { %v3410_v21 = vadd.f32 %v3409_v52, %v3380_v4 }
 0x519   : > { %v1823_v0 = vor.u32 1.1754944e-38, %v1822_v15 }
 0x51a   : > { %2336 = vadd.xlane.f32.xlu1 %v2335_v19  ;;  %v1794_v19 = vand.u32 2147483648, %v5461_v28  ;;  %v2344_v28 = vsel %vm1223_vm5, %v5939_v16, 0.0  ;;  %v6049_v53 = vadd.f32 %v3438_v57, %v3410_v21 }
 0x51b   : > { %v6065_v35 = vsel %vm1821_vm7, %v1823_v0, %v1819_v58 }
 0x51c   : > { %v1795_v16 = vor.u32 1.1754944e-38, %v1794_v19 }
 0x51e   : > { %2755 = vadd.xlane.f32.xlu2 %v2754_v3 }
 0x51f   : > { %2752 = vadd.xlane.f32.xlu0 %v2751_v20  ;;  %v1791_v20 = vsel %vm6021_vm9, %v5935_v47, %v1787_v25  ;;  %v3764_v25 = vld [vmem:[%s7311_s3 + $0x8] sm:$0xff] }
 0x520   : > { %v5948_v63 = vpop.xlane.xlu2 %2106  ;;  %v6063_v27 = vsel %vm1793_vm11, %v1795_v16, %v1791_v20  ;;  %3598 = vmatpush.bf16.msra.mxu1 %v3764_v25 }
 0x521   : > { %4002 = vrcp.f32 %v5948_v63  ;;  %v2138_v48 = vand.u32 2147483647, %v5948_v63  ;;  %v2140_v10 = vand.u32 2147483648, %v5948_v63  ;;  %vm2134_vm10 = vweird.f32 %v5948_v63 }
 0x522   : > { %2531 = vadd.xlane.f32.xlu1 %v2530_v41 }
 0x523   : > { %vm6091_vm15 = vcmp.eq.f32.partialorder %v2138_v48, 8.507059e+37 }
 0x524   : > { %v5957_v43 = vpop.xlane.xlu0 %1914  ;;  %3599 = vmatpush.bf16.msra.mxu1 %v3763_v33 }
 0x525   : > { %4004 = vrcp.f32 %v5957_v43  ;;  %v1948_v45 = vand.u32 2147483648, %v5957_v43  ;;  %vm1942_vm1 = vweird.f32 %v5957_v43 }
 0x526   : > { %2118 = vadd.xlane.f32.xlu2 %v2117_v32 }
 0x527   : > { %v5971_v55 = vpop.eup %4002  ;;  %1929 = vadd.xlane.f32.xlu0 %v1928_v59  ;;  %v1946_v59 = vand.u32 2147483647, %v5957_v43 }
 0x528   : > { %v5999_v8 = vpop.xlane.xlu2 %2333  ;;  %v2130_v17 = vmul.f32 %v5971_v55, %v5948_v63  ;;  %vm2135_vm2 = vweird.f32 %v5971_v55 }
 0x529   : > { %4006 = vrcp.f32 %v5999_v8  ;;  %vm6102_vm13 = vcmp.eq.f32.partialorder %v1946_v59, 8.507059e+37  ;;  %v2378_v46 = vand.u32 2147483648, %v5999_v8  ;;  %vm6123_vm14 = vmor %vm2134_vm10, %vm2135_vm2  ;;  %vm2372_vm9 = vweird.f32 %v5999_v8 }
 0x52a   : > { %v6013_v26 = vpop.xlane.xlu1 %1917  ;;  %1926 = vadd.xlane.f32.xlu1 %v1925_v7  ;;  %v2131_v47 = vsub.f32 1.0, %v2130_v17 }
 0x52b   : > { %v6015_v49 = vpop.eup %4004  ;;  %4008 = vrcp.f32 %v6013_v26  ;;  %v1960_v9 = vand.u32 2147483647, %v6013_v26  ;;  %v1962_v54 = vand.u32 2147483648, %v6013_v26  ;;  %vm1956_vm11 = vweird.f32 %v6013_v26 }
 0x52c   : > { %v1938_v18 = vmul.f32 %v6015_v49, %v5957_v43  ;;  %v6030_v3 = vpop.xlane.xlu0 %2109  ;;  %v2132_v4 = vmul.f32 %v5971_v55, %v2131_v47  ;;  %vm1943_vm3 = vweird.f32 %v6015_v49  ;;  %v2376_v47 = vand.u32 2147483647, %v5999_v8 }
 0x52d   : > { %4010 = vrcp.f32 %v6030_v3  ;;  %vm6136_vm6 = vmor %vm1942_vm1, %vm1943_vm3  ;;  %vm2148_vm7 = vweird.f32 %v6030_v3  ;;  %v2152_v0 = vand.u32 2147483647, %v6030_v3  ;;  %vm6151_vm10 = vcmp.eq.f32.partialorder %v1960_v9, 8.507059e+37 }
 0x52e   : > { %v1939_v41 = vsub.f32 1.0, %v1938_v18  ;;  %2345 = vadd.xlane.f32.xlu2 %v2344_v28  ;;  %v2133_v31 = vadd.f32 %v5971_v55, %v2132_v4  ;;  %v2154_v59 = vand.u32 2147483648, %v6030_v3 }
 0x52f   : > { %2342 = vadd.xlane.f32.xlu0 %v2341_v62  ;;  %v6055_v51 = vpop.eup %4006  ;;  %v1949_v62 = vor.u32 1.1754944e-38, %v1948_v45  ;;  %vm6176_vm3 = vcmp.eq.f32.partialorder %v2152_v0, 8.507059e+37 }
 0x530   : > { %v6059_v32 = vpop.xlane.xlu2 %2746  ;;  %v1940_v21 = vmul.f32 %v6015_v49, %v1939_v41  ;;  %v2368_v22 = vmul.f32 %v6055_v51, %v5999_v8  ;;  %v2137_v48 = vsel %vm6123_vm14, %v5971_v55, %v2133_v31  ;;  %vm2373_vm2 = vweird.f32 %v6055_v51 }
 0x531   : > { %v6061_v52 = vpop.eup %4008  ;;  %4012 = vrcp.f32 %v6059_v32  ;;  %v1963_v55 = vor.u32 1.1754944e-38, %v1962_v54  ;;  %v2778_v9 = vand.u32 2147483647, %v6059_v32  ;;  %vm6200_vm14 = vcmp.eq.f32.partialorder %v2376_v47, 8.507059e+37 }
 0x532   : > { %v1952_v38 = vmul.f32 %v6061_v52, %v6013_v26  ;;  %v6077_v60 = vpop.xlane.xlu1 %2330  ;;  %2121 = vadd.xlane.f32.xlu1 %v5969_v40  ;;  %v2141_v40 = vor.u32 1.1754944e-38, %v2140_v10  ;;  %v1941_v18 = vadd.f32 %v6015_v49, %v1940_v21  ;;  %v2369_v20 = vsub.f32 1.0, %v2368_v22 }
 0x533   : > { %v6080_v24 = vpop.eup %4010  ;;  %4014 = vrcp.f32 %v6077_v60  ;;  %vm1957_vm1 = vweird.f32 %v6061_v52  ;;  %vm2774_vm4 = vweird.f32 %v6059_v32  ;;  %v2362_v8 = vand.u32 2147483647, %v6077_v60 }
 0x534   : > { %v1953_v17 = vsub.f32 1.0, %v1952_v38  ;;  %v2144_v39 = vmul.f32 %v6080_v24, %v6030_v3  ;;  %v6098_v19 = vpop.xlane.xlu0 %2522  ;;  %v1945_v43 = vsel %vm6136_vm6, %v6015_v49, %v1941_v18  ;;  %v2370_v38 = vmul.f32 %v6055_v51, %v2369_v20  ;;  %vm6211_vm6 = vmor %vm2372_vm9, %vm2373_vm2 }
 0x535   : > { %4016 = vrcp.f32 %v6098_v19  ;;  %v2155_v18 = vor.u32 1.1754944e-38, %v2154_v59  ;;  %vm7334_vm9 = vcmask 162816   ;;  %v2364_v47 = vand.u32 2147483648, %v6077_v60 }
 0x536   : > { %2758 = vadd.xlane.f32.xlu2 %v2757_v37  ;;  %v2145_v28 = vsub.f32 1.0, %v2144_v39  ;;  %v1954_v41 = vmul.f32 %v6061_v52, %v1953_v17  ;;  %v1950_v39 = vsel %vm6102_vm13, %v1949_v62, %v1945_v43  ;;  %vm2149_vm13 = vweird.f32 %v6080_v24 }
 0x537   : > { %2537 = vadd.xlane.f32.xlu0 %v5976_v5  ;;  %v6117_v57 = vpop.eup %4012  ;;  %v6140_v5 = vor.u32 1.1754944e-38, %v2378_v46  ;;  %v2780_v46 = vand.u32 2147483648, %v6059_v32  ;;  %v3504_v58 = vsel %vm7336_vm12, %v5689_v36, %v1950_v39  ;;  %v2556_v10 = vand.u32 2147483648, %v6098_v19 }
 0x538   : > { %v1904_v21 = vpop.permute.xlu2 %1903  ;;  %v2146_v37 = vmul.f32 %v6080_v24, %v2145_v28  ;;  %v1955_v49 = vadd.f32 %v6061_v52, %v1954_v41  ;;  %v2770_v22 = vmul.f32 %v6117_v57, %v6059_v32 }
 0x539   : > { %v6130_v16 = vpop.eup %4014  ;;  %v1934_v33 = vsel %vm1223_vm5, %v1904_v21, 0.0 }
 0x53a   : > { %v2354_v4 = vmul.f32 %v6130_v16, %v6077_v60  ;;  %2534 = vadd.xlane.f32.xlu1 %v5980_v29  ;;  %v6166_v45 = vpop.xlane.xlu1 %2525  ;;  %v2142_v29 = vsel %vm6091_vm15, %v2141_v40, %v2137_v48  ;;  %v2371_v40 = vadd.f32 %v6055_v51, %v2370_v38  ;;  %vm6189_vm15 = vmor %vm1956_vm11, %vm1957_vm1  ;;  %v2147_v54 = vadd.f32 %v6080_v24, %v2146_v37 }
 0x53b   : > { %v6168_v17 = vpop.eup %4016  ;;  %4018 = vrcp.f32 %v6166_v45  ;;  %v1959_v26 = vsel %vm6189_vm15, %v6061_v52, %v1955_v49  ;;  %v2771_v41 = vsub.f32 1.0, %v2770_v22  ;;  %v6215_v48 = vor.u32 1.1754944e-38, %v2780_v46  ;;  %vm6222_vm15 = vmor %vm2148_vm7, %vm2149_vm13 }
 0x53c   : > { %v2355_v25 = vsub.f32 1.0, %v2354_v4  ;;  %v2546_v7 = vmul.f32 %v6168_v17, %v6098_v19  ;;  %v6196_v28 = vpop.xlane.xlu0 %2749  ;;  %vm2358_vm11 = vweird.f32 %v6077_v60  ;;  %vm2359_vm1 = vweird.f32 %v6130_v16 }
 0x53d   : > { %4020 = vrcp.f32 %v6196_v28  ;;  %v2375_v3 = vsel %vm6211_vm6, %v6055_v51, %v2371_v40  ;;  %v1964_v59 = vsel %vm6151_vm10, %v1963_v55, %v1959_v26  ;;  %v2151_v4 = vsel %vm6222_vm15, %v6080_v24, %v2147_v54  ;;  %vm6246_vm2 = vmor %vm2358_vm11, %vm2359_vm1 }
 0x53e   : > { %v2356_v20 = vmul.f32 %v6130_v16, %v2355_v25  ;;  %1935 = vadd.xlane.f32.xlu2 %v1934_v33  ;;  %v2547_v63 = vsub.f32 1.0, %v2546_v7  ;;  %v3513_v21 = vsel %vm7335_vm8, %v3504_v58, %v2142_v29  ;;  %vm7333_vm7 = vcmask 195584   ;;  %v3465_v29 = vpop.f32.mrf.mxu0 }
 0x53f   : > { %v2772_v38 = vmul.f32 %v6117_v57, %v2771_v41  ;;  %vm2551_vm10 = vweird.f32 %v6168_v17  ;;  %v6259_v37 = vsel %vm3494_vm0, %v5834_v2, %v6063_v27  ;;  %v6264_v60 = vsel %vm3494_vm0, %v5886_v61, %v6065_v35 }
 0x540   : > { %v2357_v36 = vadd.f32 %v6130_v16, %v2356_v20  ;;  %v2548_v43 = vmul.f32 %v6168_v17, %v2547_v63  ;;  %v6269_v49 = vsel %vm3494_vm0, %v5877_v44, %v6053_v13  ;;  %v2365_v22 = vor.u32 1.1754944e-38, %v2364_v47  ;;  %v7425_v44 = vld [vmem:[#allocation5_spill] sm:$0xff] }
 0x541   : > { %v4019_v24 = vpop.eup %4018  ;;  %vm2550_vm13 = vweird.f32 %v6098_v19  ;;  %v3505_v2 = vsel %vm7336_vm12, %v5675_v42, %v1964_v59  ;;  %v2156_v61 = vsel %vm6176_vm3, %v2155_v18, %v2151_v4  ;;  %vm2775_vm6 = vweird.f32 %v6117_v57 }
 0x542   : > { %2761 = vadd.xlane.f32.xlu1 %v6069_v56  ;;  %v2549_v51 = vadd.f32 %v6168_v17, %v2548_v43  ;;  %v2361_v55 = vsel %vm6246_vm2, %v6130_v16, %v2357_v36  ;;  %v2554_v16 = vand.u32 2147483647, %v6098_v19  ;;  %v2560_v25 = vmul.f32 %v4019_v24, %v6166_v45  ;;  %vm6285_vm1 = vmor %vm2550_vm13, %vm2551_vm10 }
 0x543   : > { %vm6279_vm11 = vcmp.eq.f32.partialorder %v2778_v9, 8.507059e+37  ;;  %vm2363_vm0 = vcmp.eq.f32.partialorder %v2362_v8, 8.507059e+37  ;;  %v4021_v13 = vpop.eup %4020  ;;  %v2773_v35 = vadd.f32 %v6117_v57, %v2772_v38  ;;  %v2380_v46 = vsel %vm6200_vm14, %v6140_v5, %v2375_v3  ;;  %vm6305_vm2 = vmor %vm2774_vm4, %vm2775_vm6 }
 0x544   : > { %v2366_v42 = vsel %vm2363_vm0, %v2365_v22, %v2361_v55  ;;  %v2553_v19 = vsel %vm6285_vm1, %v6168_v17, %v2549_v51  ;;  %v2561_v39 = vsub.f32 1.0, %v2560_v25  ;;  %v2557_v33 = vor.u32 1.1754944e-38, %v2556_v10  ;;  %v7423_v22 = vld [vmem:[#allocation7_spill] sm:$0xff] }
 0x545   : > { %v2570_v31 = vand.u32 2147483648, %v6166_v45  ;;  %v2784_v18 = vmul.f32 %v4021_v13, %v6196_v28  ;;  %vm2555_vm3 = vcmp.eq.f32.partialorder %v2554_v16, 8.507059e+37  ;;  %vm2565_vm15 = vweird.f32 %v4019_v24 }
 0x546   : > { %v2562_v9 = vmul.f32 %v4019_v24, %v2561_v39  ;;  %v2568_v20 = vand.u32 2147483647, %v6166_v45  ;;  %v3514_v7 = vsel %vm7335_vm8, %v3505_v2, %v2156_v61  ;;  %v3522_v17 = vsel %vm7334_vm9, %v3513_v21, %v2366_v42  ;;  %v3467_v3 = vpop.f32.mrf.mxu0  ;;  %v2734_v61 = vpop.permute.xlu2 %2733 }
 0x547   : > { %v2558_v40 = vsel %vm2555_vm3, %v2557_v33, %v2553_v19  ;;  %v2785_v15 = vsub.f32 1.0, %v2784_v18  ;;  %v2777_v54 = vsel %vm6305_vm2, %v6117_v57, %v2773_v35  ;;  %vm2564_vm14 = vweird.f32 %v6166_v45  ;;  %v3441_v39 = vpop.f32.mrf.mxu3 }
 0x548   : > { %v2563_v58 = vadd.f32 %v4019_v24, %v2562_v9  ;;  %vm2566_vm10 = vmor %vm2564_vm14, %vm2565_vm15  ;;  %v2571_v62 = vor.u32 1.1754944e-38, %v2570_v31  ;;  %vm2789_vm4 = vweird.f32 %v4021_v13  ;;  %v2792_v26 = vand.u32 2147483647, %v6196_v28 }
 0x549   : > { %v2786_v32 = vmul.f32 %v4021_v13, %v2785_v15  ;;  %v3531_v41 = vsel %vm7333_vm7, %v3522_v17, %v2558_v40  ;;  %vm2569_vm13 = vcmp.eq.f32.partialorder %v2568_v20, 8.507059e+37  ;;  %vm7332_vm6 = vcmask 228352   ;;  %v3383_v20 = vpop.f32.mrf.mxu1 }
 0x54a   : > { %2124 = vadd.xlane.f32.xlu1 %v5984_v11  ;;  %v2794_v11 = vand.u32 2147483648, %v6196_v28  ;;  %v2567_v63 = vsel %vm2566_vm10, %v4019_v24, %v2563_v58  ;;  %v3523_v36 = vsel %vm7334_vm9, %v3514_v7, %v2380_v46  ;;  %vm2788_vm0 = vweird.f32 %v6196_v28 }
 0x54b   : > { %v2572_v0 = vsel %vm2569_vm13, %v2571_v62, %v2567_v63  ;;  %v2787_v57 = vadd.f32 %v4021_v13, %v2786_v32  ;;  %v2782_v52 = vsel %vm6279_vm11, %v6215_v48, %v2777_v54  ;;  %vm2790_vm1 = vmor %vm2788_vm0, %vm2789_vm4  ;;  %vm2793_vm3 = vcmp.eq.f32.partialorder %v2792_v26, 8.507059e+37 }
 0x54c   : > { %v3532_v8 = vsel %vm7333_vm7, %v3523_v36, %v2572_v0  ;;  %v2795_v47 = vor.u32 1.1754944e-38, %v2794_v11  ;;  %v3540_v4 = vsel %vm7332_vm6, %v3531_v41, %v2782_v52  ;;  %v3466_v21 = vadd.f32 %v3465_v29, %v5986_v50  ;;  %v3412_v50 = vpop.f32.mrf.mxu2  ;;  %v7424_v29 = vld [vmem:[#allocation13_spill] sm:$0xff] }
 0x54d   : > { %v2791_v59 = vsel %vm2790_vm1, %v4021_v13, %v2787_v57  ;;  %v3468_v28 = vadd.f32 %v3467_v3, %v6049_v53  ;;  %vm7422_vm11 = vcmask 261120   ;;  %v2542_v16 = vsel %vm1223_vm5, %v7423_v22, 0.0 }
 0x54e   : > { %v2796_v38 = vsel %vm2793_vm3, %v2795_v47, %v2791_v59  ;;  %v3548_v10 = vmul.f32 %v3540_v4, %v3466_v21  ;;  %v2126_v2 = vsel %vm1223_vm5, %v7424_v29, 0.0  ;;  %v2763_v27 = vsel %vm1223_vm5, %v2734_v61, 0.0  ;;  %v3470_v33 = vpop.f32.mrf.mxu0 }
 0x54f   : > { %v2318_v45 = vpop.permute.xlu0 %2317  ;;  %v3541_v48 = vsel %vm7332_vm6, %v3532_v8, %v2796_v38  ;;  %v2539_v13 = vsel %vm1223_vm5, %v7425_v44, 0.0  ;;  %v3443_v31 = vpop.f32.mrf.mxu3  ;;  %v3413_v11 = vadd.f32 %v3412_v50, %v3383_v20 }
 0x550   : > { %v2347_v43 = vsel %vm1223_vm5, %v2318_v45, 0.0  ;;  %v3549_v24 = vmul.f32 %v3541_v48, %v3468_v28 }
 0x551   : > { %2348 = vadd.xlane.f32.xlu2 %v2347_v43  ;;  %v3385_v26 = vpop.f32.mrf.mxu1  ;;  %v3442_v52 = vadd.f32 %v3441_v39, %v3413_v11 }
 0x552   : > { %v1902_v56 = vpop.permute.xlu1 %1901  ;;  %v3556_v55 = vpack.c.bf16 %v3549_v24, %v3548_v10 }
 0x553   : > { %v1931_v51 = vsel %vm1223_vm5, %v1902_v56, 0.0  ;;  %v6372_v28 = vadd.f32 %v3470_v33, %v3442_v52 }
 0x554   : > { %1932 = vadd.xlane.f32.xlu0 %v1931_v51  ;;  %3749 = vmatmul.msk.bf16.vlgmr.msra.gmra.mxu1 %vm7422_vm11, %v3556_v55  ;;  %v3414_v35 = vpop.f32.mrf.mxu2 }
 0x555   : > { %v3415_v0 = vadd.f32 %v3414_v35, %v3385_v26 }
 0x556   : > { %v3472_v7 = vpop.f32.mrf.mxu0 }
 0x557   : > { %v2736_v42 = vpop.permute.xlu0 %2735  ;;  %v3446_v5 = vpop.f32.mrf.mxu3 }
 0x558   : > { %v2766_v19 = vsel %vm1223_vm5, %v2736_v42, 0.0 }
 0x559   : > { %2543 = vadd.xlane.f32.xlu2 %v2542_v16 }
 0x55a   : > { %v2320_v25 = vpop.permute.xlu1 %2319 }
 0x55b   : > { %v2350_v53 = vsel %vm1223_vm5, %v2320_v25, 0.0 }
 0x55c   : > { %2127 = vadd.xlane.f32.xlu0 %v2126_v2  ;;  %2351 = vadd.xlane.f32.xlu1 %v2350_v53  ;;  %v3417_v46 = vpop.f32.mrf.mxu2 }
 0x55d   : > { %v3418_v36 = vadd.f32 %v3417_v46, %v5890_v23  ;;  %v3444_v23 = vadd.f32 %v3443_v31, %v3415_v0 }
 0x55e   : > { %v3475_v62 = vpop.f32.mrf.mxu0 }
 0x55f   : > { %v3448_v45 = vpop.f32.mrf.mxu3  ;;  %v3447_v21 = vadd.f32 %v3446_v5, %v3418_v36  ;;  %v6388_v50 = vadd.f32 %v3472_v7, %v3444_v23 }
 0x561   : > { %v6390_v53 = vadd.f32 %v3475_v62, %v3447_v21 }
 0x564   : > { %2540 = vadd.xlane.f32.xlu0 %v2539_v13  ;;  %2764 = vadd.xlane.f32.xlu1 %v2763_v27  ;;  %v3419_v18 = vpop.f32.mrf.mxu2 }
 0x565   : > { %v3420_v57 = vadd.f32 %v3419_v18, %v5904_v6 }
 0x566   : > { %v3477_v55 = vpop.f32.mrf.mxu0 }
 0x567   : > { %v3449_v6 = vadd.f32 %v3448_v45, %v3420_v57  ;;  %v3451_v61 = vpop.f32.mrf.mxu3 }
 0x569   : > { %v6392_v29 = vadd.f32 %v3477_v55, %v3449_v6 }
 0x56c   : > { %2767 = vadd.xlane.f32.xlu0 %v2766_v19  ;;  %v3422_v54 = vpop.f32.mrf.mxu2 }
 0x56d   : > { %v3423_v38 = vadd.f32 %v3422_v54, %v5908_v12 }
 0x56f   : > { %v6405_v19 = vadd.f32 %v3451_v61, %v3423_v38 }
 0x574   : > { %v3424_v56 = vpop.f32.mrf.mxu2 }
 0x575   : > { %v6395_v2 = vadd.f32 %v3424_v56, %v5915_v34 }
 0x579   : > { %v6339_v9 = vpop.xlane.xlu2 %1923 }
 0x57a   : > { %4022 = vrcp.f32 %v6339_v9  ;;  %v1988_v51 = vand.u32 2147483647, %v6339_v9  ;;  %v1990_v10 = vand.u32 2147483648, %v6339_v9  ;;  %vm1984_vm15 = vweird.f32 %v6339_v9 }
 0x57c   : > { %vm6413_vm14 = vcmp.eq.f32.partialorder %v1988_v51, 8.507059e+37 }
 0x580   : > { %v6342_v17 = vpop.eup %4022 }
 0x581   : > { %v6344_v40 = vpop.xlane.xlu2 %2115  ;;  %v1980_v58 = vmul.f32 %v6342_v17, %v6339_v9  ;;  %vm1985_vm5 = vweird.f32 %v6342_v17  ;;  %v1991_v9 = vor.u32 1.1754944e-38, %v1990_v10 }
 0x582   : > { %4024 = vrcp.f32 %v6344_v40  ;;  %v6347_v15 = vpop.xlane.xlu0 %2112  ;;  %v2180_v27 = vand.u32 2147483647, %v6344_v40  ;;  %v2182_v44 = vand.u32 2147483648, %v6344_v40  ;;  %vm6409_vm2 = vmor %vm1984_vm15, %vm1985_vm5  ;;  %vm2176_vm10 = vweird.f32 %v6344_v40 }
 0x583   : > { %4026 = vrcp.f32 %v6347_v15  ;;  %v1981_v41 = vsub.f32 1.0, %v1980_v58  ;;  %v2168_v13 = vand.u32 2147483648, %v6347_v15  ;;  %v2166_v5 = vand.u32 2147483647, %v6347_v15 }
 0x584   : > { %vm6431_vm4 = vcmp.eq.f32.partialorder %v2180_v27, 8.507059e+37  ;;  %v2183_v26 = vor.u32 1.1754944e-38, %v2182_v44  ;;  %vm2162_vm13 = vweird.f32 %v6347_v15 }
 0x585   : > { %v6352_v32 = vpop.xlane.xlu1 %1920  ;;  %v1982_v3 = vmul.f32 %v6342_v17, %v1981_v41  ;;  %vm6461_vm5 = vcmp.eq.f32.partialorder %v2166_v5, 8.507059e+37 }
 0x586   : > { %4028 = vrcp.f32 %v6352_v32  ;;  %v1974_v54 = vand.u32 2147483647, %v6352_v32  ;;  %v1976_v58 = vand.u32 2147483648, %v6352_v32  ;;  %vm1970_vm0 = vweird.f32 %v6352_v32 }
 0x587   : > { %v1983_v22 = vadd.f32 %v6342_v17, %v1982_v3 }
 0x588   : > { %v6355_v63 = vpop.eup %4024  ;;  %vm6452_vm3 = vcmp.eq.f32.partialorder %v1974_v54, 8.507059e+37  ;;  %v1977_v21 = vor.u32 1.1754944e-38, %v1976_v58 }
 0x589   : > { %v6359_v8 = vpop.xlane.xlu2 %2528  ;;  %v6364_v43 = vpop.eup %4026  ;;  %v2172_v59 = vmul.f32 %v6355_v63, %v6344_v40  ;;  %v1987_v18 = vsel %vm6409_vm2, %v6342_v17, %v1983_v22  ;;  %v6436_v17 = vor.u32 1.1754944e-38, %v2168_v13  ;;  %vm2177_vm1 = vweird.f32 %v6355_v63 }
 0x58a   : > { %4030 = vrcp.f32 %v6359_v8  ;;  %v6362_v47 = vpop.xlane.xlu0 %2339  ;;  %v2158_v25 = vmul.f32 %v6364_v43, %v6347_v15  ;;  %v1992_v36 = vsel %vm6413_vm14, %v1991_v9, %v1987_v18  ;;  %v2582_v6 = vand.u32 2147483647, %v6359_v8  ;;  %vm6470_vm2 = vmor %vm2176_vm10, %vm2177_vm1 }
 0x58b   : > { %4032 = vrcp.f32 %v6362_v47  ;;  %v2173_v16 = vsub.f32 1.0, %v2172_v59  ;;  %v2584_v38 = vand.u32 2147483648, %v6359_v8  ;;  %v3507_v56 = vsel %vm7336_vm12, %v5902_v1, %v1992_v36 }
 0x58c   : > { %v6369_v4 = vpop.eup %4028  ;;  %v2159_v7 = vsub.f32 1.0, %v2158_v25  ;;  %vm2163_vm11 = vweird.f32 %v6364_v43  ;;  %vm2578_vm15 = vweird.f32 %v6359_v8  ;;  %vm2400_vm6 = vweird.f32 %v6362_v47 }
 0x58d   : > { %v6375_v48 = vpop.xlane.xlu1 %2336  ;;  %v1966_v24 = vmul.f32 %v6369_v4, %v6352_v32  ;;  %v2174_v20 = vmul.f32 %v6355_v63, %v2173_v16  ;;  %vm1971_vm14 = vweird.f32 %v6369_v4  ;;  %vm6485_vm10 = vcmp.eq.f32.partialorder %v2582_v6, 8.507059e+37 }
 0x58e   : > { %4034 = vrcp.f32 %v6375_v48  ;;  %v2160_v3 = vmul.f32 %v6364_v43, %v2159_v7  ;;  %v2585_v44 = vor.u32 1.1754944e-38, %v2584_v38  ;;  %v2404_v13 = vand.u32 2147483647, %v6362_v47  ;;  %vm6496_vm1 = vmor %vm1970_vm0, %vm1971_vm14 }
 0x58f   : > { %v1967_v46 = vsub.f32 1.0, %v1966_v24  ;;  %v2175_v52 = vadd.f32 %v6355_v63, %v2174_v20  ;;  %v2406_v34 = vand.u32 2147483648, %v6362_v47  ;;  %vm6512_vm0 = vmor %vm2162_vm13, %vm2163_vm11  ;;  %v2392_v5 = vand.u32 2147483648, %v6375_v48 }
 0x590   : > { %v6386_v12 = vpop.eup %4030  ;;  %v2161_v25 = vadd.f32 %v6364_v43, %v2160_v3  ;;  %vm6530_vm13 = vcmp.eq.f32.partialorder %v2404_v13, 8.507059e+37 }
 0x591   : > { %v6401_v35 = vpop.xlane.xlu2 %2755  ;;  %v6403_v42 = vpop.eup %4032  ;;  %v2574_v33 = vmul.f32 %v6386_v12, %v6359_v8  ;;  %v1968_v57 = vmul.f32 %v6369_v4, %v1967_v46  ;;  %v2179_v16 = vsel %vm6470_vm2, %v6355_v63, %v2175_v52  ;;  %vm2579_vm2 = vweird.f32 %v6386_v12 }
 0x592   : > { %v6419_v31 = vpop.xlane.xlu0 %2752  ;;  %v2396_v41 = vmul.f32 %v6403_v42, %v6362_v47  ;;  %4036 = vrcp.f32 %v6401_v35  ;;  %v2184_v9 = vsel %vm6431_vm4, %v2183_v26, %v2179_v16  ;;  %v2165_v54 = vsel %vm6512_vm0, %v6364_v43, %v2161_v25  ;;  %vm6545_vm11 = vmor %vm2578_vm15, %vm2579_vm2 }
 0x593   : > { %v2575_v45 = vsub.f32 1.0, %v2574_v33  ;;  %v1969_v22 = vadd.f32 %v6369_v4, %v1968_v57  ;;  %v2390_v33 = vand.u32 2147483647, %v6375_v48  ;;  %vm2386_vm4 = vweird.f32 %v6375_v48 }
 0x594   : > { %v6429_v11 = vpop.eup %4034  ;;  %v2397_v10 = vsub.f32 1.0, %v2396_v41  ;;  %v2822_v41 = vand.u32 2147483648, %v6401_v35  ;;  %v6537_v43 = vsel %vm7335_vm8, %v3507_v56, %v2184_v9  ;;  %vm2401_vm14 = vweird.f32 %v6403_v42 }
 0x595   : > { %v6441_v0 = vpop.xlane.xlu1 %2531  ;;  %v2382_v59 = vmul.f32 %v6429_v11, %v6375_v48  ;;  %v2576_v1 = vmul.f32 %v6386_v12, %v2575_v45  ;;  %v1973_v20 = vsel %vm6496_vm1, %v6369_v4, %v1969_v22  ;;  %v2407_v4 = vor.u32 1.1754944e-38, %v2406_v34 }
 0x596   : > { %4038 = vrcp.f32 %v6441_v0  ;;  %v2398_v46 = vmul.f32 %v6403_v42, %v2397_v10  ;;  %v1978_v36 = vsel %vm6452_vm3, %v1977_v21, %v1973_v20  ;;  %vm6551_vm1 = vcmp.eq.f32.partialorder %v2390_v33, 8.507059e+37 }
 0x597   : > { %v2383_v40 = vsub.f32 1.0, %v2382_v59  ;;  %4040 = vrcp.f32 %v6419_v31  ;;  %v2577_v7 = vadd.f32 %v6386_v12, %v2576_v1  ;;  %v6560_v59 = vsel %vm6461_vm5, %v6436_v17, %v2165_v54  ;;  %vm6580_vm5 = vmor %vm2400_vm6, %vm2401_vm14 }
 0x598   : > { %v6483_v61 = vpop.eup %4036  ;;  %v2399_v45 = vadd.f32 %v6403_v42, %v2398_v46  ;;  %v2393_v23 = vor.u32 1.1754944e-38, %v2392_v5  ;;  %vm2387_vm3 = vweird.f32 %v6429_v11  ;;  %v6576_v17 = vsel %vm7336_vm12, %v5842_v14, %v1978_v36 }
 0x599   : > { %v6466_v24 = vpop.xlane.xlu2 %2118  ;;  %v2384_v58 = vmul.f32 %v6429_v11, %v2383_v40  ;;  %v2812_v15 = vmul.f32 %v6483_v61, %v6401_v35  ;;  %v2581_v8 = vsel %vm6545_vm11, %v6386_v12, %v2577_v7  ;;  %v2820_v10 = vand.u32 2147483647, %v6401_v35  ;;  %vm6606_vm6 = vmor %vm2386_vm4, %vm2387_vm3 }
 0x59a   : > { %v6492_v39 = vpop.xlane.xlu0 %1929  ;;  %4042 = vrcp.f32 %v6466_v24  ;;  %v6585_v55 = vor.u32 1.1754944e-38, %v2822_v41  ;;  %v2808_v22 = vand.u32 2147483648, %v6419_v31  ;;  %v6590_v1 = vsel %vm6485_vm10, %v2585_v44, %v2581_v8 }
 0x59b   : > { %4044 = vrcp.f32 %v6492_v39  ;;  %v2385_v38 = vadd.f32 %v6429_v11, %v2384_v58  ;;  %v2813_v56 = vsub.f32 1.0, %v2812_v15  ;;  %v2403_v14 = vsel %vm6580_vm5, %v6403_v42, %v2399_v45 }
 0x59c   : > { %v6528_v62 = vpop.eup %4038  ;;  %v2806_v16 = vand.u32 2147483647, %v6419_v31  ;;  %v2598_v42 = vand.u32 2147483648, %v6441_v0  ;;  %v2196_v46 = vand.u32 2147483648, %v6466_v24  ;;  %v6625_v9 = vsel %vm6530_vm13, %v2407_v4, %v2403_v14 }
 0x59d   : > { %v6504_v18 = vpop.xlane.xlu1 %1926  ;;  %v6555_v3 = vpop.eup %4040  ;;  %v2588_v21 = vmul.f32 %v6528_v62, %v6441_v0  ;;  %v2389_v63 = vsel %vm6606_vm6, %v6429_v11, %v2385_v38  ;;  %v2814_v48 = vmul.f32 %v6483_v61, %v2813_v56  ;;  %v6627_v32 = vor.u32 1.1754944e-38, %v2808_v22 }
 0x59e   : > { %4046 = vrcp.f32 %v6504_v18  ;;  %v2798_v47 = vmul.f32 %v6555_v3, %v6419_v31  ;;  %vm2592_vm15 = vweird.f32 %v6441_v0  ;;  %v2596_v20 = vand.u32 2147483647, %v6441_v0 }
 0x59f   : > { %v2589_v44 = vsub.f32 1.0, %v2588_v21  ;;  %v2194_v5 = vand.u32 2147483647, %v6466_v24  ;;  %v6637_v58 = vsel %vm6551_vm1, %v2393_v23, %v2389_v63  ;;  %v6643_v41 = vadd.f32 %v6483_v61, %v2814_v48 }
 0x5a0   : > { %v6567_v6 = vpop.eup %4042  ;;  %v2799_v11 = vsub.f32 1.0, %v2798_v47  ;;  %vm2593_vm10 = vweird.f32 %v6528_v62  ;;  %v2599_v36 = vor.u32 1.1754944e-38, %v2598_v42  ;;  %v6646_v57 = vor.u32 1.1754944e-38, %v2196_v46 }
 0x5a1   : > { %v6572_v51 = vpop.xlane.xlu2 %2345  ;;  %v6600_v40 = vpop.eup %4044  ;;  %v2186_v13 = vmul.f32 %v6567_v6, %v6466_v24  ;;  %v2590_v15 = vmul.f32 %v6528_v62, %v2589_v44  ;;  %vm6650_vm2 = vcmp.eq.f32.partialorder %v2596_v20, 8.507059e+37  ;;  %vm2190_vm0 = vweird.f32 %v6466_v24  ;;  %vm6693_vm9 = vmor %vm2592_vm15, %vm2593_vm10 }
 0x5a2   : > { %4048 = vrcp.f32 %v6572_v51  ;;  %v6614_v34 = vpop.xlane.xlu0 %2342  ;;  %v2008_v33 = vmul.f32 %v6600_v40, %v6492_v39  ;;  %vm2012_vm4 = vweird.f32 %v6492_v39  ;;  %v2800_v21 = vmul.f32 %v6555_v3, %v2799_v11 }
 0x5a3   : > { %4050 = vrcp.f32 %v6614_v34  ;;  %v2187_v26 = vsub.f32 1.0, %v2186_v13  ;;  %v2016_v38 = vand.u32 2147483647, %v6492_v39  ;;  %v2018_v56 = vand.u32 2147483648, %v6492_v39 }
 0x5a4   : > { %v6631_v7 = vpop.eup %4046  ;;  %v2009_v54 = vsub.f32 1.0, %v2008_v33  ;;  %vm2803_vm13 = vweird.f32 %v6555_v3  ;;  %v2591_v47 = vadd.f32 %v6528_v62, %v2590_v15  ;;  %vm1998_vm11 = vweird.f32 %v6504_v18 }
 0x5a5   : > { %v6598_v25 = vpop.xlane.xlu1 %2121  ;;  %v1994_v4 = vmul.f32 %v6631_v7, %v6504_v18  ;;  %v2188_v27 = vmul.f32 %v6567_v6, %v2187_v26  ;;  %vm2817_vm14 = vweird.f32 %v6483_v61  ;;  %vm2191_vm1 = vweird.f32 %v6567_v6 }
 0x5a6   : > { %v2010_v8 = vmul.f32 %v6600_v40, %v2009_v54  ;;  %4052 = vrcp.f32 %v6598_v25  ;;  %vm2013_vm3 = vweird.f32 %v6600_v40  ;;  %v2002_v13 = vand.u32 2147483647, %v6504_v18 }
 0x5a7   : > { %v1995_v23 = vsub.f32 1.0, %v1994_v4  ;;  %v2004_v63 = vand.u32 2147483648, %v6504_v18  ;;  %vm2802_vm5 = vweird.f32 %v6419_v31  ;;  %vm6680_vm6 = vcmp.eq.f32.partialorder %v2194_v5, 8.507059e+37  ;;  %vm6719_vm15 = vmor %vm2012_vm4, %vm2013_vm3 }
 0x5a8   : > { %v6648_v45 = vpop.eup %4048  ;;  %v2011_v46 = vadd.f32 %v6600_v40, %v2010_v8  ;;  %vm6697_vm8 = vcmp.eq.f32.partialorder %v2016_v38, 8.507059e+37  ;;  %v2019_v54 = vor.u32 1.1754944e-38, %v2018_v56  ;;  %vm1999_vm12 = vweird.f32 %v6631_v7  ;;  %vm6753_vm3 = vmor %vm2190_vm0, %vm2191_vm1 }
 0x5a9   : > { %v2424_v12 = vmul.f32 %v6648_v45, %v6572_v51  ;;  %v6663_v22 = vpop.xlane.xlu2 %2758  ;;  %v1996_v44 = vmul.f32 %v6631_v7, %v1995_v23  ;;  %v6672_v42 = vpop.eup %4050  ;;  %v6706_v4 = vadd.f32 %v6555_v3, %v2800_v21  ;;  %v2595_v0 = vsel %vm6693_vm9, %v6528_v62, %v2591_v47  ;;  %vm6742_vm4 = vmor %vm1998_vm11, %vm1999_vm12 }
 0x5aa   : > { %v2410_v20 = vmul.f32 %v6672_v42, %v6614_v34  ;;  %4054 = vrcp.f32 %v6663_v22  ;;  %v2189_v8 = vadd.f32 %v6567_v6, %v2188_v27  ;;  %v2434_v23 = vand.u32 2147483648, %v6572_v51  ;;  %v6713_v38 = vpop.xlane.xlu0 %2537 }
 0x5ab   : > { %v2425_v33 = vsub.f32 1.0, %v2424_v12  ;;  %v1997_v15 = vadd.f32 %v6631_v7, %v1996_v44  ;;  %vm6723_vm10 = vcmp.eq.f32.partialorder %v2002_v13, 8.507059e+37  ;;  %vm2428_vm9 = vweird.f32 %v6572_v51 }
 0x5ac   : > { %v6703_v26 = vpop.eup %4052  ;;  %v2432_v62 = vand.u32 2147483647, %v6572_v51  ;;  %vm6733_vm7 = vcmp.eq.f32.partialorder %v2806_v16, 8.507059e+37  ;;  %v2015_v39 = vsel %vm6719_vm15, %v6600_v40, %v2011_v46  ;;  %v2005_v44 = vor.u32 1.1754944e-38, %v2004_v63 }
 0x5ad   : > { %v6665_v14 = vpop.xlane.xlu1 %2534  ;;  %v2200_v12 = vmul.f32 %v6703_v26, %v6598_v25  ;;  %v2426_v13 = vmul.f32 %v6648_v45, %v2425_v33  ;;  %v2411_v11 = vsub.f32 1.0, %v2410_v20  ;;  %v2600_v16 = vsel %vm6650_vm2, %v2599_v36, %v2595_v0 }
 0x5ae   : > { %v2001_v18 = vsel %vm6742_vm4, %v6631_v7, %v1997_v15  ;;  %4056 = vrcp.f32 %v6713_v38  ;;  %vm6765_vm12 = vcmp.eq.f32.partialorder %v2820_v10, 8.507059e+37  ;;  %v2193_v24 = vsel %vm6753_vm3, %v6567_v6, %v2189_v8 }
 0x5af   : > { %v2201_v40 = vsub.f32 1.0, %v2200_v12  ;;  %v2435_v52 = vor.u32 1.1754944e-38, %v2434_v23  ;;  %v2418_v46 = vand.u32 2147483647, %v6614_v34  ;;  %v2420_v7 = vand.u32 2147483648, %v6614_v34 }
 0x5b0   : > { %v6761_v63 = vpop.eup %4054  ;;  %v2020_v33 = vsel %vm6697_vm8, %v2019_v54, %v2015_v39  ;;  %vm2429_vm2 = vweird.f32 %v6648_v45  ;;  %v2208_v20 = vand.u32 2147483647, %v6598_v25  ;;  %v2210_v10 = vand.u32 2147483648, %v6598_v25  ;;  %vm6790_vm8 = vmor %vm2802_vm5, %vm2803_vm13 }
 0x5b1   : > { %v2006_v0 = vsel %vm6723_vm10, %v2005_v44, %v2001_v18  ;;  %v2427_v6 = vadd.f32 %v6648_v45, %v2426_v13  ;;  %v2412_v8 = vmul.f32 %v6672_v42, %v2411_v11  ;;  %4058 = vrcp.f32 %v6665_v14 }
 0x5b2   : > { %v6797_v54 = vsel %vm6680_vm6, %v6646_v57, %v2193_v24  ;;  %vm6799_vm0 = vcmp.eq.f32.partialorder %v2432_v62, 8.507059e+37  ;;  %vm2414_vm11 = vweird.f32 %v6614_v34  ;;  %v2202_v21 = vmul.f32 %v6703_v26, %v2201_v40 }
 0x5b3   : > { %vm2204_vm1 = vweird.f32 %v6598_v25  ;;  %v2826_v31 = vmul.f32 %v6761_v63, %v6663_v22  ;;  %vm7478_vm13 = vweird.f32 %v6401_v35  ;;  %vm7481_vm6 = vcmask 97280  }
 0x5b4   : > { %vm6812_vm5 = vmor %vm7478_vm13, %vm2817_vm14  ;;  %v6818_v48 = vsel %vm7481_vm6, %v6259_v37, %v2020_v33  ;;  %vm2415_vm15 = vweird.f32 %v6672_v42  ;;  %v2421_v62 = vor.u32 1.1754944e-38, %v2420_v7  ;;  %v2805_v12 = vsel %vm6790_vm8, %v6555_v3, %v6706_v4  ;;  %v6825_v39 = vpop.eup %4056  ;;  %v6841_v3 = vpop.xlane.xlu2 %1935 }
 0x5b5   : > { %v6779_v15 = vpop.xlane.xlu1 %2761  ;;  %vm7482_vm10 = vmmov %vm7481_vm6  ;;  %vm2205_vm4 = vweird.f32 %v6703_v26  ;;  %v2211_v27 = vor.u32 1.1754944e-38, %v2210_v10  ;;  %v2834_v44 = vand.u32 2147483647, %v6663_v22  ;;  %v2413_v4 = vadd.f32 %v6672_v42, %v2412_v8 }
 0x5b6   : > { %v6829_v35 = vsel %vm7482_vm10, %v5896_v30, %v2006_v0  ;;  %vm6835_vm14 = vmor %vm2428_vm9, %vm2429_vm2  ;;  %vm6847_vm3 = vcmp.eq.f32.partialorder %v2208_v20, 8.507059e+37  ;;  %v2616_v51 = vmul.f32 %v6825_v39, %v6713_v38  ;;  %v2819_v11 = vsel %vm6812_vm5, %v6483_v61, %v6643_v41 }
 0x5b7   : > { %v2431_v30 = vsel %vm6835_vm14, %v6648_v45, %v2427_v6  ;;  %vm6857_vm9 = vcmp.eq.f32.partialorder %v2418_v46, 8.507059e+37  ;;  %v2203_v45 = vadd.f32 %v6703_v26, %v2202_v21  ;;  %v2827_v18 = vsub.f32 1.0, %v2826_v31  ;;  %v6868_v7 = vpop.eup %4058 }
 0x5b8   : > { %v2810_v40 = vsel %vm6733_vm7, %v6627_v32, %v2805_v12  ;;  %vm7489_vm2 = vcmask 130048   ;;  %v2617_v33 = vsub.f32 1.0, %v2616_v51  ;;  %vm7490_vm8 = vcmask 162816  }
 0x5b9   : > { %v3515_v24 = vsel %vm7489_vm2, %v6576_v17, %v6560_v59  ;;  %vm7491_vm13 = vmmov %vm7490_vm8  ;;  %4060 = vrcp.f32 %v6841_v3  ;;  %v2602_v47 = vmul.f32 %v6868_v7, %v6665_v14  ;;  %v2824_v32 = vsel %vm6765_vm12, %v6585_v55, %v2819_v11 }
 0x5ba   : > { %v3524_v61 = vsel %vm7490_vm8, %v3515_v24, %v6637_v58  ;;  %v3525_v41 = vsel %vm7491_vm13, %v6537_v43, %v6625_v9  ;;  %vm7492_vm7 = vcmask 195584   ;;  %v2836_v58 = vand.u32 2147483648, %v6663_v22  ;;  %vm6892_vm2 = vmor %vm2204_vm1, %vm2205_vm4 }
 0x5bb   : > { %v3533_v59 = vsel %vm7492_vm7, %v3524_v61, %v6590_v1  ;;  %vm7493_vm5 = vmmov %vm7492_vm7  ;;  %vm2620_vm6 = vweird.f32 %v6713_v38  ;;  %vm7494_vm10 = vcmask 228352   ;;  %v2618_v55 = vmul.f32 %v6825_v39, %v2617_v33 }
 0x5bc   : > { %v3534_v17 = vsel %vm7493_vm5, %v3525_v41, %v2600_v16  ;;  %v3542_v43 = vsel %vm7494_vm10, %v3533_v59, %v2810_v40  ;;  %vm7495_vm14 = vmmov %vm7494_vm10  ;;  %v2603_v1 = vsub.f32 1.0, %v2602_v47  ;;  %v6903_v10 = vsel %vm6799_vm0, %v2435_v52, %v2431_v30 }
 0x5bd   : > { %v3543_v9 = vsel %vm7495_vm14, %v3534_v17, %v2824_v32  ;;  %v3550_v16 = vmul.f32 %v3542_v43, %v6372_v28  ;;  %v6899_v20 = vpop.xlane.xlu1 %2124  ;;  %vm6909_vm12 = vmor %vm2414_vm11, %vm2415_vm15  ;;  %v2207_v28 = vsel %vm6892_vm2, %v6703_v26, %v2203_v45  ;;  %4062 = vrcp.f32 %v6779_v15 }
 0x5be   : > { %v3551_v46 = vmul.f32 %v3543_v9, %v6388_v50  ;;  %v2624_v50 = vand.u32 2147483647, %v6713_v38  ;;  %v2417_v52 = vsel %vm6909_vm12, %v6672_v42, %v2413_v4  ;;  %v2828_v0 = vmul.f32 %v6761_v63, %v2827_v18 }
 0x5bf   : > { %vm2830_vm0 = vweird.f32 %v6663_v22  ;;  %v2626_v34 = vand.u32 2147483648, %v6713_v38  ;;  %v6924_v8 = vpop.eup %4060  ;;  %vm2831_vm11 = vweird.f32 %v6761_v63  ;;  %v2604_v26 = vmul.f32 %v6868_v7, %v2603_v1 }
 0x5c0   : > { %v3557_v6 = vpack.c.bf16 %v3551_v46, %v3550_v16  ;;  %v2610_v5 = vand.u32 2147483647, %v6665_v14  ;;  %4064 = vrcp.f32 %v6899_v20  ;;  %v2212_v42 = vsel %vm6847_vm3, %v2211_v27, %v2207_v28  ;;  %vm6997_vm14 = vmor %vm2830_vm0, %vm2831_vm11 }
 0x5c1   : > { %v2619_v21 = vadd.f32 %v6825_v39, %v2618_v55  ;;  %vm2621_vm1 = vweird.f32 %v6825_v39  ;;  %vm7500_vm15 = vcmask 261120   ;;  %v2036_v31 = vmul.f32 %v6924_v8, %v6841_v3 }
 0x5c2   : > { %3750 = vmatmul.msk.bf16.gmra.mxu1 %vm7500_vm15, %v3557_v6  ;;  %v6941_v57 = vsel %vm6857_vm9, %v2421_v62, %v2417_v52  ;;  %v2837_v12 = vor.u32 1.1754944e-38, %v2836_v58  ;;  %vm2606_vm4 = vweird.f32 %v6665_v14  ;;  %v2612_v37 = vand.u32 2147483648, %v6665_v14  ;;  %vm6963_vm13 = vmor %vm2620_vm6, %vm2621_vm1 }
 0x5c3   : > { %v2829_v27 = vadd.f32 %v6761_v63, %v2828_v0  ;;  %vm6946_vm3 = vcmp.eq.f32.partialorder %v2834_v44, 8.507059e+37  ;;  %vm6950_vm8 = vcmp.eq.f32.partialorder %v2624_v50, 8.507059e+37  ;;  %v2627_v13 = vor.u32 1.1754944e-38, %v2626_v34  ;;  %v4063_v51 = vpop.eup %4062 }
 0x5c4   : > { %v6930_v23 = vpop.xlane.xlu2 %2348  ;;  %vm7505_vm9 = vcmask 130048   ;;  %v2605_v56 = vadd.f32 %v6868_v7, %v2604_v26  ;;  %vm2607_vm7 = vweird.f32 %v6868_v7  ;;  %v2037_v45 = vsub.f32 1.0, %v2036_v31 }
 0x5c5   : > { %4066 = vrcp.f32 %v6930_v23  ;;  %v3518_v11 = vsel %vm7505_vm9, %v6818_v48, %v2212_v42  ;;  %v2623_v18 = vsel %vm6963_vm13, %v6825_v39, %v2619_v21  ;;  %vm6972_vm5 = vcmp.eq.f32.partialorder %v2610_v5, 8.507059e+37  ;;  %vm6985_vm6 = vmor %vm2606_vm4, %vm2607_vm7 }
 0x5c6   : > { %v2840_v48 = vmul.f32 %v4063_v51, %v6779_v15  ;;  %v2848_v38 = vand.u32 2147483647, %v6779_v15  ;;  %v6978_v24 = vpop.eup %4064  ;;  %v2613_v33 = vor.u32 1.1754944e-38, %v2612_v37  ;;  %v2044_v61 = vand.u32 2147483647, %v6841_v3  ;;  %vm7516_vm4 = vmmov %vm7505_vm9 }
 0x5c7   : > { %v6955_v62 = vpop.xlane.xlu0 %1932  ;;  %v2850_v41 = vand.u32 2147483648, %v6779_v15  ;;  %v2046_v47 = vand.u32 2147483648, %v6841_v3  ;;  %vm2844_vm10 = vweird.f32 %v6779_v15  ;;  %v2214_v59 = vmul.f32 %v6978_v24, %v6899_v20 }
 0x5c8   : > { %4068 = vrcp.f32 %v6955_v62  ;;  %v2841_v32 = vsub.f32 1.0, %v2840_v48  ;;  %v2628_v14 = vsel %vm6950_vm8, %v2627_v13, %v2623_v18  ;;  %v2609_v58 = vsel %vm6985_vm6, %v6868_v7, %v2605_v56 }
 0x5c9   : > { %v2038_v43 = vmul.f32 %v6924_v8, %v2037_v45  ;;  %vm2040_vm2 = vweird.f32 %v6841_v3  ;;  %vm2041_vm12 = vweird.f32 %v6924_v8  ;;  %vm2845_vm0 = vweird.f32 %v4063_v51 }
 0x5ca   : > { %v2842_v22 = vmul.f32 %v4063_v51, %v2841_v32  ;;  %vm7011_vm11 = vcmp.eq.f32.partialorder %v2848_v38, 8.507059e+37  ;;  %v2833_v55 = vsel %vm6997_vm14, %v6761_v63, %v2829_v27  ;;  %v2851_v7 = vor.u32 1.1754944e-38, %v2850_v41  ;;  %vm2846_vm15 = vmor %vm2844_vm10, %vm2845_vm0 }
 0x5cb   : > { %v7009_v9 = vpop.eup %4066  ;;  %v2215_v16 = vsub.f32 1.0, %v2214_v59  ;;  %v2222_v46 = vand.u32 2147483647, %v6899_v20  ;;  %v2614_v28 = vsel %vm6972_vm5, %v2613_v33, %v2609_v58  ;;  %vm2218_vm1 = vweird.f32 %v6899_v20  ;;  %vm7065_vm10 = vmor %vm2040_vm2, %vm2041_vm12 }
 0x5cc   : > { %v7018_v1 = vpop.xlane.xlu2 %2543  ;;  %v2438_v25 = vmul.f32 %v7009_v9, %v6930_v23  ;;  %v2843_v50 = vadd.f32 %v4063_v51, %v2842_v22  ;;  %v2224_v52 = vand.u32 2147483648, %v6899_v20  ;;  %v2446_v0 = vand.u32 2147483647, %v6930_v23 }
 0x5cd   : > { %v2039_v6 = vadd.f32 %v6924_v8, %v2038_v43  ;;  %v2838_v5 = vsel %vm6946_vm3, %v2837_v12, %v2833_v55  ;;  %4070 = vrcp.f32 %v7018_v1  ;;  %v3517_v31 = vsel %vm7516_vm4, %v6829_v35, %v6797_v54 }
 0x5ce   : > { %v7030_v34 = vpop.eup %4068  ;;  %v2439_v26 = vsub.f32 1.0, %v2438_v25  ;;  %v2847_v21 = vsel %vm2846_vm15, %v4063_v51, %v2843_v50  ;;  %vm7517_vm8 = vcmask 162816   ;;  %v2216_v15 = vmul.f32 %v6978_v24, %v2215_v16 }
 0x5cf   : > { %v7028_v63 = vpop.xlane.xlu0 %2127  ;;  %v2022_v42 = vmul.f32 %v7030_v34, %v6955_v62  ;;  %v3527_v37 = vsel %vm7517_vm8, %v3518_v11, %v6903_v10  ;;  %v7046_v27 = vpop.xlane.xlu1 %2351  ;;  %v2852_v12 = vsel %vm7011_vm11, %v2851_v7, %v2847_v21  ;;  %vm7518_vm3 = vmmov %vm7517_vm8  ;;  %vm7519_vm9 = vcmask 195584  }
 0x5d0   : > { %v3526_v30 = vsel %vm7518_vm3, %v3517_v31, %v6941_v57  ;;  %v3536_v4 = vsel %vm7519_vm9, %v3527_v37, %v2628_v14  ;;  %v2440_v13 = vmul.f32 %v7009_v9, %v2439_v26  ;;  %vm7520_vm13 = vmmov %vm7519_vm9  ;;  %vm7521_vm7 = vcmask 228352  }
 0x5d1   : > { %v2023_v51 = vsub.f32 1.0, %v2022_v42  ;;  %v3535_v54 = vsel %vm7520_vm13, %v3526_v30, %v2614_v28  ;;  %v3545_v35 = vsel %vm7521_vm7, %v3536_v4, %v2852_v12  ;;  %vm2219_vm5 = vweird.f32 %v6978_v24  ;;  %vm7522_vm6 = vmmov %vm7521_vm7  ;;  %v3601_v48 = vpop.f32.mrf.mxu1 }
 0x5d2   : > { %v2448_v10 = vand.u32 2147483648, %v6930_v23  ;;  %v3544_v11 = vsel %vm7522_vm6, %v3535_v54, %v2838_v5  ;;  %v3553_v44 = vmul.f32 %v3545_v35, %v6392_v29  ;;  %v2030_v45 = vand.u32 2147483647, %v6955_v62  ;;  %vm7094_vm0 = vmor %vm2218_vm1, %vm2219_vm5 }
 0x5d3   : > { %v2024_v56 = vmul.f32 %v7030_v34, %v2023_v51  ;;  %v2032_v18 = vand.u32 2147483648, %v6955_v62  ;;  %v3552_v40 = vmul.f32 %v3544_v11, %v6390_v53  ;;  %v7073_v38 = vpop.eup %4070  ;;  %v2043_v29 = vsel %vm7065_vm10, %v6924_v8, %v2039_v6 }
 0x5d4   : > { %v2217_v33 = vadd.f32 %v6978_v24, %v2216_v15  ;;  %vm2443_vm14 = vweird.f32 %v7009_v9  ;;  %4072 = vrcp.f32 %v7028_v63  ;;  %v2441_v41 = vadd.f32 %v7009_v9, %v2440_v13 }
 0x5d5   : > { %v2025_v39 = vadd.f32 %v7030_v34, %v2024_v56  ;;  %vm2027_vm2 = vweird.f32 %v7030_v34  ;;  %v3558_v53 = vpack.c.bf16 %v3553_v44, %v3552_v40  ;;  %vm2045_vm12 = vcmp.eq.f32.partialorder %v2044_v61, 8.507059e+37  ;;  %v7105_v61 = vld [vmem:[%s7312_s4] ss:$0 sm:$0xff] }
 0x5d6   : > { %v2047_v8 = vor.u32 1.1754944e-38, %v2046_v47  ;;  %vm2442_vm11 = vweird.f32 %v6930_v23  ;;  %v2644_v17 = vmul.f32 %v7073_v38, %v7018_v1  ;;  %vm7107_vm15 = vcmp.eq.f32.partialorder %v2222_v46, 8.507059e+37 }
 0x5d7   : > { %v7084_v32 = vpop.xlane.xlu0 %2540  ;;  %v2225_v20 = vor.u32 1.1754944e-38, %v2224_v52  ;;  %vm7113_vm1 = vmor %vm2442_vm11, %vm2443_vm14  ;;  %vm2026_vm4 = vweird.f32 %v6955_v62  ;;  %vm7531_vm8 = vcmask 261120   ;;  %4074 = vrcp.f32 %v7046_v27  ;;  %v7144_v55 = vpop.xlane.xlu1 %2764 }
 0x5d8   : > { %3751 = vmatmul.msk.bf16.gmra.mxu1 %vm7531_vm8, %v3558_v53  ;;  %v2048_v23 = vsel %vm2045_vm12, %v2047_v8, %v2043_v29  ;;  %v2221_v14 = vsel %vm7094_vm0, %v6978_v24, %v2217_v33  ;;  %vm7123_vm3 = vcmp.eq.f32.partialorder %v2446_v0, 8.507059e+37  ;;  %v2449_v43 = vor.u32 1.1754944e-38, %v2448_v10  ;;  %vm7129_vm9 = vmor %vm2026_vm4, %vm2027_vm2  ;;  %v3480_v29 = vpop.f32.mrf.mxu0 }
 0x5d9   : > { %v2445_v62 = vsel %vm7113_vm1, %v7009_v9, %v2441_v41  ;;  %v2029_v36 = vsel %vm7129_vm9, %v7030_v34, %v2025_v39  ;;  %vm2031_vm13 = vcmp.eq.f32.partialorder %v2030_v45, 8.507059e+37  ;;  %v2033_v24 = vor.u32 1.1754944e-38, %v2032_v18  ;;  %vm7537_vm5 = vmmov %vm7531_vm8  ;;  %v3603_v21 = vpop.f32.mrf.mxu1 }
 0x5da   : > { %v7146_v7 = vpop.eup %4072  ;;  %v2645_v16 = vsub.f32 1.0, %v2644_v17  ;;  %v2236_v46 = vand.u32 2147483647, %v7028_v63  ;;  %v3602_v9 = vadd.f32 %v7105_v61, %v3601_v48  ;;  %4076 = vrcp.f32 %v7084_v32  ;;  %vm7545_vm8 = vmmov %vm7537_vm5 }
 0x5db   : > { %vm7536_vm7 = vcmask 97280   ;;  %v2226_v28 = vsel %vm7107_vm15, %v2225_v20, %v2221_v14  ;;  %v2652_v50 = vand.u32 2147483647, %v7018_v1  ;;  %v2228_v52 = vmul.f32 %v7146_v7, %v7028_v63 }
 0x5dc   : > { %v7153_v25 = vsel %vm7536_vm7, %v6264_v60, %v2048_v23  ;;  %v2034_v0 = vsel %vm2031_vm13, %v2033_v24, %v2029_v36  ;;  %v2654_v34 = vand.u32 2147483648, %v7018_v1  ;;  %v2238_v6 = vand.u32 2147483648, %v7028_v63  ;;  %3621 = vst.msk [vmem:[%s7142_s24] sm:$0xff] %vm7537_vm5, %v3602_v9  ;;  %vm7540_vm14 = vmmov %vm7536_vm7 }
 0x5dd   : > { %4078 = vrcp.f32 %v7144_v55  ;;  %v7165_v26 = vpop.eup %4074  ;;  %v7169_v60 = vsel %vm7123_vm3, %v2449_v43, %v2445_v62  ;;  %v2229_v5 = vsub.f32 1.0, %v2228_v52  ;;  %vm2232_vm6 = vweird.f32 %v7028_v63 }
 0x5de   : > { %v2460_v42 = vand.u32 2147483647, %v7046_v27  ;;  %v2646_v37 = vmul.f32 %v7073_v38, %v2645_v16  ;;  %vm7176_vm10 = vcmp.eq.f32.partialorder %v2236_v46, 8.507059e+37  ;;  %v2452_v12 = vmul.f32 %v7165_v26, %v7046_v27 }
 0x5df   : > { %v7173_v31 = vpop.xlane.xlu0 %2767  ;;  %v2462_v30 = vand.u32 2147483648, %v7046_v27  ;;  %v3510_v4 = vsel %vm7540_vm14, %v6269_v49, %v2034_v0  ;;  %v2230_v13 = vmul.f32 %v7146_v7, %v2229_v5  ;;  %vm2233_vm2 = vweird.f32 %v7146_v7 }
 0x5e0   : > { %vm2456_vm12 = vweird.f32 %v7046_v27  ;;  %v4077_v51 = vpop.eup %4076  ;;  %vm2649_vm0 = vweird.f32 %v7073_v38  ;;  %v2239_v54 = vor.u32 1.1754944e-38, %v2238_v6  ;;  %v2453_v35 = vsub.f32 1.0, %v2452_v12  ;;  %vm7206_vm4 = vmor %vm2232_vm6, %vm2233_vm2  ;;  %v3453_v12 = vpop.f32.mrf.mxu3 }
 0x5e1   : > { %v3604_v10 = vadd.f32 %v7105_v61, %v3603_v21  ;;  %4080 = vrcp.f32 %v7173_v31  ;;  %v2231_v11 = vadd.f32 %v7146_v7, %v2230_v13  ;;  %vm7192_vm11 = vcmp.eq.f32.partialorder %v2460_v42, 8.507059e+37 }
 0x5e2   : > { %v2630_v44 = vmul.f32 %v4077_v51, %v7084_v32  ;;  %vm2634_vm15 = vweird.f32 %v7084_v32  ;;  %v7199_v56 = vadd.f32 %v7073_v38, %v2646_v37  ;;  %vm2648_vm1 = vweird.f32 %v7018_v1 }
 0x5e3   : > { %v4079_v57 = vpop.eup %4078  ;;  %v2454_v18 = vmul.f32 %v7165_v26, %v2453_v35  ;;  %v2463_v40 = vor.u32 1.1754944e-38, %v2462_v30  ;;  %v2638_v48 = vand.u32 2147483647, %v7084_v32  ;;  %3622 = vst.msk [vmem:[%s7142_s24 + $0x8] sm:$0xff] %vm7545_vm8, %v3604_v10  ;;  %v2235_v33 = vsel %vm7206_vm4, %v7146_v7, %v2231_v11  ;;  %vm7264_vm8 = vmor %vm2648_vm1, %vm2649_vm0  ;;  %v3482_v30 = vpop.f32.mrf.mxu0 }
 0x5e4   : > { %vm2457_vm3 = vweird.f32 %v7165_v26  ;;  %v2631_v41 = vsub.f32 1.0, %v2630_v44  ;;  %v2854_v63 = vmul.f32 %v4079_v57, %v7144_v55  ;;  %v2640_v53 = vand.u32 2147483648, %v7084_v32 }
 0x5e5   : > { %v2455_v39 = vadd.f32 %v7165_v26, %v2454_v18  ;;  %v2862_v8 = vand.u32 2147483647, %v7144_v55  ;;  %v2864_v59 = vand.u32 2147483648, %v7144_v55  ;;  %vm2635_vm9 = vweird.f32 %v4077_v51  ;;  %vm7228_vm7 = vmor %vm2456_vm12, %vm2457_vm3 }
 0x5e6   : > { %v2632_v17 = vmul.f32 %v4077_v51, %v2631_v41  ;;  %v2855_v3 = vsub.f32 1.0, %v2854_v63  ;;  %vm2858_vm13 = vweird.f32 %v7144_v55  ;;  %v2240_v47 = vsel %vm7176_vm10, %v2239_v54, %v2235_v33  ;;  %vm2636_vm10 = vmor %vm2634_vm15, %vm2635_vm9 }
 0x5e7   : > { %v4081_v20 = vpop.eup %4080  ;;  %vm7232_vm5 = vcmp.eq.f32.partialorder %v2638_v48, 8.507059e+37  ;;  %vm2859_vm6 = vweird.f32 %v4079_v57  ;;  %vm7550_vm14 = vcmask 130048   ;;  %v2459_v43 = vsel %vm7228_vm7, %v7165_v26, %v2455_v39 }
 0x5e8   : > { %v3519_v58 = vsel %vm7550_vm14, %v3510_v4, %v2226_v28  ;;  %v2633_v22 = vadd.f32 %v4077_v51, %v2632_v17  ;;  %v2856_v62 = vmul.f32 %v4079_v57, %v2855_v3  ;;  %v2868_v36 = vmul.f32 %v4081_v20, %v7173_v31  ;;  %vm7553_vm12 = vmmov %vm7550_vm14 }
 0x5e9   : > { %v2641_v27 = vor.u32 1.1754944e-38, %v2640_v53  ;;  %vm7243_vm2 = vcmp.eq.f32.partialorder %v2862_v8, 8.507059e+37  ;;  %v2865_v7 = vor.u32 1.1754944e-38, %v2864_v59  ;;  %v2876_v16 = vand.u32 2147483647, %v7173_v31  ;;  %vm2860_vm15 = vmor %vm2858_vm13, %vm2859_vm6 }
 0x5ea   : > { %v2637_v46 = vsel %vm2636_vm10, %v4077_v51, %v2633_v22  ;;  %v2857_v9 = vadd.f32 %v4079_v57, %v2856_v62  ;;  %v2869_v28 = vsub.f32 1.0, %v2868_v36  ;;  %v2878_v52 = vand.u32 2147483648, %v7173_v31 }
 0x5eb   : > { %v3520_v0 = vsel %vm7553_vm12, %v7153_v25, %v2240_v47  ;;  %v2464_v32 = vsel %vm7192_vm11, %v2463_v40, %v2459_v43  ;;  %v2642_v6 = vsel %vm7232_vm5, %v2641_v27, %v2637_v46  ;;  %vm7554_vm4 = vcmask 162816  }
 0x5ec   : > { %v3528_v26 = vsel %vm7554_vm4, %v3519_v58, %v7169_v60  ;;  %v2861_v25 = vsel %vm2860_vm15, %v4079_v57, %v2857_v9  ;;  %v2870_v42 = vmul.f32 %v4081_v20, %v2869_v28  ;;  %vm2873_vm11 = vweird.f32 %v4081_v20  ;;  %vm7558_vm1 = vmmov %vm7554_vm4 }
 0x5ed   : > { %vm7557_vm3 = vcmask 195584   ;;  %v3481_v37 = vadd.f32 %v3480_v29, %v6405_v19  ;;  %v2651_v55 = vsel %vm7264_vm8, %v7073_v38, %v7199_v56  ;;  %v2655_v60 = vor.u32 1.1754944e-38, %v2654_v34 }
 0x5ee   : > { %v3537_v21 = vsel %vm7557_vm3, %v3528_v26, %v2642_v6  ;;  %v2866_v15 = vsel %vm7243_vm2, %v2865_v7, %v2861_v25  ;;  %v2871_v4 = vadd.f32 %v4081_v20, %v2870_v42  ;;  %vm2872_vm0 = vweird.f32 %v7173_v31  ;;  %vm7560_vm6 = vmmov %vm7557_vm3 }
 0x5ef   : > { %v3529_v13 = vsel %vm7558_vm1, %v3520_v0, %v2464_v32  ;;  %vm7559_vm9 = vcmask 228352   ;;  %v3454_v51 = vadd.f32 %v3453_v12, %v6395_v2  ;;  %vm2653_vm13 = vcmp.eq.f32.partialorder %v2652_v50, 8.507059e+37  ;;  %vm2874_vm7 = vmor %vm2872_vm0, %vm2873_vm11 }
 0x5f0   : > { %v3546_v19 = vsel %vm7559_vm9, %v3537_v21, %v2866_v15  ;;  %v2879_v38 = vor.u32 1.1754944e-38, %v2878_v52  ;;  %v2656_v54 = vsel %vm2653_vm13, %v2655_v60, %v2651_v55  ;;  %v2875_v35 = vsel %vm2874_vm7, %v4081_v20, %v2871_v4  ;;  %vm7561_vm14 = vmmov %vm7559_vm9 }
 0x5f1   : > { %v3554_v34 = vmul.f32 %v3546_v19, %v3481_v37  ;;  %vm2877_vm5 = vcmp.eq.f32.partialorder %v2876_v16, 8.507059e+37  ;;  %v3483_v10 = vadd.f32 %v3482_v30, %v3454_v51  ;;  %v3538_v11 = vsel %vm7560_vm6, %v3529_v13, %v2656_v54 }
 0x5f2   : > { %v2880_v31 = vsel %vm2877_vm5, %v2879_v38, %v2875_v35  ;;  %vm7562_vm10 = vcmask 261120  }
 0x5f3   : > { %v3547_v49 = vsel %vm7561_vm14, %v3538_v11, %v2880_v31  ;;  %vm7563_vm2 = vmmov %vm7562_vm10 }
 0x5f4   : > { %v3555_v2 = vmul.f32 %v3547_v49, %v3483_v10  ;;  %vm7564_vm12 = vmmov %vm7563_vm2 }
 0x5f5   : > { %vm7565_vm15 = vmmov %vm7563_vm2 }
 0x5f6   : > { %v3559_v44 = vpack.c.bf16 %v3555_v2, %v3554_v34  ;;  %vm7566_vm4 = vmmov %vm7563_vm2 }
 0x5f7   : > { %vm7567_vm8 = vmmov %vm7563_vm2 }
 0x5f8   : > { %3752 = vmatmul.msk.bf16.gmra.mxu1 %vm7562_vm10, %v3559_v44  ;;  %vm7568_vm11 = vmmov %vm7563_vm2 }
 0x63f   : > { %v3606_v1 = vpop.f32.mrf.mxu1 }
 0x640   : > { %v3607_v50 = vadd.f32 %v7105_v61, %v3606_v1 }
 0x642   : > { %3623 = vst.msk [vmem:[%s7142_s24 + $0x10] sm:$0xff] %vm7563_vm2, %v3607_v50 }
 0x647   : > { %v3608_v57 = vpop.f32.mrf.mxu1 }
 0x648   : > { %v3609_v56 = vadd.f32 %v7105_v61, %v3608_v57 }
 0x64a   : > { %3624 = vst.msk [vmem:[%s7142_s24 + $0x18] sm:$0xff] %vm7564_vm12, %v3609_v56 }
 0x655   : > { %v3611_v45 = vpop.f32.mrf.mxu1 }
 0x656   : > { %v3612_v18 = vadd.f32 %v7105_v61, %v3611_v45 }
 0x658   : > { %3625 = vst.msk [vmem:[%s7142_s24 + $0x20] sm:$0xff] %vm7565_vm15, %v3612_v18 }
 0x65d   : > { %v3613_v40 = vpop.f32.mrf.mxu1 }
 0x65e   : > { %v3614_v48 = vadd.f32 %v7105_v61, %v3613_v40 }
 0x660   : > { %3626 = vst.msk [vmem:[%s7142_s24 + $0x28] sm:$0xff] %vm7566_vm4, %v3614_v48 }
 0x675   : > { %v3616_v29 = vpop.f32.mrf.mxu1 }
 0x676   : > { %v3617_v33 = vadd.f32 %v7105_v61, %v3616_v29 }
 0x678   : > { %3627 = vst.msk [vmem:[%s7142_s24 + $0x30] sm:$0xff] %vm7567_vm8, %v3617_v33 }
 0x67d   : > { %v3618_v41 = vpop.f32.mrf.mxu1 }
 0x67e   : > { %v3619_v63 = vadd.f32 %v7105_v61, %v3618_v41 }
 0x680   : > { %3628 = vst.msk [vmem:[%s7142_s24 + $0x38] sm:$0xff] %vm7568_vm11, %v3619_v63 }
 0x681 PF: > { %s16_s21 = sadd.s32 1, %s4088_s21  }
 0x682   : > { %p13_p4 = scmp.ge.s32.totalorder %s16_s21, 4  }
 0x684   :  { %15 = sbr.rel (!%p13_p4) target bundleno = 1 (0x1), region = 74 }

</bundles_post_ra>
